<compile_context>
chip_gen: v7x
topology: tpu7x:2x2x1
jax: 0.10.0
libtpu: 0.0.40
codegen_flags: <defaults>
</compile_context>

<pallas_src>
import functools
import math

import jax
import jax.numpy as jnp
from jax import lax
from jax.experimental import pallas as pl
from jax.experimental.pallas import tpu as pltpu

# Attack hyper-parameters (from VATLoss.__init__, Linf branch).
LINF_EPS = 8.0 / 255.0
LINF_EPS_ITER = 2.0 / 255.0
LINF_NITERS = 7

# 0x9E3779B1 / 0x85EBCA6B / 0xC2B2AE35 as signed int32 (two's complement).
_GOLDEN = -1640531535
_FMIX_A = -2048144789
_FMIX_B = -1028477387


def _log_softmax_and_softmax(logits):
    """Numerically-stable log-softmax / softmax along the last axis (f32)."""
    m = jnp.max(logits, axis=-1, keepdims=True)
    shifted = logits - m
    e = jnp.exp(shifted)
    z = jnp.sum(e, axis=-1, keepdims=True)
    log_p = shifted - jnp.log(z)
    p = e / z
    return log_p, p


def _shr_logical(x, k):
    """Logical right shift on int32 (arithmetic shift + mask of sign bits)."""
    return (x >> k) & ((1 << (32 - k)) - 1)


def _uniform_pm_eps(seed, tile_idx, shape, tile_n, d, eps):
    """uniform(-eps, eps) noise from a counter-based hash (murmur3 fmix32).

    Pure int32 jnp ops -> lowers on Mosaic and the interpret fallback; no
    x-sized HBM read and no large materialized temporaries beyond one [TN, D]
    intermediate chain that fuses elementwise.
    """
    row = lax.broadcasted_iota(jnp.int32, shape, 0)
    col = lax.broadcasted_iota(jnp.int32, shape, 1)
    h = (tile_idx * tile_n + row) * d + col + seed * _GOLDEN
    h = h ^ _shr_logical(h, 16)
    h = h * _FMIX_A
    h = h ^ _shr_logical(h, 13)
    h = h * _FMIX_B
    h = h ^ _shr_logical(h, 16)
    # 23 mantissa-sized bits -> exact f32 uniform in [0, 1)
    u01 = (h & 0x7FFFFF).astype(jnp.float32) * (1.0 / float(1 << 23))
    return (2.0 * u01 - 1.0) * eps


def vat_loss_kernel(seed_ref, x_ref, w_ref, wt_ref, b_ref, kl_ref, *,
                    niters, eps, eps_iter):
    x = x_ref[...]            # [TN, D]  f32, image data assumed in [0, 1]
    w = w_ref[...]            # [D, Kp]  bf16 (padded classes are zero columns)
    wt = wt_ref[...]          # [Kp, D]  bf16 (resident W^T for backward matmul)
    b = b_ref[...]            # [1, Kp]  f32  (padded classes biased to -1e9)
    tn, d = x.shape

    # ---- in-kernel random init of the Linf attack: uniform(-eps, eps) ----
    noise = _uniform_pm_eps(seed_ref[0], pl.program_id(0), x.shape, tn, d, eps)

    # ---- clean forward: logit_y = net(x)  (no_grad in the reference) ----
    logits_y = jnp.dot(x.astype(jnp.bfloat16), w,
                       preferred_element_type=jnp.float32) + b
    log_p, p = _log_softmax_and_softmax(logits_y)           # detached target

    # ---- LinfPGDAttack.perturb(net, x, logit_y) ----
    # Tight box = (Linf ball around x) ∩ [0, 1]; one clip replaces the two
    # sequential clips of the reference (equivalent for x ∈ [0, 1]).
    lo = jnp.maximum(x - eps, 0.0)
    hi = jnp.minimum(x + eps, 1.0)
    x_adv0 = jnp.clip(x + noise, lo, hi)

    def pgd_step(_, x_adv):
        logits_adv = jnp.dot(x_adv.astype(jnp.bfloat16), w,
                             preferred_element_type=jnp.float32) + b
        # softmax only (the log-softmax branch is unused inside the loop)
        m = jnp.max(logits_adv, axis=-1, keepdims=True)
        e = jnp.exp(logits_adv - m)
        q = e / jnp.sum(e, axis=-1, keepdims=True)
        # d/d(logits_adv) of KL(p || q) ∝ (q - p); positive scale irrelevant.
        g_logits = (q - p).astype(jnp.bfloat16)             # padded classes: 0
        # chain through the linear net with resident W^T: [TN,Kp] @ [Kp,D]
        g_x = jnp.dot(g_logits, wt, preferred_element_type=jnp.float32)
        # eps_iter * sign(g) as a single select (sign(0) -> +eps_iter; benign)
        step = jnp.where(g_x >= 0.0, eps_iter, -eps_iter)
        return jnp.clip(x_adv + step, lo, hi)

    x_adv = lax.fori_loop(0, niters, pgd_step, x_adv0, unroll=True)

    # ---- adversarial forward + per-sample/per-class KL terms ----
    logits_adv = jnp.dot(x_adv.astype(jnp.bfloat16), w,
                         preferred_element_type=jnp.float32) + b
    log_q, _ = _log_softmax_and_softmax(logits_adv)

    # Padded classes have p == 0 exactly -> contribute 0; wrapper sums / N.
    kl_ref[...] = p * (log_p - log_q)                       # [TN, Kp]


def _vmem_capacity_bytes():
    """Per-TensorCore VMEM capacity; conservative fallback = v7x (64 MiB)."""
    try:
        info = pltpu.get_tpu_info()
        for attr in ("vmem_capacity_bytes", "vmem_bytes", "vmem_size_bytes"):
            v = getattr(info, attr, None)
            if v:
                return int(v)
    except Exception:
        pass
    return 64 * 1024 * 1024


def _choose_tile_n(n, d, vmem_cap_bytes):
    """Pick the batch tile: as large as VMEM allows, but >= 2 grid tiles.

    Per-row f32 working set in the unrolled PGD loop: double-buffered x tile
    (2x), x_adv, lo, hi, noise chain, g_x, step temp, bf16 cast copies and
    headroom -> ~14 * D * 4 bytes per row against ~55% of physical VMEM.
    """
    budget = int(vmem_cap_bytes * 0.55)
    bytes_per_row = 14 * d * 4
    tn = max(8, budget // bytes_per_row)
    # keep at least 2 grid tiles so both v7x TensorCores get work
    half_n = max(8, -(-n // 2))
    tn = min(tn, ((half_n + 7) // 8) * 8)
    # MXU / bf16-packing friendly alignment: prefer 256, then 128, then 8
    for align in (256, 128, 8):
        if tn >= align:
            return int((tn // align) * align)
    return 8


def vat_loss(x_nchw, w, b, seed=0, *, niters=LINF_NITERS, eps=LINF_EPS,
             eps_iter=LINF_EPS_ITER, tile_n=None):
    """Flatten NCHW input, pad classes to lane width, run the fused VAT kernel.

    Precondition: x_nchw holds image data in [0, 1] (as in the reference
    pipeline); normalized inputs would change the PGD box semantics.
    """
    n = x_nchw.shape[0]
    d = int(math.prod(x_nchw.shape[1:]))
    k = w.shape[1]
    kp = ((k + 127) // 128) * 128                           # lane-dense class dim

    x_flat = x_nchw.reshape(n, d).astype(jnp.float32)

    # Pad W with zero columns; padded bias entries -> -1e9 so padded classes get
    # zero softmax mass (zero KL, zero attack-gradient contribution).
    w_p = jnp.zeros((d, kp), jnp.bfloat16).at[:, :k].set(w.astype(jnp.bfloat16))
    w_t = jnp.transpose(w_p)                                # [Kp, D] resident W^T
    b_p = jnp.full((1, kp), -1e9, jnp.float32).at[0, :k].set(
        b.reshape(-1).astype(jnp.float32))

    vmem_cap = _vmem_capacity_bytes()
    if tile_n is None:
        tile_n = _choose_tile_n(n, d, vmem_cap)
    n_pad = ((n + tile_n - 1) // tile_n) * tile_n
    if n_pad != n:
        x_flat = jnp.pad(x_flat, ((0, n_pad - n), (0, 0)))

    grid = (n_pad // tile_n,)
    kernel = functools.partial(vat_loss_kernel, niters=niters, eps=eps,
                               eps_iter=eps_iter)

    kl_terms = pl.pallas_call(
        kernel,
        out_shape=jax.ShapeDtypeStruct((n_pad, kp), jnp.float32),
        grid_spec=pltpu.PrefetchScalarGridSpec(
            num_scalar_prefetch=1,                          # scalar PRNG seed
            grid=grid,
            in_specs=[
                pl.BlockSpec((tile_n, d), lambda i, s: (i, 0)),   # x tile (streamed)
                pl.BlockSpec((d, kp), lambda i, s: (0, 0)),       # W   (resident)
                pl.BlockSpec((kp, d), lambda i, s: (0, 0)),       # W^T (resident)
                pl.BlockSpec((1, kp), lambda i, s: (0, 0)),       # b   (resident)
            ],
            out_specs=pl.BlockSpec((tile_n, kp), lambda i, s: (i, 0)),
        ),
        compiler_params=pltpu.CompilerParams(
            # independent per-tile outputs -> batch axis is parallel (megacore)
            dimension_semantics=("parallel",),
            vmem_limit_bytes=int(vmem_cap * 0.8),
        ),
    )(jnp.asarray([seed], dtype=jnp.int32), x_flat, w_p, w_t, b_p)

    # Reduce per-sample/per-class KL terms; normalize by the *global* batch size.
    return jnp.sum(kl_terms[:n]) / n


if __name__ == "__main__":
    key = jax.random.PRNGKey(0)
    k_x, k_w = jax.random.split(key, 2)

    # Small CIFAR-like shapes: N=16, C=4, H=W=16 -> D = 1024, K = 10 classes.
    # N=16 with tile_n=8 exercises the 2-tile batch grid.
    N, C, H, W_sp = 16, 4, 16, 16
    D = C * H * W_sp
    K = 10

    x = jax.random.uniform(k_x, (N, C, H, W_sp), dtype=jnp.float32)   # images in [0,1]
    w = jax.random.normal(k_w, (D, K), dtype=jnp.float32) * 0.05      # linear "net" weight
    b = jnp.zeros((K,), dtype=jnp.float32)                            # linear "net" bias

    loss = vat_loss(x, w, b, seed=0, tile_n=8)
    loss = jax.block_until_ready(loss)

    assert loss.shape == () and bool(jnp.isfinite(loss)) and float(loss) > -1e-5
    print("KERNEL_OK")
</pallas_src>

<mosaic_0001>
module attributes {stable_mosaic.version = 11 : i64} {
  func.func @vat_loss_kernel(%arg0: i32, %arg1: memref<1xi32, #tpu.memory_space<smem>>, %arg2: memref<8x1024xf32, #tpu.memory_space<vmem>>, %arg3: memref<1024x128xbf16, #tpu.memory_space<vmem>>, %arg4: memref<128x1024xbf16, #tpu.memory_space<vmem>>, %arg5: memref<1x128xf32, #tpu.memory_space<vmem>>, %arg6: memref<8x128xf32, #tpu.memory_space<vmem>>) attributes {dimension_semantics = [#tpu.dimension_semantics<parallel>], iteration_bounds = array<i64: 2>, scalar_prefetch = 1 : i64, scratch_operands = 0 : i64, tpu.core_type = #tpu.core_type<tc>, window_params = [{transform_indices = @transform_0, window_bounds = array<i64: 8, 1024>}, {pipeline_mode = #tpu.pipeline_mode<synchronous>, transform_indices = @transform_1, window_bounds = array<i64: 1024, 128>}, {pipeline_mode = #tpu.pipeline_mode<synchronous>, transform_indices = @transform_2, window_bounds = array<i64: 128, 1024>}, {pipeline_mode = #tpu.pipeline_mode<synchronous>, transform_indices = @transform_3, window_bounds = array<i64: 1, 128>}, {transform_indices = @transform_4, window_bounds = array<i64: 8, 128>}]} {
    %c0 = arith.constant 0 : index
    %c0_0 = arith.constant 0 : index
    %0 = vector.load %arg2[%c0, %c0_0] : memref<8x1024xf32, #tpu.memory_space<vmem>>, vector<8x1024xf32>
    %c0_1 = arith.constant 0 : index
    %c0_2 = arith.constant 0 : index
    %1 = vector.load %arg3[%c0_1, %c0_2] : memref<1024x128xbf16, #tpu.memory_space<vmem>>, vector<1024x128xbf16>
    %c0_3 = arith.constant 0 : index
    %c0_4 = arith.constant 0 : index
    %2 = vector.load %arg4[%c0_3, %c0_4] : memref<128x1024xbf16, #tpu.memory_space<vmem>>, vector<128x1024xbf16>
    %c0_5 = arith.constant 0 : index
    %c0_6 = arith.constant 0 : index
    %3 = vector.load %arg5[%c0_5, %c0_6] : memref<1x128xf32, #tpu.memory_space<vmem>>, vector<1x128xf32>
    %c0_7 = arith.constant 0 : index
    %4 = memref.load %arg1[%c0_7] : memref<1xi32, #tpu.memory_space<smem>>
    %5 = tpu.iota {dimensions = array<i32: 0>} : vector<8x1024xi32>
    %6 = tpu.iota {dimensions = array<i32: 1>} : vector<8x1024xi32>
    %c8_i32 = arith.constant 8 : i32
    %7 = arith.muli %arg0, %c8_i32 : i32
    %8 = vector.broadcast %7 : i32 to vector<8x1024xi32>
    %9 = arith.addi %8, %5 : vector<8x1024xi32>
    %c1024_i32 = arith.constant 1024 : i32
    %10 = vector.broadcast %c1024_i32 : i32 to vector<8x1024xi32>
    %11 = arith.muli %9, %10 : vector<8x1024xi32>
    %12 = arith.addi %11, %6 : vector<8x1024xi32>
    %c-1640531535_i32 = arith.constant -1640531535 : i32
    %13 = arith.muli %4, %c-1640531535_i32 : i32
    %14 = vector.broadcast %13 : i32 to vector<8x1024xi32>
    %15 = arith.addi %12, %14 : vector<8x1024xi32>
    %c16_i32 = arith.constant 16 : i32
    %16 = vector.broadcast %c16_i32 : i32 to vector<8x1024xi32>
    %17 = arith.shrsi %15, %16 : vector<8x1024xi32>
    %c65535_i32 = arith.constant 65535 : i32
    %18 = vector.broadcast %c65535_i32 : i32 to vector<8x1024xi32>
    %19 = arith.andi %17, %18 : vector<8x1024xi32>
    %20 = arith.xori %15, %19 : vector<8x1024xi32>
    %c-2048144789_i32 = arith.constant -2048144789 : i32
    %21 = vector.broadcast %c-2048144789_i32 : i32 to vector<8x1024xi32>
    %22 = arith.muli %20, %21 : vector<8x1024xi32>
    %c13_i32 = arith.constant 13 : i32
    %23 = vector.broadcast %c13_i32 : i32 to vector<8x1024xi32>
    %24 = arith.shrsi %22, %23 : vector<8x1024xi32>
    %c524287_i32 = arith.constant 524287 : i32
    %25 = vector.broadcast %c524287_i32 : i32 to vector<8x1024xi32>
    %26 = arith.andi %24, %25 : vector<8x1024xi32>
    %27 = arith.xori %22, %26 : vector<8x1024xi32>
    %c-1028477387_i32 = arith.constant -1028477387 : i32
    %28 = vector.broadcast %c-1028477387_i32 : i32 to vector<8x1024xi32>
    %29 = arith.muli %27, %28 : vector<8x1024xi32>
    %c16_i32_8 = arith.constant 16 : i32
    %30 = vector.broadcast %c16_i32_8 : i32 to vector<8x1024xi32>
    %31 = arith.shrsi %29, %30 : vector<8x1024xi32>
    %c65535_i32_9 = arith.constant 65535 : i32
    %32 = vector.broadcast %c65535_i32_9 : i32 to vector<8x1024xi32>
    %33 = arith.andi %31, %32 : vector<8x1024xi32>
    %34 = arith.xori %29, %33 : vector<8x1024xi32>
    %c8388607_i32 = arith.constant 8388607 : i32
    %35 = vector.broadcast %c8388607_i32 : i32 to vector<8x1024xi32>
    %36 = arith.andi %34, %35 : vector<8x1024xi32>
    %37 = arith.sitofp %36 : vector<8x1024xi32> to vector<8x1024xf32>
    %cst = arith.constant 1.1920929E-7 : f32
    %38 = vector.broadcast %cst : f32 to vector<8x1024xf32>
    %39 = arith.mulf %37, %38 : vector<8x1024xf32>
    %cst_10 = arith.constant 2.000000e+00 : f32
    %40 = vector.broadcast %cst_10 : f32 to vector<8x1024xf32>
    %41 = arith.mulf %40, %39 : vector<8x1024xf32>
    %cst_11 = arith.constant 1.000000e+00 : f32
    %42 = vector.broadcast %cst_11 : f32 to vector<8x1024xf32>
    %43 = arith.subf %41, %42 : vector<8x1024xf32>
    %cst_12 = arith.constant 0.0313725509 : f32
    %44 = vector.broadcast %cst_12 : f32 to vector<8x1024xf32>
    %45 = arith.mulf %43, %44 : vector<8x1024xf32>
    %46 = arith.truncf %0 : vector<8x1024xf32> to vector<8x1024xbf16>
    %cst_13 = arith.constant dense<0.000000e+00> : vector<8x128xf32>
    %47 = tpu.matmul %46, %1, %cst_13 {dimension_numbers = #tpu.dot_dimension_numbers<[1], [0], [0], [1], [0, 0, 1, 1], [], []>} : vector<8x1024xbf16>, vector<1024x128xbf16>, vector<8x128xf32> -> vector<8x128xf32>
    %48 = vector.broadcast %3 : vector<1x128xf32> to vector<8x128xf32>
    %49 = arith.addf %47, %48 : vector<8x128xf32>
    %cst_14 = arith.constant dense<0xFF800000> : vector<8xf32>
    %50 = vector.multi_reduction <maximumf>, %49, %cst_14 [1] : vector<8x128xf32> to vector<8xf32>
    %51 = vector.shape_cast %50 : vector<8xf32> to vector<8x1xf32>
    %52 = vector.broadcast %51 : vector<8x1xf32> to vector<8x128xf32>
    %53 = arith.subf %49, %52 : vector<8x128xf32>
    %54 = math.exp %53 : vector<8x128xf32>
    %cst_15 = arith.constant dense<0.000000e+00> : vector<8xf32>
    %55 = vector.multi_reduction <add>, %54, %cst_15 [1] : vector<8x128xf32> to vector<8xf32>
    %56 = vector.shape_cast %55 : vector<8xf32> to vector<8x1xf32>
    %57 = math.log %56 : vector<8x1xf32>
    %58 = vector.broadcast %57 : vector<8x1xf32> to vector<8x128xf32>
    %59 = arith.subf %53, %58 : vector<8x128xf32>
    %60 = vector.broadcast %56 : vector<8x1xf32> to vector<8x128xf32>
    %61 = arith.divf %54, %60 : vector<8x128xf32>
    %cst_16 = arith.constant 0.0313725509 : f32
    %62 = vector.broadcast %cst_16 : f32 to vector<8x1024xf32>
    %63 = arith.subf %0, %62 : vector<8x1024xf32>
    %cst_17 = arith.constant 0.000000e+00 : f32
    %64 = vector.broadcast %cst_17 : f32 to vector<8x1024xf32>
    %65 = arith.maximumf %63, %64 : vector<8x1024xf32>
    %cst_18 = arith.constant 0.0313725509 : f32
    %66 = vector.broadcast %cst_18 : f32 to vector<8x1024xf32>
    %67 = arith.addf %0, %66 : vector<8x1024xf32>
    %cst_19 = arith.constant 1.000000e+00 : f32
    %68 = vector.broadcast %cst_19 : f32 to vector<8x1024xf32>
    %69 = arith.minimumf %67, %68 : vector<8x1024xf32>
    %70 = arith.addf %0, %45 : vector<8x1024xf32>
    %71 = arith.maximumf %65, %70 : vector<8x1024xf32>
    %72 = arith.minimumf %69, %71 : vector<8x1024xf32>
    %c0_i32 = arith.constant 0 : i32
    %73 = arith.truncf %72 : vector<8x1024xf32> to vector<8x1024xbf16>
    %cst_20 = arith.constant dense<0.000000e+00> : vector<8x128xf32>
    %74 = tpu.matmul %73, %1, %cst_20 {dimension_numbers = #tpu.dot_dimension_numbers<[1], [0], [0], [1], [0, 0, 1, 1], [], []>} : vector<8x1024xbf16>, vector<1024x128xbf16>, vector<8x128xf32> -> vector<8x128xf32>
    %75 = vector.broadcast %3 : vector<1x128xf32> to vector<8x128xf32>
    %76 = arith.addf %74, %75 : vector<8x128xf32>
    %cst_21 = arith.constant dense<0xFF800000> : vector<8xf32>
    %77 = vector.multi_reduction <maximumf>, %76, %cst_21 [1] : vector<8x128xf32> to vector<8xf32>
    %78 = vector.shape_cast %77 : vector<8xf32> to vector<8x1xf32>
    %79 = vector.broadcast %78 : vector<8x1xf32> to vector<8x128xf32>
    %80 = arith.subf %76, %79 : vector<8x128xf32>
    %81 = math.exp %80 : vector<8x128xf32>
    %cst_22 = arith.constant dense<0.000000e+00> : vector<8xf32>
    %82 = vector.multi_reduction <add>, %81, %cst_22 [1] : vector<8x128xf32> to vector<8xf32>
    %83 = vector.shape_cast %82 : vector<8xf32> to vector<8x1xf32>
    %84 = vector.broadcast %83 : vector<8x1xf32> to vector<8x128xf32>
    %85 = arith.divf %81, %84 : vector<8x128xf32>
    %86 = arith.subf %85, %61 : vector<8x128xf32>
    %87 = arith.truncf %86 : vector<8x128xf32> to vector<8x128xbf16>
    %cst_23 = arith.constant dense<0.000000e+00> : vector<8x1024xf32>
    %88 = tpu.matmul %87, %2, %cst_23 {dimension_numbers = #tpu.dot_dimension_numbers<[1], [0], [0], [1], [0, 0, 1, 1], [], []>} : vector<8x128xbf16>, vector<128x1024xbf16>, vector<8x1024xf32> -> vector<8x1024xf32>
    %cst_24 = arith.constant 0.000000e+00 : f32
    %89 = vector.broadcast %cst_24 : f32 to vector<8x1024xf32>
    %90 = arith.cmpf oge, %88, %89 : vector<8x1024xf32>
    %cst_25 = arith.constant 0.00784313772 : f32
    %cst_26 = arith.constant -0.00784313772 : f32
    %91 = vector.broadcast %cst_25 : f32 to vector<8x1024xf32>
    %92 = vector.broadcast %cst_26 : f32 to vector<8x1024xf32>
    %93 = arith.select %90, %91, %92 : vector<8x1024xi1>, vector<8x1024xf32>
    %94 = arith.addf %72, %93 : vector<8x1024xf32>
    %95 = arith.maximumf %65, %94 : vector<8x1024xf32>
    %96 = arith.minimumf %69, %95 : vector<8x1024xf32>
    %c1_i32 = arith.constant 1 : i32
    %97 = arith.truncf %96 : vector<8x1024xf32> to vector<8x1024xbf16>
    %cst_27 = arith.constant dense<0.000000e+00> : vector<8x128xf32>
    %98 = tpu.matmul %97, %1, %cst_27 {dimension_numbers = #tpu.dot_dimension_numbers<[1], [0], [0], [1], [0, 0, 1, 1], [], []>} : vector<8x1024xbf16>, vector<1024x128xbf16>, vector<8x128xf32> -> vector<8x128xf32>
    %99 = vector.broadcast %3 : vector<1x128xf32> to vector<8x128xf32>
    %100 = arith.addf %98, %99 : vector<8x128xf32>
    %cst_28 = arith.constant dense<0xFF800000> : vector<8xf32>
    %101 = vector.multi_reduction <maximumf>, %100, %cst_28 [1] : vector<8x128xf32> to vector<8xf32>
    %102 = vector.shape_cast %101 : vector<8xf32> to vector<8x1xf32>
    %103 = vector.broadcast %102 : vector<8x1xf32> to vector<8x128xf32>
    %104 = arith.subf %100, %103 : vector<8x128xf32>
    %105 = math.exp %104 : vector<8x128xf32>
    %cst_29 = arith.constant dense<0.000000e+00> : vector<8xf32>
    %106 = vector.multi_reduction <add>, %105, %cst_29 [1] : vector<8x128xf32> to vector<8xf32>
    %107 = vector.shape_cast %106 : vector<8xf32> to vector<8x1xf32>
    %108 = vector.broadcast %107 : vector<8x1xf32> to vector<8x128xf32>
    %109 = arith.divf %105, %108 : vector<8x128xf32>
    %110 = arith.subf %109, %61 : vector<8x128xf32>
    %111 = arith.truncf %110 : vector<8x128xf32> to vector<8x128xbf16>
    %cst_30 = arith.constant dense<0.000000e+00> : vector<8x1024xf32>
    %112 = tpu.matmul %111, %2, %cst_30 {dimension_numbers = #tpu.dot_dimension_numbers<[1], [0], [0], [1], [0, 0, 1, 1], [], []>} : vector<8x128xbf16>, vector<128x1024xbf16>, vector<8x1024xf32> -> vector<8x1024xf32>
    %cst_31 = arith.constant 0.000000e+00 : f32
    %113 = vector.broadcast %cst_31 : f32 to vector<8x1024xf32>
    %114 = arith.cmpf oge, %112, %113 : vector<8x1024xf32>
    %cst_32 = arith.constant 0.00784313772 : f32
    %cst_33 = arith.constant -0.00784313772 : f32
    %115 = vector.broadcast %cst_32 : f32 to vector<8x1024xf32>
    %116 = vector.broadcast %cst_33 : f32 to vector<8x1024xf32>
    %117 = arith.select %114, %115, %116 : vector<8x1024xi1>, vector<8x1024xf32>
    %118 = arith.addf %96, %117 : vector<8x1024xf32>
    %119 = arith.maximumf %65, %118 : vector<8x1024xf32>
    %120 = arith.minimumf %69, %119 : vector<8x1024xf32>
    %c2_i32 = arith.constant 2 : i32
    %121 = arith.truncf %120 : vector<8x1024xf32> to vector<8x1024xbf16>
    %cst_34 = arith.constant dense<0.000000e+00> : vector<8x128xf32>
    %122 = tpu.matmul %121, %1, %cst_34 {dimension_numbers = #tpu.dot_dimension_numbers<[1], [0], [0], [1], [0, 0, 1, 1], [], []>} : vector<8x1024xbf16>, vector<1024x128xbf16>, vector<8x128xf32> -> vector<8x128xf32>
    %123 = vector.broadcast %3 : vector<1x128xf32> to vector<8x128xf32>
    %124 = arith.addf %122, %123 : vector<8x128xf32>
    %cst_35 = arith.constant dense<0xFF800000> : vector<8xf32>
    %125 = vector.multi_reduction <maximumf>, %124, %cst_35 [1] : vector<8x128xf32> to vector<8xf32>
    %126 = vector.shape_cast %125 : vector<8xf32> to vector<8x1xf32>
    %127 = vector.broadcast %126 : vector<8x1xf32> to vector<8x128xf32>
    %128 = arith.subf %124, %127 : vector<8x128xf32>
    %129 = math.exp %128 : vector<8x128xf32>
    %cst_36 = arith.constant dense<0.000000e+00> : vector<8xf32>
    %130 = vector.multi_reduction <add>, %129, %cst_36 [1] : vector<8x128xf32> to vector<8xf32>
    %131 = vector.shape_cast %130 : vector<8xf32> to vector<8x1xf32>
    %132 = vector.broadcast %131 : vector<8x1xf32> to vector<8x128xf32>
    %133 = arith.divf %129, %132 : vector<8x128xf32>
    %134 = arith.subf %133, %61 : vector<8x128xf32>
    %135 = arith.truncf %134 : vector<8x128xf32> to vector<8x128xbf16>
    %cst_37 = arith.constant dense<0.000000e+00> : vector<8x1024xf32>
    %136 = tpu.matmul %135, %2, %cst_37 {dimension_numbers = #tpu.dot_dimension_numbers<[1], [0], [0], [1], [0, 0, 1, 1], [], []>} : vector<8x128xbf16>, vector<128x1024xbf16>, vector<8x1024xf32> -> vector<8x1024xf32>
    %cst_38 = arith.constant 0.000000e+00 : f32
    %137 = vector.broadcast %cst_38 : f32 to vector<8x1024xf32>
    %138 = arith.cmpf oge, %136, %137 : vector<8x1024xf32>
    %cst_39 = arith.constant 0.00784313772 : f32
    %cst_40 = arith.constant -0.00784313772 : f32
    %139 = vector.broadcast %cst_39 : f32 to vector<8x1024xf32>
    %140 = vector.broadcast %cst_40 : f32 to vector<8x1024xf32>
    %141 = arith.select %138, %139, %140 : vector<8x1024xi1>, vector<8x1024xf32>
    %142 = arith.addf %120, %141 : vector<8x1024xf32>
    %143 = arith.maximumf %65, %142 : vector<8x1024xf32>
    %144 = arith.minimumf %69, %143 : vector<8x1024xf32>
    %c3_i32 = arith.constant 3 : i32
    %145 = arith.truncf %144 : vector<8x1024xf32> to vector<8x1024xbf16>
    %cst_41 = arith.constant dense<0.000000e+00> : vector<8x128xf32>
    %146 = tpu.matmul %145, %1, %cst_41 {dimension_numbers = #tpu.dot_dimension_numbers<[1], [0], [0], [1], [0, 0, 1, 1], [], []>} : vector<8x1024xbf16>, vector<1024x128xbf16>, vector<8x128xf32> -> vector<8x128xf32>
    %147 = vector.broadcast %3 : vector<1x128xf32> to vector<8x128xf32>
    %148 = arith.addf %146, %147 : vector<8x128xf32>
    %cst_42 = arith.constant dense<0xFF800000> : vector<8xf32>
    %149 = vector.multi_reduction <maximumf>, %148, %cst_42 [1] : vector<8x128xf32> to vector<8xf32>
    %150 = vector.shape_cast %149 : vector<8xf32> to vector<8x1xf32>
    %151 = vector.broadcast %150 : vector<8x1xf32> to vector<8x128xf32>
    %152 = arith.subf %148, %151 : vector<8x128xf32>
    %153 = math.exp %152 : vector<8x128xf32>
    %cst_43 = arith.constant dense<0.000000e+00> : vector<8xf32>
    %154 = vector.multi_reduction <add>, %153, %cst_43 [1] : vector<8x128xf32> to vector<8xf32>
    %155 = vector.shape_cast %154 : vector<8xf32> to vector<8x1xf32>
    %156 = vector.broadcast %155 : vector<8x1xf32> to vector<8x128xf32>
    %157 = arith.divf %153, %156 : vector<8x128xf32>
    %158 = arith.subf %157, %61 : vector<8x128xf32>
    %159 = arith.truncf %158 : vector<8x128xf32> to vector<8x128xbf16>
    %cst_44 = arith.constant dense<0.000000e+00> : vector<8x1024xf32>
    %160 = tpu.matmul %159, %2, %cst_44 {dimension_numbers = #tpu.dot_dimension_numbers<[1], [0], [0], [1], [0, 0, 1, 1], [], []>} : vector<8x128xbf16>, vector<128x1024xbf16>, vector<8x1024xf32> -> vector<8x1024xf32>
    %cst_45 = arith.constant 0.000000e+00 : f32
    %161 = vector.broadcast %cst_45 : f32 to vector<8x1024xf32>
    %162 = arith.cmpf oge, %160, %161 : vector<8x1024xf32>
    %cst_46 = arith.constant 0.00784313772 : f32
    %cst_47 = arith.constant -0.00784313772 : f32
    %163 = vector.broadcast %cst_46 : f32 to vector<8x1024xf32>
    %164 = vector.broadcast %cst_47 : f32 to vector<8x1024xf32>
    %165 = arith.select %162, %163, %164 : vector<8x1024xi1>, vector<8x1024xf32>
    %166 = arith.addf %144, %165 : vector<8x1024xf32>
    %167 = arith.maximumf %65, %166 : vector<8x1024xf32>
    %168 = arith.minimumf %69, %167 : vector<8x1024xf32>
    %c4_i32 = arith.constant 4 : i32
    %169 = arith.truncf %168 : vector<8x1024xf32> to vector<8x1024xbf16>
    %cst_48 = arith.constant dense<0.000000e+00> : vector<8x128xf32>
    %170 = tpu.matmul %169, %1, %cst_48 {dimension_numbers = #tpu.dot_dimension_numbers<[1], [0], [0], [1], [0, 0, 1, 1], [], []>} : vector<8x1024xbf16>, vector<1024x128xbf16>, vector<8x128xf32> -> vector<8x128xf32>
    %171 = vector.broadcast %3 : vector<1x128xf32> to vector<8x128xf32>
    %172 = arith.addf %170, %171 : vector<8x128xf32>
    %cst_49 = arith.constant dense<0xFF800000> : vector<8xf32>
    %173 = vector.multi_reduction <maximumf>, %172, %cst_49 [1] : vector<8x128xf32> to vector<8xf32>
    %174 = vector.shape_cast %173 : vector<8xf32> to vector<8x1xf32>
    %175 = vector.broadcast %174 : vector<8x1xf32> to vector<8x128xf32>
    %176 = arith.subf %172, %175 : vector<8x128xf32>
    %177 = math.exp %176 : vector<8x128xf32>
    %cst_50 = arith.constant dense<0.000000e+00> : vector<8xf32>
    %178 = vector.multi_reduction <add>, %177, %cst_50 [1] : vector<8x128xf32> to vector<8xf32>
    %179 = vector.shape_cast %178 : vector<8xf32> to vector<8x1xf32>
    %180 = vector.broadcast %179 : vector<8x1xf32> to vector<8x128xf32>
    %181 = arith.divf %177, %180 : vector<8x128xf32>
    %182 = arith.subf %181, %61 : vector<8x128xf32>
    %183 = arith.truncf %182 : vector<8x128xf32> to vector<8x128xbf16>
    %cst_51 = arith.constant dense<0.000000e+00> : vector<8x1024xf32>
    %184 = tpu.matmul %183, %2, %cst_51 {dimension_numbers = #tpu.dot_dimension_numbers<[1], [0], [0], [1], [0, 0, 1, 1], [], []>} : vector<8x128xbf16>, vector<128x1024xbf16>, vector<8x1024xf32> -> vector<8x1024xf32>
    %cst_52 = arith.constant 0.000000e+00 : f32
    %185 = vector.broadcast %cst_52 : f32 to vector<8x1024xf32>
    %186 = arith.cmpf oge, %184, %185 : vector<8x1024xf32>
    %cst_53 = arith.constant 0.00784313772 : f32
    %cst_54 = arith.constant -0.00784313772 : f32
    %187 = vector.broadcast %cst_53 : f32 to vector<8x1024xf32>
    %188 = vector.broadcast %cst_54 : f32 to vector<8x1024xf32>
    %189 = arith.select %186, %187, %188 : vector<8x1024xi1>, vector<8x1024xf32>
    %190 = arith.addf %168, %189 : vector<8x1024xf32>
    %191 = arith.maximumf %65, %190 : vector<8x1024xf32>
    %192 = arith.minimumf %69, %191 : vector<8x1024xf32>
    %c5_i32 = arith.constant 5 : i32
    %193 = arith.truncf %192 : vector<8x1024xf32> to vector<8x1024xbf16>
    %cst_55 = arith.constant dense<0.000000e+00> : vector<8x128xf32>
    %194 = tpu.matmul %193, %1, %cst_55 {dimension_numbers = #tpu.dot_dimension_numbers<[1], [0], [0], [1], [0, 0, 1, 1], [], []>} : vector<8x1024xbf16>, vector<1024x128xbf16>, vector<8x128xf32> -> vector<8x128xf32>
    %195 = vector.broadcast %3 : vector<1x128xf32> to vector<8x128xf32>
    %196 = arith.addf %194, %195 : vector<8x128xf32>
    %cst_56 = arith.constant dense<0xFF800000> : vector<8xf32>
    %197 = vector.multi_reduction <maximumf>, %196, %cst_56 [1] : vector<8x128xf32> to vector<8xf32>
    %198 = vector.shape_cast %197 : vector<8xf32> to vector<8x1xf32>
    %199 = vector.broadcast %198 : vector<8x1xf32> to vector<8x128xf32>
    %200 = arith.subf %196, %199 : vector<8x128xf32>
    %201 = math.exp %200 : vector<8x128xf32>
    %cst_57 = arith.constant dense<0.000000e+00> : vector<8xf32>
    %202 = vector.multi_reduction <add>, %201, %cst_57 [1] : vector<8x128xf32> to vector<8xf32>
    %203 = vector.shape_cast %202 : vector<8xf32> to vector<8x1xf32>
    %204 = vector.broadcast %203 : vector<8x1xf32> to vector<8x128xf32>
    %205 = arith.divf %201, %204 : vector<8x128xf32>
    %206 = arith.subf %205, %61 : vector<8x128xf32>
    %207 = arith.truncf %206 : vector<8x128xf32> to vector<8x128xbf16>
    %cst_58 = arith.constant dense<0.000000e+00> : vector<8x1024xf32>
    %208 = tpu.matmul %207, %2, %cst_58 {dimension_numbers = #tpu.dot_dimension_numbers<[1], [0], [0], [1], [0, 0, 1, 1], [], []>} : vector<8x128xbf16>, vector<128x1024xbf16>, vector<8x1024xf32> -> vector<8x1024xf32>
    %cst_59 = arith.constant 0.000000e+00 : f32
    %209 = vector.broadcast %cst_59 : f32 to vector<8x1024xf32>
    %210 = arith.cmpf oge, %208, %209 : vector<8x1024xf32>
    %cst_60 = arith.constant 0.00784313772 : f32
    %cst_61 = arith.constant -0.00784313772 : f32
    %211 = vector.broadcast %cst_60 : f32 to vector<8x1024xf32>
    %212 = vector.broadcast %cst_61 : f32 to vector<8x1024xf32>
    %213 = arith.select %210, %211, %212 : vector<8x1024xi1>, vector<8x1024xf32>
    %214 = arith.addf %192, %213 : vector<8x1024xf32>
    %215 = arith.maximumf %65, %214 : vector<8x1024xf32>
    %216 = arith.minimumf %69, %215 : vector<8x1024xf32>
    %c6_i32 = arith.constant 6 : i32
    %217 = arith.truncf %216 : vector<8x1024xf32> to vector<8x1024xbf16>
    %cst_62 = arith.constant dense<0.000000e+00> : vector<8x128xf32>
    %218 = tpu.matmul %217, %1, %cst_62 {dimension_numbers = #tpu.dot_dimension_numbers<[1], [0], [0], [1], [0, 0, 1, 1], [], []>} : vector<8x1024xbf16>, vector<1024x128xbf16>, vector<8x128xf32> -> vector<8x128xf32>
    %219 = vector.broadcast %3 : vector<1x128xf32> to vector<8x128xf32>
    %220 = arith.addf %218, %219 : vector<8x128xf32>
    %cst_63 = arith.constant dense<0xFF800000> : vector<8xf32>
    %221 = vector.multi_reduction <maximumf>, %220, %cst_63 [1] : vector<8x128xf32> to vector<8xf32>
    %222 = vector.shape_cast %221 : vector<8xf32> to vector<8x1xf32>
    %223 = vector.broadcast %222 : vector<8x1xf32> to vector<8x128xf32>
    %224 = arith.subf %220, %223 : vector<8x128xf32>
    %225 = math.exp %224 : vector<8x128xf32>
    %cst_64 = arith.constant dense<0.000000e+00> : vector<8xf32>
    %226 = vector.multi_reduction <add>, %225, %cst_64 [1] : vector<8x128xf32> to vector<8xf32>
    %227 = vector.shape_cast %226 : vector<8xf32> to vector<8x1xf32>
    %228 = vector.broadcast %227 : vector<8x1xf32> to vector<8x128xf32>
    %229 = arith.divf %225, %228 : vector<8x128xf32>
    %230 = arith.subf %229, %61 : vector<8x128xf32>
    %231 = arith.truncf %230 : vector<8x128xf32> to vector<8x128xbf16>
    %cst_65 = arith.constant dense<0.000000e+00> : vector<8x1024xf32>
    %232 = tpu.matmul %231, %2, %cst_65 {dimension_numbers = #tpu.dot_dimension_numbers<[1], [0], [0], [1], [0, 0, 1, 1], [], []>} : vector<8x128xbf16>, vector<128x1024xbf16>, vector<8x1024xf32> -> vector<8x1024xf32>
    %cst_66 = arith.constant 0.000000e+00 : f32
    %233 = vector.broadcast %cst_66 : f32 to vector<8x1024xf32>
    %234 = arith.cmpf oge, %232, %233 : vector<8x1024xf32>
    %cst_67 = arith.constant 0.00784313772 : f32
    %cst_68 = arith.constant -0.00784313772 : f32
    %235 = vector.broadcast %cst_67 : f32 to vector<8x1024xf32>
    %236 = vector.broadcast %cst_68 : f32 to vector<8x1024xf32>
    %237 = arith.select %234, %235, %236 : vector<8x1024xi1>, vector<8x1024xf32>
    %238 = arith.addf %216, %237 : vector<8x1024xf32>
    %239 = arith.maximumf %65, %238 : vector<8x1024xf32>
    %240 = arith.minimumf %69, %239 : vector<8x1024xf32>
    %241 = arith.truncf %240 : vector<8x1024xf32> to vector<8x1024xbf16>
    %cst_69 = arith.constant dense<0.000000e+00> : vector<8x128xf32>
    %242 = tpu.matmul %241, %1, %cst_69 {dimension_numbers = #tpu.dot_dimension_numbers<[1], [0], [0], [1], [0, 0, 1, 1], [], []>} : vector<8x1024xbf16>, vector<1024x128xbf16>, vector<8x128xf32> -> vector<8x128xf32>
    %243 = vector.broadcast %3 : vector<1x128xf32> to vector<8x128xf32>
    %244 = arith.addf %242, %243 : vector<8x128xf32>
    %cst_70 = arith.constant dense<0xFF800000> : vector<8xf32>
    %245 = vector.multi_reduction <maximumf>, %244, %cst_70 [1] : vector<8x128xf32> to vector<8xf32>
    %246 = vector.shape_cast %245 : vector<8xf32> to vector<8x1xf32>
    %247 = vector.broadcast %246 : vector<8x1xf32> to vector<8x128xf32>
    %248 = arith.subf %244, %247 : vector<8x128xf32>
    %249 = math.exp %248 : vector<8x128xf32>
    %cst_71 = arith.constant dense<0.000000e+00> : vector<8xf32>
    %250 = vector.multi_reduction <add>, %249, %cst_71 [1] : vector<8x128xf32> to vector<8xf32>
    %251 = vector.shape_cast %250 : vector<8xf32> to vector<8x1xf32>
    %252 = math.log %251 : vector<8x1xf32>
    %253 = vector.broadcast %252 : vector<8x1xf32> to vector<8x128xf32>
    %254 = arith.subf %248, %253 : vector<8x128xf32>
    %255 = arith.subf %59, %254 : vector<8x128xf32>
    %256 = arith.mulf %61, %255 : vector<8x128xf32>
    %c0_72 = arith.constant 0 : index
    %c0_73 = arith.constant 0 : index
    %257 = vector.load %arg6[%c0_72, %c0_73] : memref<8x128xf32, #tpu.memory_space<vmem>>, vector<8x128xf32>
    tpu.vector_store %arg6[%c0_72, %c0_73], %256 {strides = array<i32>} : memref<8x128xf32, #tpu.memory_space<vmem>>, vector<8x128xf32>,
    return
  }
  func.func @transform_0(%arg0: i32, %arg1: memref<1xi32, #tpu.memory_space<smem>>) -> (i32, i32) {
    %c0_i32 = arith.constant 0 : i32
    %c0_i32_0 = arith.constant 0 : i32
    return %arg0, %c0_i32 : i32, i32
  }
  func.func @transform_1(%arg0: i32, %arg1: memref<1xi32, #tpu.memory_space<smem>>) -> (i32, i32) {
    %c0_i32 = arith.constant 0 : i32
    %c0_i32_0 = arith.constant 0 : i32
    %c0_i32_1 = arith.constant 0 : i32
    return %c0_i32, %c0_i32_0 : i32, i32
  }
  func.func @transform_2(%arg0: i32, %arg1: memref<1xi32, #tpu.memory_space<smem>>) -> (i32, i32) {
    %c0_i32 = arith.constant 0 : i32
    %c0_i32_0 = arith.constant 0 : i32
    %c0_i32_1 = arith.constant 0 : i32
    return %c0_i32, %c0_i32_0 : i32, i32
  }
  func.func @transform_3(%arg0: i32, %arg1: memref<1xi32, #tpu.memory_space<smem>>) -> (i32, i32) {
    %c0_i32 = arith.constant 0 : i32
    %c0_i32_0 = arith.constant 0 : i32
    %c0_i32_1 = arith.constant 0 : i32
    return %c0_i32, %c0_i32_0 : i32, i32
  }
  func.func @transform_4(%arg0: i32, %arg1: memref<1xi32, #tpu.memory_space<smem>>) -> (i32, i32) {
    %c0_i32 = arith.constant 0 : i32
    %c0_i32_0 = arith.constant 0 : i32
    return %arg0, %c0_i32 : i32, i32
  }
}

</mosaic_0001>

<bundles_post_ra>
// kernel: tpu_custom_call.1
= control target key start
LH: loop header
LB: loop body
LE: loop exit
PB: predicated region body
PF: predicated region fallthrough
CT: control target
= control target key end

     0   :  { %s8469_s0 = inlined_call_operand.<no memory space> [shape: s32[1], index: 0, kind: input, shape index: {}]   ;;  %s8470_s1 = inlined_call_operand.hbm [shape: f32[16,1024], index: 1, kind: input, shape index: {}]   ;;  %s8471_s2 = inlined_call_operand.hbm [shape: bf16[1024,128], index: 2, kind: input, shape index: {}]   ;;  %s8472_s3 = inlined_call_operand.hbm [shape: bf16[128,1024], index: 3, kind: input, shape index: {}]   ;;  %s8473_s4 = inlined_call_operand.vmem [shape: f32[1,128], index: 4, kind: input, shape index: {}]   ;;  %s8474_s5 = inlined_call_operand.hbm [shape: f32[16,128], index: 5, kind: output, shape index: {}]  }
   0x1   :  { %10 = sst [smem:[#allocation3]] %s8469_s0 }
   0x2   :  { %11 = vsyncpa [#allocation5], 0 }
   0x3   :  { %13 = vsyncpa [#allocation5 + $0x1], 0 }
   0x4   :  { %14 = vsyncpa [#allocation8], 0 }
   0x5   :  { %15 = vsyncpa [#allocation6], 0 }
   0x6   :  { %17 = vsyncpa [#allocation6 + $0x1], 0  ;;  %s6078_s20 = smov 0   ;;  %s6080_s21 = smov 0  }
   0x7   :  { %s6082_s22 = smov 0   ;;  %s6084_s23 = smov 0  }
   0x8 LB: > { %s6099_s0 = sadd.s32 4294967295, %s6033_s23   ;;  %s4528_s24 = sadd.s32 4294967294, %s6033_s23   ;;  %s6033_s23 = sphi %s6084_s23, %s9766_s23   ;;  %s6029_s22 = sphi %s6082_s22, %s9765_s22   ;;  %s6025_s21 = sphi %s6080_s21, %s9764_s21   ;;  %s6021_s20 = sphi %s6078_s20, %s9763_s20  }
   0x9   : > { %p43_p0 = scmp.ne.s32.totalorder %s6025_s21, %s6021_s20  ;;  %p8475_p1 = scmp.eq.s32.totalorder %s6099_s0, 0 }
   0xa   : > { %p136_p3 = scmp.eq.s32.totalorder %s4528_s24, 1  ;;  %p4529_p5 = scmp.ge.s32.totalorder %s6033_s23, 1 }
   0xb   : > { %p6108_p4 = por %p8475_p1, %p43_p0  ;;  %p143_p7 = scmp.lt.s32.totalorder %s6033_s23, 3 }
   0xc   : > { %p6113_p6 = por %p136_p3, %p43_p0  ;;  %s6035_s28 = smov [#allocation7]  }
   0xd   : > { %s8934_s25 = scalar_select %p6108_p4, 1, 0 }
   0xe   : > { %s8935_s26 = scalar_select %p6113_p6, 1, 0 }
   0xf   : > { %p6118_p8 = pnand %p4529_p5, %p143_p7  ;;  %s155_s29 = sshll.u32 %s6035_s28, 4  ;;  %s6122_s29 = int_to_ptr.vmem [resolvable:$true] %s155_s29 }
  0x10   : > { %s6036_s6 = smov [#allocation9]   ;;  %s5877_s10 = scalar_lea.hbm %s8471_s2, 8192 }
  0x11   : > { %p5520_p9 = pneg %p6118_p8  ;;  %s168_s7 = sshll.u32 %s6036_s6, 4  ;;  %s6133_s7 = int_to_ptr.vmem [resolvable:$true] %s168_s7 }
  0x12   : > { %p5878_p12 = scmp.ne.s32.totalorder %s8471_s2, %s5877_s10  ;;  %p5884_p5 = scmp.lt.u32.totalorder %s5877_s10, %s8471_s2 }
  0x13   : > { %p6129_p11 = pnand %p5520_p9, %p8475_p1 }
  0x15   : > { %p5879_p13 = pneg %p6129_p11 }
  0x17   : > { %p5880_p0 = pnand %p5879_p13, %p5878_p12 }
  0x19   : > { %p5881_p3 = pneg %p5880_p0 }
  0x1b   : > { %p5886_p7 = pnand %p5884_p5, %p5881_p3 }
  0x1d   : > { %5889 = shalt.err (!%p5886_p7)
}
  0x1e   : > { %s5890_s15 = scalar_lea.vmem %s6122_s29, 8192  ;;  %p5898_p2 = scmp.lt.s32.totalorder %s6122_s29, %s6122_s29 }
  0x1f   : > { %p5891_p9 = scmp.ne.s32.totalorder %s6122_s29, %s5890_s15  ;;  %p5899_p12 = scmp.lt.s32.totalorder %s5890_s15, %s5890_s15 }
  0x21   : > { %p5893_p10 = pnand %p5891_p9, %p5879_p13  ;;  %p5900_p0 = por %p5899_p12, %p5898_p2 }
  0x23   : > { %p5894_p1 = pneg %p5893_p10 }
  0x25   : > { %p5901_p6 = pnand %p5900_p0, %p5894_p1 }
  0x27   : > { %5904 = shalt.err (!%p5901_p6)
}
  0x28   : > { %s6037_s16 = smov 64   ;;  %s6038_s17 = smov 4  }
  0x29   : > { %5523 = dma.hbm_to_vmem [thread:$0]  (!%p6129_p11), %s8471_s2, 8192, %s6122_s29, [#allocation8], %s6037_s16, %s6037_s16, %s6038_s17  }
  0x2a   : > { %s5905_s6 = scalar_lea.hbm %s8472_s3, 8192 }
  0x2b   : > { %p5906_p2 = scmp.ne.s32.totalorder %s8472_s3, %s5905_s6  ;;  %p5912_p10 = scmp.lt.u32.totalorder %s5905_s6, %s8472_s3 }
  0x2d   : > { %p5908_p1 = pnand %p5906_p2, %p5879_p13 }
  0x2f   : > { %p5909_p6 = pneg %p5908_p1 }
  0x31   : > { %p5914_p3 = pnand %p5912_p10, %p5909_p6 }
  0x33   : > { %5917 = shalt.err (!%p5914_p3)
}
  0x34   : > { %s5918_s29 = scalar_lea.vmem %s6133_s7, 8192  ;;  %p5926_p12 = scmp.lt.s32.totalorder %s6133_s7, %s6133_s7 }
  0x35   : > { %p5919_p5 = scmp.ne.s32.totalorder %s6133_s7, %s5918_s29  ;;  %p5927_p0 = scmp.lt.s32.totalorder %s5918_s29, %s5918_s29 }
  0x37   : > { %p5921_p7 = pnand %p5919_p5, %p5879_p13  ;;  %p5928_p2 = por %p5927_p0, %p5926_p12 }
  0x39   : > { %p5922_p9 = pneg %p5921_p7 }
  0x3b   : > { %p5929_p1 = pnand %p5928_p2, %p5922_p9 }
  0x3d   : > { %5932 = shalt.err (!%p5929_p1)
}
  0x3e   : > { %s6039_s12 = smov 512   ;;  %s6040_s13 = smov 32  }
  0x3f   : > { %5526 = dma.hbm_to_vmem [thread:$0]  (!%p6129_p11), %s8472_s3, 8192, %s6133_s7, [#allocation8], %s6039_s12, %s6039_s12, %s6040_s13  }
  0x40   : > { %s6188_s16 = sadd.s32 1, %s6033_s23   ;;  %s30_s18 = sadd.s32 1, %s6029_s22 }
  0x41   : > { %s27_s17 = ssub.s32 %s6033_s23, %s6188_s16  ;;  %p37_p6 = scmp.ne.s32.totalorder %s6029_s22, %s6025_s21 }
  0x42   : > { %p28_p13 = scmp.eq.s32.totalorder %s27_s17, 0  ;;  %p38_p10 = scmp.eq.s32.totalorder %s6033_s23, 0 }
  0x43   : > { %p8938_p5 = scmp.eq.s32.totalorder %s6099_s0, 1  ;;  %p5537_p9 = scmp.lt.s32.totalorder %s6033_s23, 2 }
  0x44   : > { %s6197_s19 = scalar_select %p28_p13, %s6029_s22, %s30_s18  }
  0x45   : > { %p39_p3 = por %p38_p10, %p37_p6  ;;  %p6201_p7 = por %p8938_p5, %p37_p6 }
  0x46   : > { %s185_s30 = sand.u32 1, %s6029_s22   ;;  %s4715_s7 = sshll.u32 %s6033_s23, 10 }
  0x47   : > { %s8939_s24 = scalar_select %p6201_p7, 1, 0 }
  0x48   : > { %s4533_s28 = sshll.u32 %s185_s30, 6  ;;  %s6211_s9 = scalar_lea.hbm %s8470_s1, %s4715_s7 }
  0x49   : > { %s189_s10 = scalar_lea.vmem [#allocation4], %s4533_s28  ;;  %p6215_p11 = pnand %p5537_p9, %p39_p3 }
  0x4a   : > { %s197_s11 = sshll.u32 %s189_s10, 4  ;;  %s186_s12 = scalar_lea.sflag [#allocation5], %s185_s30  ;;  %s6213_s11 = int_to_ptr.vmem [resolvable:$true] %s197_s11 }
  0x4b   : > { %s5933_s13 = scalar_lea.hbm %s6211_s9, 1024  ;;  %p5935_p0 = pneg %p6215_p11 }
  0x4c   : > { %p5934_p12 = scmp.ne.s32.totalorder %s6211_s9, %s5933_s13  ;;  %s5938_s17 = scalar_lea.hbm %s8470_s1, 2048 }
  0x4d   : > { %p5939_p13 = scmp.lt.u32.totalorder %s6211_s9, %s8470_s1  ;;  %p5940_p6 = scmp.lt.u32.totalorder %s5938_s17, %s5933_s13 }
  0x4e   : > { %p5936_p2 = pnand %p5935_p0, %p5934_p12  ;;  %p5942_p3 = scmp.lt.u32.totalorder %s5933_s13, %s6211_s9 }
  0x4f   : > { %p5941_p10 = por %p5940_p6, %p5939_p13 }
  0x50   : > { %p5937_p1 = pneg %p5936_p2 }
  0x51   : > { %p5943_p5 = por %p5942_p3, %p5941_p10 }
  0x53   : > { %p5944_p9 = pnand %p5943_p5, %p5937_p1 }
  0x55   : > { %5947 = shalt.err (!%p5944_p9)
}
  0x56   : > { %s5948_s30 = scalar_lea.vmem %s6213_s11, 1024  ;;  %s6041_s7 = smov [#allocation4]  }
  0x57   : > { %p5949_p12 = scmp.ne.s32.totalorder %s6213_s11, %s5948_s30  ;;  %s5953_s6 = sshll.u32 %s6041_s7, 4  ;;  %s5954_s6 = int_to_ptr.vmem [resolvable:$false] %s5953_s6 }
  0x58   : > { %s5955_s8 = scalar_lea.vmem %s5954_s6, 2048  ;;  %p5956_p4 = scmp.lt.s32.totalorder %s6213_s11, %s5954_s6 }
  0x59   : > { %p5951_p2 = pnand %p5949_p12, %p5935_p0  ;;  %p5957_p13 = scmp.lt.s32.totalorder %s5955_s8, %s5948_s30 }
  0x5b   : > { %p5952_p7 = pneg %p5951_p2  ;;  %p5958_p6 = por %p5957_p13, %p5956_p4 }
  0x5d   : > { %p5959_p10 = pnand %p5958_p6, %p5952_p7 }
  0x5f   : > { %5962 = shalt.err (!%p5959_p10)
}
  0x60   : > { %5530 = dma.hbm_to_vmem [thread:$0]  (!%p6215_p11), %s6211_s9, 1024, %s6213_s11, %s186_s12  }
  0x61   : > { %206 = sbr.rel (%p6118_p8) target bundleno = 6331 (0x18bb), region = 36 }
  0x68   : > { %s6247_s10 = sand.u32 1, %s6025_s21   ;;  %p8941_p4 = scmp.ne.s32.totalorder %s8934_s25, 0 }
  0x69   : > { %s4537_s13 = sshll.u32 %s6247_s10, 6  ;;  %s209_s14 = scalar_lea.sflag [#allocation5], %s6247_s10 }
  0x6a   : > { %s6251_s15 = scalar_lea.vmem [#allocation4], %s4537_s13 }
  0x6b   : > { %6008 = dma.done.wait (%p8941_p4), %s209_s14, 1024  }
  0x6c   : > { %6010 = vsyncadd (%p8941_p4), %s209_s14, 4294966272  ;;  %p8942_p7 = scmp.eq.s32.totalorder %s6099_s0, 0 }
  0x6e   : > { %6012 = dma.done.wait (%p8942_p7), [#allocation8], 16384   ;;  %p8943_p8 = pmov %p8942_p7 }
  0x6f   : > { %s6261_s27 = sld [smem:[#allocation3]]  ;;  %v6263_v0 = vld [vmem:[#allocation7 + $0x40] sm:$0xff]   ;;  %v6274_v4 = vld [vmem:[#allocation7 + $0x48] sm:$0xff]   ;;  %v6286_v8 = vld [vmem:[#allocation7 + $0x50] sm:$0xff]   ;;  %v448_v16 = vlaneseq  ;;  %s4541_s25 = sshll.u32 %s6099_s0, 3 }
  0x70   : > { %6014 = vsyncadd (%p8943_p8), [#allocation8], 4294950912  ;;  %v6265_v1 = vld [vmem:[#allocation7 + $0xc0] sm:$0xff]   ;;  %4716 = vmatprep.subr.bf16.mxu0 %v6263_v0  ;;  %v6277_v5 = vld [vmem:[#allocation7 + $0xc8] sm:$0xff]   ;;  %v460_v23 = vstv %s4541_s25  ;;  %s4540_s30 = sshll.u32 %s6247_s10, 3  ;;  %s4712_s7 = sshll.u32 %s6099_s0, 7 }
  0x71   : > { %v6268_v2 = vld [vmem:[#allocation7] sm:$0xff]   ;;  %4738 = vmatprep.subr.bf16.mxu1 %v6265_v1  ;;  %v6280_v6 = vld [vmem:[#allocation7 + $0x8] sm:$0xff]   ;;  %v6289_v9 = vld [vmem:[#allocation7 + $0xd0] sm:$0xff]   ;;  %v449_v21 = vshrl.u32 %v448_v16, 7  ;;  %v6328_v25 = vand.u32 127, %v448_v16  ;;  %s244_s6 = scalar_lea.vmem [#allocation10], %s4540_s30 }
  0x72   : > { %v6271_v3 = vld [vmem:[#allocation7 + $0x80] sm:$0xff]   ;;  %4717 = vmatpush3.bf16.msra.mxu0 %v6268_v2  ;;  %v6283_v7 = vld [vmem:[#allocation7 + $0x88] sm:$0xff]   ;;  %v6292_v10 = vld [vmem:[#allocation7 + $0x10] sm:$0xff]   ;;  %s4439_s8 = sshll.u32 %s244_s6, 4  ;;  %p9760_p0 = scmp.ne.s32.totalorder %s8939_s24, 0  ;;  %s8427_s8 = int_to_ptr.vmem [resolvable:$true] %s4439_s8 }
  0x73   : > { %4739 = vmatpush3.bf16.msra.mxu1 %v6271_v3  ;;  %4718 = vmatprep.subr.bf16.mxu0 %v6274_v4  ;;  %v6295_v11 = vld [vmem:[#allocation7 + $0x90] sm:$0xff]   ;;  %v6298_v12 = vld [vmem:[#allocation7 + $0x58] sm:$0xff]   ;;  %v6310_v17 = vld [vmem:[#allocation7 + $0x60] sm:$0xff]   ;;  %v461_v28 = vadd.s32 %v460_v23, %v449_v21  ;;  %v452_v31 = vadd.s32 128, %v6328_v25  ;;  %v454_v33 = vadd.s32 384, %v6328_v25  ;;  %v453_v38 = vadd.s32 256, %v6328_v25 }
  0x74   : > { %4740 = vmatprep.subr.bf16.mxu1 %v6277_v5  ;;  %v6301_v13 = vld [vmem:[#allocation7 + $0xd8] sm:$0xff]   ;;  %v6313_v18 = vld [vmem:[#allocation7 + $0xe0] sm:$0xff]   ;;  %v6323_v22 = vld [vmem:[#allocation7 + $0x68] sm:$0xff]   ;;  %s5963_s25 = scalar_lea.vmem %s8427_s8, 128  ;;  %s6044_s0 = smov [#allocation10]  }
  0x75   : > { %v6304_v14 = vld [vmem:[#allocation7 + $0x18] sm:$0xff]   ;;  %v6317_v19 = vld [vmem:[#allocation7 + $0x20] sm:$0xff]   ;;  %v6326_v24 = vld [vmem:[#allocation7 + $0xe8] sm:$0xff]   ;;  %v6350_v35 = vmul.u32 1024, %v461_v28  ;;  %s471_s9 = smul.u32 2654435761, %s6261_s27  ;;  %p5964_p11 = scmp.ne.s32.totalorder %s8427_s8, %s5963_s25 }
  0x76   : > { %4719 = vmatpush3.bf16.msra.mxu0 %v6280_v6  ;;  %v6307_v15 = vld [vmem:[#allocation7 + $0x98] sm:$0xff]   ;;  %v6320_v20 = vld [vmem:[#allocation7 + $0xa0] sm:$0xff]   ;;  %v6331_v26 = vld [vmem:[#allocation7 + $0x28] sm:$0xff]   ;;  %s4426_s27 = scalar_lea.sflag [#allocation6], %s6247_s10 }
  0x77   : > { %4741 = vmatpush3.bf16.msra.mxu1 %v6283_v7  ;;  %4720 = vmatprep.subr.bf16.mxu0 %v6286_v8  ;;  %v6334_v27 = vld [vmem:[#allocation7 + $0xa8] sm:$0xff]   ;;  %v6337_v29 = vld [vmem:[#allocation7 + $0x70] sm:$0xff]   ;;  %v6353_v36 = vld [vmem:[#allocation7 + $0x78] sm:$0xff]   ;;  %v464_v41 = vadd.s32 %v6350_v35, %v452_v31  ;;  %v466_v42 = vadd.s32 %v6350_v35, %v454_v33  ;;  %v463_v46 = vadd.s32 %v6350_v35, %v6328_v25  ;;  %v6388_v51 = vstv %s471_s9  ;;  %p5965_p1 = pnand %p5964_p11, %p9760_p0  ;;  %s5967_s9 = sshll.u32 %s6044_s0, 4  ;;  %s5968_s9 = int_to_ptr.vmem [resolvable:$false] %s5967_s9 }
  0x78   : > { %4742 = vmatprep.subr.bf16.mxu1 %v6289_v9  ;;  %v6340_v30 = vld [vmem:[#allocation7 + $0xf0] sm:$0xff]   ;;  %v6356_v37 = vld [vmem:[#allocation7 + $0xf8] sm:$0xff]   ;;  %v6369_v43 = vld [vmem:[%s6251_s15 + $0x8] sm:$0xff]  ;;  %v465_v49 = vadd.s32 %v6350_v35, %v453_v38  ;;  %s5969_s11 = scalar_lea.vmem %s5968_s9, 256  ;;  %p5970_p5 = scmp.lt.s32.totalorder %s8427_s8, %s5968_s9 }
  0x79   : > { %v6344_v32 = vld [vmem:[#allocation7 + $0x30] sm:$0xff]   ;;  %v6360_v39 = vld [vmem:[#allocation7 + $0x38] sm:$0xff]   ;;  %v6376_v45 = vld [vmem:[%s6251_s15] sm:$0xff]  ;;  %v618_v47 = vpack.c.bf16 %v6369_v43, %v6369_v43  ;;  %v474_v53 = vadd.s32 %v6388_v51, %v464_v41  ;;  %v476_v54 = vadd.s32 %v6388_v51, %v466_v42  ;;  %v473_v56 = vadd.s32 %v6388_v51, %v463_v46  ;;  %p5966_p3 = pneg %p5965_p1  ;;  %p5971_p9 = scmp.lt.s32.totalorder %s5969_s11, %s5963_s25 }
  0x7a   : > { %4721 = vmatpush3.bf16.msra.mxu0 %v6292_v10  ;;  %v6348_v34 = vld [vmem:[#allocation7 + $0xb0] sm:$0xff]   ;;  %v6363_v40 = vld [vmem:[#allocation7 + $0xb8] sm:$0xff]   ;;  %v6386_v50 = vld [vmem:[#allocation7 + $0x140] sm:$0xff]   ;;  %v617_v52 = vpack.c.bf16 %v6376_v45, %v6376_v45  ;;  %v6400_v58 = vadd.f32 -0.03137255, %v6369_v43  ;;  %v475_v60 = vadd.s32 %v6388_v51, %v465_v49 }
  0x7b   : > { %4743 = vmatpush3.bf16.msra.mxu1 %v6295_v11  ;;  %4722 = vmatprep.subr.bf16.mxu0 %v6298_v12  ;;  %v6373_v44 = vld [vmem:[%s6251_s15 + $0x18] sm:$0xff]  ;;  %v6395_v55 = vld [vmem:[%s6251_s15 + $0x10] sm:$0xff]  ;;  %v4543_v57 = vshrl.u32 %v474_v53, 16  ;;  %v4545_v59 = vshrl.u32 %v476_v54, 16  ;;  %v6403_v61 = vld [vmem:[#allocation7 + $0x1c0] sm:$0xff]   ;;  %v4542_v16 = vshrl.u32 %v473_v56, 16  ;;  %p5972_p12 = por %p5971_p9, %p5970_p5 }
  0x7c   : > { %4744 = vmatprep.subr.bf16.mxu1 %v6301_v13  ;;  %v620_v48 = vpack.c.bf16 %v6373_v44, %v6373_v44  ;;  %1047 = vmatprep.mubr.bf16.mxu0 %v618_v47  ;;  %v6405_v62 = vld [vmem:[#allocation7 + $0x100] sm:$0xff]   ;;  %v6408_v63 = vadd.f32 0.03137255, %v6369_v43  ;;  %v619_v21 = vpack.c.bf16 %v6395_v55, %v6395_v55  ;;  %v4544_v31 = vshrl.u32 %v475_v60, 16  ;;  %v6420_v49 = vld [vmem:[#allocation7 + $0x148] sm:$0xff]  }
  0x7d   : > { %8944 = vst [vmem:[#allocation14_spill] sm:$0xff] %v6405_v62  ;;  %v498_v23 = vxor.u32 %v4543_v57, %v474_v53  ;;  %v500_v28 = vxor.u32 %v4545_v59, %v476_v54  ;;  %v6415_v33 = vadd.f32 -0.03137255, %v6373_v44  ;;  %v497_v38 = vxor.u32 %v4542_v16, %v473_v56  ;;  %v6417_v41 = vld [vmem:[#allocation7 + $0x180] sm:$0xff]   ;;  %8946 = vst [vmem:[#allocation16_spill] sm:$0xff] %v6420_v49  ;;  %v6423_v59 = vld [vmem:[#allocation7 + $0x1c8] sm:$0xff]   ;;  %p5973_p2 = pnand %p5972_p12, %p5966_p3 }
  0x7e   : > { %4723 = vmatpush3.bf16.msra.mxu0 %v6304_v14  ;;  %1087 = vmatprep.mubr.bf16.mxu1 %v620_v48  ;;  %8945 = vst [vmem:[#allocation15_spill] sm:$0xff] %v6417_v41  ;;  %v499_v47 = vxor.u32 %v4544_v31, %v475_v60  ;;  %8947 = vst [vmem:[#allocation17_spill] sm:$0xff] %v6423_v59  ;;  %v6428_v60 = vld [vmem:[#allocation7 + $0x188] sm:$0xff]  }
  0x7f   : > { %4745 = vmatpush3.bf16.msra.mxu1 %v6307_v15  ;;  %4724 = vmatprep.subr.bf16.mxu0 %v6310_v17  ;;  %v506_v42 = vmul.u32 2246822507, %v498_v23  ;;  %v508_v46 = vmul.u32 2246822507, %v500_v28  ;;  %8949 = vst [vmem:[#allocation19_spill] sm:$0xff] %v6428_v60 }
  0x80   : > { %4746 = vmatprep.subr.bf16.mxu1 %v6313_v18  ;;  %v505_v48 = vmul.u32 2246822507, %v497_v38  ;;  %v507_v54 = vmul.u32 2246822507, %v499_v47 }
  0x81   : > { %v4553_v53 = vshrl.u32 %v508_v46, 13 }
  0x82   : > { %4725 = vmatpush3.bf16.msra.mxu0 %v6317_v19  ;;  %v4550_v57 = vshrl.u32 %v505_v48, 13 }
  0x83   : > { %4747 = vmatpush3.bf16.msra.mxu1 %v6320_v20  ;;  %4726 = vmatprep.subr.bf16.mxu0 %v6323_v22  ;;  %v532_v16 = vxor.u32 %v4553_v53, %v508_v46 }
  0x84   : > { %4748 = vmatprep.subr.bf16.mxu1 %v6326_v24  ;;  %v529_v23 = vxor.u32 %v4550_v57, %v505_v48  ;;  %v6438_v48 = vld [vmem:[#allocation7 + $0x110] sm:$0xff]  }
  0x85   : > { %v540_v31 = vmul.u32 3266489909, %v532_v16  ;;  %8952 = vst [vmem:[#allocation22_spill] sm:$0xff] %v6438_v48  ;;  %v6443_v16 = vld [vmem:[#allocation7 + $0x158] sm:$0xff]  }
  0x86   : > { %4727 = vmatpush3.bf16.msra.mxu0 %v6331_v26  ;;  %v537_v47 = vmul.u32 3266489909, %v529_v23  ;;  %8954 = vst [vmem:[#allocation24_spill] sm:$0xff] %v6443_v16 }
  0x87   : > { %4749 = vmatpush3.bf16.msra.mxu1 %v6334_v27  ;;  %4728 = vmatprep.subr.bf16.mxu0 %v6337_v29 }
  0x88   : > { %4750 = vmatprep.subr.bf16.mxu1 %v6340_v30 }
  0x8a   : > { %4729 = vmatpush3.bf16.msra.mxu0 %v6344_v32 }
  0x8b   : > { %4751 = vmatpush3.bf16.msra.mxu1 %v6348_v34  ;;  %4730 = vmatprep.subr.bf16.mxu0 %v6353_v36 }
  0x8c   : > { %4752 = vmatprep.subr.bf16.mxu1 %v6356_v37 }
  0x8e   : > { %4731 = vmatpush3.bf16.msra.mxu0 %v6360_v39 }
  0x8f   : > { %4753 = vmatpush3.bf16.msra.mxu1 %v6363_v40  ;;  %4760 = vmatprep.subr.bf16.mxu0 %v6386_v50 }
  0x90   : > { %4782 = vmatprep.subr.bf16.mxu1 %v6403_v61 }
  0x91   : > { %1048 = vmatmul.mubr.bf16.vlgmr.msra.gmra.mrb[0].mxu0 %v617_v52  ;;  %v4551_v52 = vshrl.u32 %v506_v42, 13 }
  0x92   : > { %4761 = vmatpush3.bf16.msra.mxu0 %v6405_v62  ;;  %1088 = vmatmul.mubr.bf16.vlgmr.msra.gmra.mrb[0].mxu1 %v619_v21  ;;  %v4552_v21 = vshrl.u32 %v507_v54, 13  ;;  %v6425_v62 = vld [vmem:[#allocation7 + $0x108] sm:$0xff]  }
  0x93   : > { %4783 = vmatpush3.bf16.msra.mxu1 %v6417_v41  ;;  %4762 = vmatprep.subr.bf16.mxu0 %v6420_v49  ;;  %v530_v56 = vxor.u32 %v4551_v52, %v506_v42  ;;  %8948 = vst [vmem:[#allocation18_spill] sm:$0xff] %v6425_v62  ;;  %v6432_v49 = vld [vmem:[#allocation7 + $0x150] sm:$0xff]   ;;  %v4561_v52 = vshrl.u32 %v540_v31, 16 }
  0x94   : > { %4784 = vmatprep.subr.bf16.mxu1 %v6423_v59  ;;  %v531_v38 = vxor.u32 %v4552_v21, %v507_v54  ;;  %8950 = vst [vmem:[#allocation20_spill] sm:$0xff] %v6432_v49  ;;  %v6434_v42 = vld [vmem:[#allocation7 + $0x1d0] sm:$0xff]  }
  0x95   : > { %v538_v28 = vmul.u32 3266489909, %v530_v56  ;;  %8951 = vst [vmem:[#allocation21_spill] sm:$0xff] %v6434_v42  ;;  %v564_v54 = vxor.u32 %v4561_v52, %v540_v31  ;;  %v6440_v56 = vld [vmem:[#allocation7 + $0x190] sm:$0xff]   ;;  %v456_v52 = vadd.s32 640, %v6328_v25 }
  0x96   : > { %4763 = vmatpush3.bf16.msra.mxu0 %v6425_v62  ;;  %v539_v53 = vmul.u32 3266489909, %v531_v38  ;;  %8953 = vst [vmem:[#allocation23_spill] sm:$0xff] %v6440_v56  ;;  %v1206_v38 = vadd.f32 0.03137255, %v6373_v44 }
  0x97   : > { %4785 = vmatpush3.bf16.msra.mxu1 %v6428_v60  ;;  %v4559_v46 = vshrl.u32 %v538_v28, 16  ;;  %4764 = vmatprep.subr.bf16.mxu0 %v6432_v49  ;;  %v572_v23 = vand.u32 8388607, %v564_v54  ;;  %v6448_v49 = vld [vmem:[#allocation7 + $0x1d8] sm:$0xff]  }
  0x98   : > { %4786 = vmatprep.subr.bf16.mxu1 %v6434_v42  ;;  %8955 = vst [vmem:[#allocation25_spill] sm:$0xff] %v6448_v49  ;;  %v6450_v42 = vld [vmem:[#allocation7 + $0x118] sm:$0xff]  }
  0x99   : > { %v562_v57 = vxor.u32 %v4559_v46, %v538_v28  ;;  %8956 = vst [vmem:[#allocation26_spill] sm:$0xff] %v6450_v42  ;;  %v580_v31 = vcvt.s32.f32 %v572_v23  ;;  %v4558_v46 = vshrl.u32 %v537_v47, 16  ;;  %v458_v23 = vadd.s32 896, %v6328_v25 }
  0x9a   : > { %4765 = vmatpush3.bf16.msra.mxu0 %v6438_v48  ;;  %v4560_v48 = vshrl.u32 %v539_v53, 16 }
  0x9b   : > { %v570_v21 = vand.u32 8388607, %v562_v57  ;;  %4787 = vmatpush3.bf16.msra.mxu1 %v6440_v56  ;;  %4766 = vmatprep.subr.bf16.mxu0 %v6443_v16  ;;  %v6455_v57 = vld [vmem:[#allocation7 + $0x198] sm:$0xff]   ;;  %v588_v56 = vmul.f32 1.1920929e-07, %v580_v31  ;;  %v6458_v16 = vld [vmem:[#allocation7 + $0x160] sm:$0xff]   ;;  %v561_v59 = vxor.u32 %v4558_v46, %v537_v47  ;;  %v6473_v47 = vld [vmem:[#allocation7 + $0x168] sm:$0xff]  }
  0x9c   : > { %4788 = vmatprep.subr.bf16.mxu1 %v6448_v49  ;;  %8957 = vst [vmem:[#allocation27_spill] sm:$0xff] %v6455_v57  ;;  %8958 = vst [vmem:[#allocation28_spill] sm:$0xff] %v6458_v16  ;;  %v6464_v49 = vld [vmem:[#allocation7 + $0x120] sm:$0xff]  }
  0x9d   : > { %v578_v28 = vcvt.s32.f32 %v570_v21  ;;  %v596_v62 = vmul.f32 2.0, %v588_v56  ;;  %v6460_v21 = vld [vmem:[#allocation7 + $0x1e0] sm:$0xff]   ;;  %8959 = vst [vmem:[#allocation29_spill] sm:$0xff] %v6464_v49  ;;  %v457_v56 = vadd.s32 768, %v6328_v25 }
  0x9e   : > { %4767 = vmatpush3.bf16.msra.mxu0 %v6450_v42  ;;  %v468_v42 = vadd.s32 %v6350_v35, %v456_v52  ;;  %v6476_v52 = vld [vmem:[#allocation7 + $0x1e8] sm:$0xff]  }
  0x9f   : > { %v586_v54 = vmul.f32 1.1920929e-07, %v578_v28  ;;  %4789 = vmatpush3.bf16.msra.mxu1 %v6455_v57  ;;  %4768 = vmatprep.subr.bf16.mxu0 %v6458_v16  ;;  %v455_v28 = vadd.s32 512, %v6328_v25  ;;  %v4569_v41 = vadd.f32 -1.0, %v596_v62  ;;  %v563_v57 = vxor.u32 %v4560_v48, %v539_v53  ;;  %8961 = vst [vmem:[#allocation31_spill] sm:$0xff] %v6476_v52 }
  0xa0   : > { %4790 = vmatprep.subr.bf16.mxu1 %v6460_v21  ;;  %v569_v62 = vand.u32 8388607, %v561_v59  ;;  %v478_v53 = vadd.s32 %v6388_v51, %v468_v42  ;;  %v6491_v59 = vmax.f32 %v6415_v33, 0.0  ;;  %v6494_v42 = vld [vmem:[#allocation7 + $0x1a8] sm:$0xff]   ;;  %v6505_v33 = vld [vmem:[#allocation7 + $0x1f0] sm:$0xff]  }
  0xa1   : > { %v594_v60 = vmul.f32 2.0, %v586_v54  ;;  %v6469_v54 = vld [vmem:[#allocation7 + $0x1a0] sm:$0xff]   ;;  %v612_v16 = vmul.f32 0.03137255, %v4569_v41  ;;  %v467_v48 = vadd.s32 %v6350_v35, %v455_v28  ;;  %v571_v25 = vand.u32 8388607, %v563_v57 }
  0xa2   : > { %8960 = vst [vmem:[#allocation30_spill] sm:$0xff] %v6469_v54  ;;  %4769 = vmatpush3.bf16.msra.mxu0 %v6464_v49  ;;  %v469_v49 = vadd.s32 %v6350_v35, %v457_v56  ;;  %v6485_v41 = vmax.f32 %v6400_v58, 0.0  ;;  %8964 = vst [vmem:[#allocation34_spill] sm:$0xff] %v6491_v59  ;;  %v6498_v28 = vld [vmem:[#allocation7 + $0x170] sm:$0xff]  }
  0xa3   : > { %v4567_v31 = vadd.f32 -1.0, %v594_v60  ;;  %4791 = vmatpush3.bf16.msra.mxu1 %v6469_v54  ;;  %v470_v60 = vadd.s32 %v6350_v35, %v458_v23  ;;  %4770 = vmatprep.subr.bf16.mxu0 %v6473_v47  ;;  %v6488_v54 = vld [vmem:[#allocation7 + $0x128] sm:$0xff]   ;;  %v1222_v23 = vadd.f32 %v612_v16, %v6373_v44  ;;  %8965 = vst [vmem:[#allocation35_spill] sm:$0xff] %v6494_v42  ;;  %8966 = vst [vmem:[#allocation36_spill] sm:$0xff] %v6498_v28  ;;  %v6511_v56 = vld [vmem:[#allocation7 + $0x130] sm:$0xff]  }
  0xa4   : > { %4792 = vmatprep.subr.bf16.mxu1 %v6476_v52  ;;  %8962 = vst [vmem:[#allocation32_spill] sm:$0xff] %v6485_v41  ;;  %8963 = vst [vmem:[#allocation33_spill] sm:$0xff] %v6488_v54  ;;  %v4547_v35 = vshrl.u32 %v478_v53, 16  ;;  %v477_v58 = vadd.s32 %v6388_v51, %v467_v48  ;;  %v479_v44 = vadd.s32 %v6388_v51, %v469_v49  ;;  %v6508_v16 = vmin.f32 %v1206_v38, 1.0 }
  0xa5   : > { %v610_v46 = vmul.f32 0.03137255, %v4567_v31  ;;  %v480_v57 = vadd.s32 %v6388_v51, %v470_v60  ;;  %8968 = vst [vmem:[#allocation38_spill] sm:$0xff] %v6505_v33  ;;  %8970 = vst [vmem:[#allocation40_spill] sm:$0xff] %v6511_v56  ;;  %v6515_v60 = vld [vmem:[#allocation7 + $0x1b0] sm:$0xff]   ;;  %v6519_v51 = vld [vmem:[#allocation7 + $0x178] sm:$0xff]  }
  0xa6   : > { %4771 = vmatpush3.bf16.msra.mxu0 %v6488_v54  ;;  %8969 = vst [vmem:[#allocation39_spill] sm:$0xff] %v6508_v16  ;;  %8971 = vst [vmem:[#allocation41_spill] sm:$0xff] %v6515_v60  ;;  %v502_v49 = vxor.u32 %v4547_v35, %v478_v53  ;;  %v4546_v38 = vshrl.u32 %v477_v58, 16  ;;  %v6531_v53 = vld [vmem:[#allocation7 + $0x1b8] sm:$0xff]   ;;  %v6534_v35 = vld [vmem:[%s6251_s15 + $0x28] sm:$0xff] }
  0xa7   : > { %v1220_v31 = vadd.f32 %v610_v46, %v6369_v43  ;;  %v6502_v43 = vmin.f32 %v6408_v63, 1.0  ;;  %4793 = vmatpush3.bf16.msra.mxu1 %v6494_v42  ;;  %4772 = vmatprep.subr.bf16.mxu0 %v6498_v28  ;;  %v1230_v63 = vmax.f32 %v6491_v59, %v1222_v23  ;;  %v4549_v48 = vshrl.u32 %v480_v57, 16  ;;  %8972 = vst [vmem:[#allocation42_spill] sm:$0xff] %v6519_v51  ;;  %v6522_v28 = vld [vmem:[#allocation7 + $0x1f8] sm:$0xff]  }
  0xa8   : > { %4794 = vmatprep.subr.bf16.mxu1 %v6505_v33  ;;  %8973 = vst [vmem:[#allocation43_spill] sm:$0xff] %v6522_v28  ;;  %v577_v59 = vcvt.s32.f32 %v569_v62 }
  0xa9   : > { %8967 = vst [vmem:[#allocation37_spill] sm:$0xff] %v6502_v43  ;;  %v1228_v46 = vmax.f32 %v6485_v41, %v1220_v31  ;;  %v4548_v31 = vshrl.u32 %v479_v44, 16  ;;  %v6525_v41 = vld [vmem:[#allocation7 + $0x138] sm:$0xff]   ;;  %v6540_v33 = vmin.f32 %v6508_v16, %v1230_v63  ;;  %v501_v16 = vxor.u32 %v4546_v38, %v477_v58 }
  0xaa   : > { %4773 = vmatpush3.bf16.msra.mxu0 %v6511_v56  ;;  %8974 = vst [vmem:[#allocation44_spill] sm:$0xff] %v6525_v41  ;;  %v579_v56 = vcvt.s32.f32 %v571_v25  ;;  %v6548_v25 = vld [vmem:[%s6251_s15 + $0x20] sm:$0xff]  ;;  %v585_v52 = vmul.f32 1.1920929e-07, %v577_v59 }
  0xab   : > { %4795 = vmatpush3.bf16.msra.mxu1 %v6515_v60  ;;  %4774 = vmatprep.subr.bf16.mxu0 %v6519_v51  ;;  %v6528_v23 = vmin.f32 %v6502_v43, %v1228_v46  ;;  %v6537_v60 = vld [vmem:[%s6251_s15 + $0x38] sm:$0xff]  ;;  %v622_v51 = vpack.c.bf16 %v6534_v35, %v6534_v35  ;;  %v6551_v46 = vld [vmem:[%s6251_s15 + $0x30] sm:$0xff]  ;;  %v510_v43 = vmul.u32 2246822507, %v502_v49  ;;  %v621_v63 = vpack.c.bf16 %v6548_v25, %v6548_v25  ;;  %s8425_s15 = scalar_lea.hbm %s8474_s5, %s4712_s7 }
  0xac   : > { %4796 = vmatprep.subr.bf16.mxu1 %v6522_v28  ;;  %v624_v62 = vpack.c.bf16 %v6537_v60, %v6537_v60  ;;  %v504_v28 = vxor.u32 %v4549_v48, %v480_v57  ;;  %v623_v42 = vpack.c.bf16 %v6551_v46, %v6551_v46  ;;  %v587_v49 = vmul.f32 1.1920929e-07, %v579_v56 }
  0xad   : > { %1127 = vmatprep.mubr.bf16.mxu0 %v622_v51  ;;  %v1244_v54 = vpack.c.bf16 %v6528_v23, %v6528_v23  ;;  %v1246_v57 = vpack.c.bf16 %v6540_v33, %v6540_v33 }
  0xae   : > { %4775 = vmatpush3.bf16.msra.mxu0 %v6525_v41  ;;  %v503_v41 = vxor.u32 %v4548_v31, %v479_v44  ;;  %1167 = vmatprep.mubr.bf16.mxu1 %v624_v62  ;;  %v512_v58 = vmul.u32 2246822507, %v504_v28  ;;  %v509_v44 = vmul.u32 2246822507, %v501_v16  ;;  %v595_v51 = vmul.f32 2.0, %v587_v49 }
  0xaf   : > { %4797 = vmatpush3.bf16.msra.mxu1 %v6531_v53  ;;  %4804 = vmatprep.subr.bf16.mxu0 %v6263_v0  ;;  %v4555_v0 = vshrl.u32 %v510_v43, 13 }
  0xb0   : > { %4826 = vmatprep.subr.bf16.mxu1 %v6265_v1  ;;  %v511_v48 = vmul.u32 2246822507, %v503_v41  ;;  %v4557_v56 = vshrl.u32 %v512_v58, 13  ;;  %v593_v1 = vmul.f32 2.0, %v585_v52  ;;  %v4554_v38 = vshrl.u32 %v509_v44, 13 }
  0xb1   : > { %1128 = vmatmul.mubr.bf16.vlgmr.msra.gmra.mrb[4].mxu0 %v621_v63  ;;  %v534_v59 = vxor.u32 %v4555_v0, %v510_v43 }
  0xb2   : > { %1168 = vmatmul.mubr.bf16.vlgmr.msra.gmra.mrb[4].mxu1 %v623_v42  ;;  %4805 = vmatpush3.bf16.msra.mxu0 %v6268_v2  ;;  %v536_v42 = vxor.u32 %v4557_v56, %v512_v58  ;;  %v4556_v28 = vshrl.u32 %v511_v48, 13  ;;  %v533_v41 = vxor.u32 %v4554_v38, %v509_v44  ;;  %v4644_v56 = vadd.f32 -0.03137255, %v6534_v35 }
  0xb3   : > { %4827 = vmatpush3.bf16.msra.mxu1 %v6271_v3  ;;  %4806 = vmatprep.subr.bf16.mxu0 %v6274_v4  ;;  %v542_v2 = vmul.u32 3266489909, %v534_v59 }
  0xb4   : > { %4828 = vmatprep.subr.bf16.mxu1 %v6277_v5  ;;  %1283 = vmatprep.mubr.bf16.mxu0 %v1244_v54  ;;  %v544_v4 = vmul.u32 3266489909, %v536_v42  ;;  %v4566_v5 = vadd.f32 -1.0, %v593_v1  ;;  %v4568_v54 = vadd.f32 -1.0, %v595_v51  ;;  %v535_v16 = vxor.u32 %v4556_v28, %v511_v48 }
  0xb5   : > { %1323 = vmatprep.mubr.bf16.mxu1 %v1246_v57  ;;  %v4563_v3 = vshrl.u32 %v542_v2, 16  ;;  %v541_v63 = vmul.u32 3266489909, %v533_v41 }
  0xb6   : > { %4807 = vmatpush3.bf16.msra.mxu0 %v6280_v6  ;;  %v4565_v43 = vshrl.u32 %v544_v4, 16  ;;  %v4639_v6 = vadd.f32 -0.03137255, %v6376_v45  ;;  %v609_v31 = vmul.f32 0.03137255, %v4566_v5 }
  0xb7   : > { %4829 = vmatpush3.bf16.msra.mxu1 %v6283_v7  ;;  %4808 = vmatprep.subr.bf16.mxu0 %v6286_v8  ;;  %v566_v52 = vxor.u32 %v4563_v3, %v542_v2  ;;  %v4641_v7 = vadd.f32 -0.03137255, %v6395_v55  ;;  %v611_v62 = vmul.f32 0.03137255, %v4568_v54  ;;  %v543_v57 = vmul.u32 3266489909, %v535_v16 }
  0xb8   : > { %4830 = vmatprep.subr.bf16.mxu1 %v6289_v9  ;;  %v568_v9 = vxor.u32 %v4565_v43, %v544_v4  ;;  %v6583_v0 = vmax.f32 %v4639_v6, 0.0  ;;  %v1219_v44 = vadd.f32 %v609_v31, %v6376_v45  ;;  %v4562_v59 = vshrl.u32 %v541_v63, 16  ;;  %v8983_v31 = vld [vmem:[#allocation14_spill] sm:$0xff] }
  0xb9   : > { %v574_v8 = vand.u32 8388607, %v566_v52  ;;  %v1221_v48 = vadd.f32 %v611_v62, %v6395_v55  ;;  %v6604_v4 = vmax.f32 %v4644_v56, 0.0  ;;  %v8994_v56 = vld [vmem:[#allocation25_spill] sm:$0xff] }
  0xba   : > { %4809 = vmatpush3.bf16.msra.mxu0 %v6292_v10  ;;  %v576_v49 = vand.u32 8388607, %v568_v9  ;;  %8975 = vst [vmem:[#allocation45_spill] sm:$0xff] %v6583_v0  ;;  %v1227_v42 = vmax.f32 %v6583_v0, %v1219_v44  ;;  %v565_v3 = vxor.u32 %v4562_v59, %v541_v63  ;;  %v8984_v63 = vld [vmem:[#allocation15_spill] sm:$0xff]  ;;  %v8993_v59 = vld [vmem:[#allocation24_spill] sm:$0xff] }
  0xbb   : > { %4831 = vmatpush3.bf16.msra.mxu1 %v6295_v11  ;;  %4810 = vmatprep.subr.bf16.mxu0 %v6298_v12  ;;  %v582_v10 = vcvt.s32.f32 %v574_v8  ;;  %v1203_v11 = vadd.f32 0.03137255, %v6376_v45  ;;  %v1205_v12 = vadd.f32 0.03137255, %v6395_v55  ;;  %v4646_v45 = vadd.f32 -0.03137255, %v6537_v60 }
  0xbc   : > { %4832 = vmatprep.subr.bf16.mxu1 %v6301_v13  ;;  %v584_v58 = vcvt.s32.f32 %v576_v49  ;;  %8979 = vst [vmem:[#allocation49_spill] sm:$0xff] %v6604_v4  ;;  %v573_v16 = vand.u32 8388607, %v565_v3 }
  0xbd   : > { %v590_v13 = vmul.f32 1.1920929e-07, %v582_v10  ;;  %v6592_v51 = vmin.f32 %v1203_v11, 1.0  ;;  %v6594_v38 = vmin.f32 %v1205_v12, 1.0  ;;  %v6611_v54 = vmax.f32 %v4646_v45, 0.0  ;;  %v8985_v10 = vld [vmem:[#allocation16_spill] sm:$0xff]  ;;  %v8990_v12 = vld [vmem:[#allocation21_spill] sm:$0xff] }
  0xbe   : > { %4811 = vmatpush3.bf16.msra.mxu0 %v6304_v14  ;;  %v6587_v14 = vmax.f32 %v4641_v7, 0.0  ;;  %v592_v1 = vmul.f32 1.1920929e-07, %v584_v58  ;;  %v8989_v11 = vld [vmem:[#allocation20_spill] sm:$0xff]  ;;  %v8991_v58 = vld [vmem:[#allocation22_spill] sm:$0xff] }
  0xbf   : > { %4833 = vmatpush3.bf16.msra.mxu1 %v6307_v15  ;;  %4812 = vmatprep.subr.bf16.mxu0 %v6310_v17  ;;  %v598_v15 = vmul.f32 2.0, %v590_v13  ;;  %v4564_v17 = vshrl.u32 %v543_v57, 16  ;;  %8977 = vst [vmem:[#allocation47_spill] sm:$0xff] %v6592_v51  ;;  %8978 = vst [vmem:[#allocation48_spill] sm:$0xff] %v6594_v38  ;;  %v6616_v43 = vmin.f32 %v6592_v51, %v1227_v42  ;;  %v1207_v42 = vadd.f32 0.03137255, %v6548_v25 }
  0xc0   : > { %4834 = vmatprep.subr.bf16.mxu1 %v6313_v18  ;;  %8976 = vst [vmem:[#allocation46_spill] sm:$0xff] %v6587_v14  ;;  %v1208_v18 = vadd.f32 0.03137255, %v6534_v35  ;;  %v600_v2 = vmul.f32 2.0, %v592_v1  ;;  %v1229_v28 = vmax.f32 %v6587_v14, %v1221_v48  ;;  %8981 = vst [vmem:[#allocation51_spill] sm:$0xff] %v6611_v54  ;;  %v8992_v48 = vld [vmem:[#allocation23_spill] sm:$0xff] }
  0xc1   : > { %v4571_v55 = vadd.f32 -1.0, %v598_v15  ;;  %v567_v5 = vxor.u32 %v4564_v17, %v543_v57  ;;  %v1243_v8 = vpack.c.bf16 %v6616_v43, %v6616_v43  ;;  %v8988_v57 = vld [vmem:[#allocation19_spill] sm:$0xff]  ;;  %v4643_v15 = vadd.f32 -0.03137255, %v6548_v25 }
  0xc2   : > { %4813 = vmatpush3.bf16.msra.mxu0 %v6317_v19  ;;  %v1210_v19 = vadd.f32 0.03137255, %v6537_v60  ;;  %v4645_v17 = vadd.f32 -0.03137255, %v6551_v46 }
  0xc3   : > { %4835 = vmatpush3.bf16.msra.mxu1 %v6320_v20  ;;  %4814 = vmatprep.subr.bf16.mxu0 %v6323_v22  ;;  %v614_v20 = vmul.f32 0.03137255, %v4571_v55  ;;  %v4573_v22 = vadd.f32 -1.0, %v600_v2  ;;  %v575_v7 = vand.u32 8388607, %v567_v5  ;;  %v8996_v55 = vld [vmem:[#allocation27_spill] sm:$0xff] }
  0xc4   : > { %4836 = vmatprep.subr.bf16.mxu1 %v6326_v24  ;;  %v6609_v24 = vmin.f32 %v1208_v18, 1.0  ;;  %v6621_v6 = vmin.f32 %v1210_v19, 1.0  ;;  %v8995_v18 = vld [vmem:[#allocation26_spill] sm:$0xff]  ;;  %v8997_v2 = vld [vmem:[#allocation28_spill] sm:$0xff]  ;;  %v6666_v19 = vmax.f32 %v4643_v15, 0.0  ;;  %v6670_v3 = vmax.f32 %v4645_v17, 0.0 }
  0xc5   : > { %v1224_v41 = vadd.f32 %v614_v20, %v6534_v35  ;;  %v616_v52 = vmul.f32 0.03137255, %v4573_v22  ;;  %v1209_v20 = vadd.f32 0.03137255, %v6551_v46  ;;  %v9000_v22 = vld [vmem:[#allocation29_spill] sm:$0xff] }
  0xc6   : > { %4815 = vmatpush3.bf16.msra.mxu0 %v6331_v26  ;;  %8980 = vst [vmem:[#allocation50_spill] sm:$0xff] %v6609_v24  ;;  %v6619_v26 = vmin.f32 %v6594_v38, %v1229_v28  ;;  %8982 = vst [vmem:[#allocation52_spill] sm:$0xff] %v6621_v6 }
  0xc7   : > { %4837 = vmatpush3.bf16.msra.mxu1 %v6334_v27  ;;  %4816 = vmatprep.subr.bf16.mxu0 %v6337_v29  ;;  %v1232_v27 = vmax.f32 %v6604_v4, %v1224_v41  ;;  %v1226_v29 = vadd.f32 %v616_v52, %v6537_v60  ;;  %8998 = vst [vmem:[#allocation14_spill] sm:$0xff] %v6666_v19  ;;  %8999 = vst [vmem:[#allocation15_spill] sm:$0xff] %v6670_v3  ;;  %v9001_v41 = vld [vmem:[#allocation30_spill] sm:$0xff]  ;;  %v9002_v52 = vld [vmem:[#allocation31_spill] sm:$0xff] }
  0xc8   : > { %4838 = vmatprep.subr.bf16.mxu1 %v6340_v30  ;;  %v1245_v60 = vpack.c.bf16 %v6619_v26, %v6619_v26 }
  0xc9   : > { %v6630_v30 = vmin.f32 %v6609_v24, %v1232_v27  ;;  %v1234_v35 = vmax.f32 %v6611_v54, %v1226_v29  ;;  %v6681_v27 = vmin.f32 %v1209_v20, 1.0 }
  0xca   : > { %4817 = vmatpush3.bf16.msra.mxu0 %v6344_v32  ;;  %v581_v32 = vcvt.s32.f32 %v573_v16 }
  0xcb   : > { %4839 = vmatpush3.bf16.msra.mxu1 %v6348_v34  ;;  %4818 = vmatprep.subr.bf16.mxu0 %v6353_v36  ;;  %v6639_v34 = vmin.f32 %v6621_v6, %v1234_v35  ;;  %v583_v36 = vcvt.s32.f32 %v575_v7  ;;  %v9006_v7 = vld [vmem:[#allocation35_spill] sm:$0xff]  ;;  %v9007_v35 = vld [vmem:[#allocation36_spill] sm:$0xff] }
  0xcc   : > { %4840 = vmatprep.subr.bf16.mxu1 %v6356_v37  ;;  %v1248_v37 = vpack.c.bf16 %v6630_v30, %v6630_v30  ;;  %v589_v9 = vmul.f32 1.1920929e-07, %v581_v32 }
  0xcd   : > { %v591_v62 = vmul.f32 1.1920929e-07, %v583_v36  ;;  %v9011_v36 = vld [vmem:[#allocation42_spill] sm:$0xff] }
  0xce   : > { %4819 = vmatpush3.bf16.msra.mxu0 %v6360_v39  ;;  %v1250_v39 = vpack.c.bf16 %v6639_v34, %v6639_v34 }
  0xcf   : > { %4841 = vmatpush3.bf16.msra.mxu1 %v6363_v40  ;;  %4848 = vmatprep.subr.bf16.mxu0 %v6386_v50  ;;  %v8986_v40 = vld [vmem:[#allocation17_spill] sm:$0xff]  ;;  %v597_v50 = vmul.f32 2.0, %v589_v9  ;;  %v599_v49 = vmul.f32 2.0, %v591_v62  ;;  %v9013_v9 = vld [vmem:[#allocation44_spill] sm:$0xff] }
  0xd0   : > { %4870 = vmatprep.subr.bf16.mxu1 %v6403_v61  ;;  %v8987_v61 = vld [vmem:[#allocation18_spill] sm:$0xff]  ;;  %9004 = vst [vmem:[#allocation17_spill] sm:$0xff] %v6681_v27 }
  0xd1   : > { %1284 = vmatmul.mubr.bf16.vlgmr.msra.gmra.mrb[8].mxu0 %v1243_v8  ;;  %v4570_v13 = vadd.f32 -1.0, %v597_v50  ;;  %v4572_v44 = vadd.f32 -1.0, %v599_v49  ;;  %v9009_v8 = vld [vmem:[#allocation40_spill] sm:$0xff] }
  0xd2   : > { %1324 = vmatmul.mubr.bf16.vlgmr.msra.gmra.mrb[8].mxu1 %v1245_v60  ;;  %4849 = vmatpush3.bf16.msra.mxu0 %v8983_v31  ;;  %v9010_v60 = vld [vmem:[#allocation41_spill] sm:$0xff] }
  0xd3   : > { %4871 = vmatpush3.bf16.msra.mxu1 %v8984_v63  ;;  %4850 = vmatprep.subr.bf16.mxu0 %v8985_v10  ;;  %v613_v1 = vmul.f32 0.03137255, %v4570_v13  ;;  %v615_v45 = vmul.f32 0.03137255, %v4572_v44  ;;  %v6707_v63 = vld [vmem:[%s8473_s4] ss:$0 sm:$0xff] }
  0xd4   : > { %4872 = vmatprep.subr.bf16.mxu1 %v8986_v40  ;;  %1363 = vmatprep.mubr.bf16.mxu0 %v1248_v37  ;;  %v9012_v37 = vld [vmem:[#allocation43_spill] sm:$0xff]  ;;  %9014 = vst [vmem:[#allocation18_spill] sm:$0xff] %v6707_v63 }
  0xd5   : > { %1403 = vmatprep.mubr.bf16.mxu1 %v1250_v39  ;;  %v1223_v28 = vadd.f32 %v613_v1, %v6548_v25  ;;  %v1225_v5 = vadd.f32 %v615_v45, %v6551_v46  ;;  %v9005_v25 = vld [vmem:[#allocation33_spill] sm:$0xff]  ;;  %v9008_v46 = vld [vmem:[#allocation38_spill] sm:$0xff] }
  0xd6   : > { %4851 = vmatpush3.bf16.msra.mxu0 %v8987_v61 }
  0xd7   : > { %4873 = vmatpush3.bf16.msra.mxu1 %v8988_v57  ;;  %4852 = vmatprep.subr.bf16.mxu0 %v8989_v11  ;;  %v1231_v16 = vmax.f32 %v6666_v19, %v1223_v28  ;;  %v1233_v29 = vmax.f32 %v6670_v3, %v1225_v5 }
  0xd8   : > { %4874 = vmatprep.subr.bf16.mxu1 %v8990_v12 }
  0xd9   : > { %v6693_v32 = vmin.f32 %v6681_v27, %v1233_v29 }
  0xda   : > { %4853 = vmatpush3.bf16.msra.mxu0 %v8991_v58 }
  0xdb   : > { %4875 = vmatpush3.bf16.msra.mxu1 %v8992_v48  ;;  %4854 = vmatprep.subr.bf16.mxu0 %v8993_v59  ;;  %v1249_v31 = vpack.c.bf16 %v6693_v32, %v6693_v32 }
  0xdc   : > { %4876 = vmatprep.subr.bf16.mxu1 %v8994_v56 }
  0xde   : > { %4855 = vmatpush3.bf16.msra.mxu0 %v8995_v18 }
  0xdf   : > { %4877 = vmatpush3.bf16.msra.mxu1 %v8996_v55  ;;  %4856 = vmatprep.subr.bf16.mxu0 %v8997_v2 }
  0xe0   : > { %4878 = vmatprep.subr.bf16.mxu1 %v6460_v21  ;;  %v6678_v21 = vmin.f32 %v1207_v42, 1.0 }
  0xe2   : > { %4857 = vmatpush3.bf16.msra.mxu0 %v9000_v22  ;;  %9003 = vst [vmem:[#allocation16_spill] sm:$0xff] %v6678_v21 }
  0xe3   : > { %4879 = vmatpush3.bf16.msra.mxu1 %v9001_v41  ;;  %4858 = vmatprep.subr.bf16.mxu0 %v6473_v47  ;;  %v6689_v47 = vmin.f32 %v6678_v21, %v1231_v16 }
  0xe4   : > { %4880 = vmatprep.subr.bf16.mxu1 %v9002_v52 }
  0xe5   : > { %v1247_v39 = vpack.c.bf16 %v6689_v47, %v6689_v47 }
  0xe6   : > { %4859 = vmatpush3.bf16.msra.mxu0 %v9005_v25 }
  0xe7   : > { %4881 = vmatpush3.bf16.msra.mxu1 %v9006_v7  ;;  %4860 = vmatprep.subr.bf16.mxu0 %v9007_v35 }
  0xe8   : > { %4882 = vmatprep.subr.bf16.mxu1 %v9008_v46 }
  0xea   : > { %4861 = vmatpush3.bf16.msra.mxu0 %v9009_v8 }
  0xeb   : > { %4883 = vmatpush3.bf16.msra.mxu1 %v9010_v60  ;;  %4862 = vmatprep.subr.bf16.mxu0 %v9011_v36 }
  0xec   : > { %4884 = vmatprep.subr.bf16.mxu1 %v9012_v37 }
  0xee   : > { %4863 = vmatpush3.bf16.msra.mxu0 %v9013_v9 }
  0xef   : > { %4885 = vmatpush3.bf16.msra.mxu1 %v6531_v53 }
  0xf1   : > { %1364 = vmatmul.mubr.bf16.vlgmr.msra.gmra.mrb[12].mxu0 %v1247_v39 }
  0xf2   : > { %1404 = vmatmul.mubr.bf16.vlgmr.msra.gmra.mrb[12].mxu1 %v1249_v31 }
 0x164   : > { %v4732_v62 = vpop.f32.mrb[0].mxu0 }
 0x165   : > { %v4733_v10 = vpop.f32.mrb[1].mxu0  ;;  %v4754_v49 = vpop.f32.mrb[0].mxu1 }
 0x166   : > { %v4734_v40 = vadd.f32 %v4733_v10, %v4732_v62  ;;  %v4735_v50 = vpop.f32.mrb[2].mxu0  ;;  %v4755_v11 = vpop.f32.mrb[1].mxu1 }
 0x167   : > { %v4736_v61 = vpop.f32.mrb[3].mxu0  ;;  %v4756_v12 = vadd.f32 %v4755_v11, %v4754_v49  ;;  %v4757_v13 = vpop.f32.mrb[2].mxu1 }
 0x168   : > { %v1050_v57 = vadd.f32 %v4734_v40, %v6707_v63  ;;  %v4758_v58 = vpop.f32.mrb[3].mxu1  ;;  %v382_v13 = vld [vmem:[#allocation9] sm:$0xff] }
 0x169   : > { %v386_v58 = vld [vmem:[#allocation9 + $0x20] sm:$0xff] }
 0x16a   : > { %v1090_v53 = vadd.f32 %v4756_v12, %v1050_v57 }
 0x184   : > { %v4776_v44 = vpop.f32.mrb[4].mxu0 }
 0x185   : > { %v4798_v48 = vpop.f32.mrb[4].mxu1  ;;  %v4777_v59 = vpop.f32.mrb[5].mxu0 }
 0x186   : > { %v4778_v56 = vadd.f32 %v4777_v59, %v4776_v44  ;;  %v4799_v15 = vpop.f32.mrb[5].mxu1  ;;  %v4779_v1 = vpop.f32.mrb[6].mxu0  ;;  %v6717_v44 = vcombine.high %v382_v13, %v386_v58  ;;  %v6719_v59 = vcombine.low %v382_v13, %v386_v58  ;;  %v419_v13 = vld [vmem:[#allocation9 + $0x128] sm:$0xff] }
 0x187   : > { %v4800_v17 = vadd.f32 %v4799_v15, %v4798_v48  ;;  %v4801_v18 = vpop.f32.mrb[6].mxu1  ;;  %v4780_v45 = vpop.f32.mrb[7].mxu0  ;;  %v387_v48 = vld [vmem:[#allocation9 + $0x28] sm:$0xff]  ;;  %v394_v15 = vld [vmem:[#allocation9 + $0x60] sm:$0xff] }
 0x188   : > { %v1130_v55 = vadd.f32 %v4778_v56, %v1090_v53  ;;  %v4802_v2 = vpop.f32.mrb[7].mxu1  ;;  %v383_v53 = vld [vmem:[#allocation9 + $0x8] sm:$0xff]  ;;  %9016 = vst [vmem:[#allocation20_spill] sm:$0xff] %v6717_v44  ;;  %9017 = vst [vmem:[#allocation21_spill] sm:$0xff] %v6719_v59  ;;  %v390_v56 = vld [vmem:[#allocation9 + $0x40] sm:$0xff]  ;;  %1742 = vmatprep.subr.bf16.mxu0 %v6717_v44 }
 0x189   : > { %v6721_v1 = vcombine.high %v383_v53, %v387_v48  ;;  %v6725_v18 = vcombine.high %v390_v56, %v394_v15  ;;  %v391_v45 = vld [vmem:[#allocation9 + $0x48] sm:$0xff]  ;;  %v398_v2 = vld [vmem:[#allocation9 + $0x80] sm:$0xff]  ;;  %1743 = vmatpush1.bf16.msra.mxu0 %v6719_v59 }
 0x18a   : > { %v1170_v42 = vadd.f32 %v4800_v17, %v1130_v55  ;;  %v6723_v17 = vcombine.low %v383_v53, %v387_v48  ;;  %v395_v55 = vld [vmem:[#allocation9 + $0x68] sm:$0xff] }
 0x18b   : > { %9018 = vst [vmem:[#allocation22_spill] sm:$0xff] %v6721_v1  ;;  %9020 = vst [vmem:[#allocation24_spill] sm:$0xff] %v6725_v18  ;;  %1783 = vmatprep.subr.bf16.mxu1 %v6721_v1  ;;  %1744 = vmatprep.subr.bf16.mxu0 %v6725_v18 }
 0x18c   : > { %1175 = vmax.xlane.f32.xlu0 %v1170_v42  ;;  %9019 = vst [vmem:[#allocation23_spill] sm:$0xff] %v6723_v17  ;;  %1784 = vmatpush1.bf16.msra.mxu1 %v6723_v17 }
 0x1a4   : > { %v4820_v28 = vpop.f32.mrb[8].mxu0 }
 0x1a5   : > { %v4842_v20 = vpop.f32.mrb[8].mxu1  ;;  %v4821_v22 = vpop.f32.mrb[9].mxu0 }
 0x1a6   : > { %v4822_v5 = vadd.f32 %v4821_v22, %v4820_v28  ;;  %v4843_v41 = vpop.f32.mrb[9].mxu1  ;;  %v4823_v52 = vpop.f32.mrb[10].mxu0  ;;  %v402_v28 = vld [vmem:[#allocation9 + $0xa0] sm:$0xff]  ;;  %v403_v22 = vld [vmem:[#allocation9 + $0xa8] sm:$0xff] }
 0x1a7   : > { %v4844_v16 = vadd.f32 %v4843_v41, %v4842_v20  ;;  %v4845_v25 = vpop.f32.mrb[10].mxu1  ;;  %v4824_v29 = vpop.f32.mrb[11].mxu0  ;;  %v399_v20 = vld [vmem:[#allocation9 + $0x88] sm:$0xff]  ;;  %v6736_v41 = vcombine.low %v391_v45, %v395_v55  ;;  %v6738_v52 = vcombine.high %v398_v2, %v402_v28 }
 0x1a8   : > { %v1286_v7 = vadd.f32 %v4822_v5, %v6707_v63  ;;  %v4846_v35 = vpop.f32.mrb[11].mxu1  ;;  %v6732_v5 = vcombine.low %v390_v56, %v394_v15  ;;  %v406_v25 = vld [vmem:[#allocation9 + $0xc0] sm:$0xff]  ;;  %v423_v15 = vld [vmem:[#allocation9 + $0x148] sm:$0xff]  ;;  %v385_v63 = vld [vmem:[#allocation9 + $0x18] sm:$0xff] }
 0x1a9   : > { %9023 = vst [vmem:[#allocation27_spill] sm:$0xff] %v6736_v41  ;;  %9024 = vst [vmem:[#allocation28_spill] sm:$0xff] %v6738_v52  ;;  %v410_v29 = vld [vmem:[#allocation9 + $0xe0] sm:$0xff]  ;;  %v411_v35 = vld [vmem:[#allocation9 + $0xe8] sm:$0xff] }
 0x1aa   : > { %v1326_v46 = vadd.f32 %v4844_v16, %v1286_v7  ;;  %9022 = vst [vmem:[#allocation26_spill] sm:$0xff] %v6732_v5  ;;  %v6741_v16 = vcombine.high %v399_v20, %v403_v22  ;;  %v407_v7 = vld [vmem:[#allocation9 + $0xc8] sm:$0xff]  ;;  %1745 = vmatpush1.bf16.msra.mxu0 %v6732_v5  ;;  %v422_v56 = vld [vmem:[#allocation9 + $0x140] sm:$0xff] }
 0x1ab   : > { %1746 = vmatprep.subr.bf16.mxu0 %v6738_v52 }
 0x1ac   : > { %9025 = vst [vmem:[#allocation29_spill] sm:$0xff] %v6741_v16 }
 0x1c4   : > { %v4864_v8 = vpop.f32.mrb[12].mxu0 }
 0x1c5   : > { %v4886_v60 = vpop.f32.mrb[12].mxu1  ;;  %v4865_v36 = vpop.f32.mrb[13].mxu0 }
 0x1c6   : > { %v4866_v37 = vadd.f32 %v4865_v36, %v4864_v8  ;;  %v4887_v39 = vpop.f32.mrb[13].mxu1  ;;  %v4867_v9 = vpop.f32.mrb[14].mxu0  ;;  %v6748_v8 = vcombine.low %v399_v20, %v403_v22  ;;  %v6753_v36 = vcombine.high %v407_v7, %v411_v35  ;;  %v8515_v20 = vmov 0  }
 0x1c7   : > { %v4888_v31 = vadd.f32 %v4887_v39, %v4886_v60  ;;  %v4889_v62 = vpop.f32.mrb[14].mxu1  ;;  %v4868_v10 = vpop.f32.mrb[15].mxu0  ;;  %v6750_v60 = vcombine.high %v406_v25, %v410_v29  ;;  %v6760_v39 = vcombine.low %v407_v7, %v411_v35  ;;  %1774 = vmatprep.mubr.bf16.mxu0 %v8515_v20  ;;  %v435_v7 = vld [vmem:[#allocation9 + $0x1a8] sm:$0xff]  ;;  %1815 = vmatprep.mubr.bf16.mxu1 %v8515_v20  ;;  %v389_v20 = vld [vmem:[#allocation9 + $0x38] sm:$0xff] }
 0x1c8   : > { %v1366_v40 = vadd.f32 %v4866_v37, %v1326_v46  ;;  %v4890_v50 = vpop.f32.mrb[15].mxu1  ;;  %v6744_v46 = vcombine.low %v398_v2, %v402_v28  ;;  %9027 = vst [vmem:[#allocation31_spill] sm:$0xff] %v6748_v8  ;;  %9029 = vst [vmem:[#allocation35_spill] sm:$0xff] %v6753_v36  ;;  %v6756_v37 = vcombine.low %v406_v25, %v410_v29  ;;  %v430_v2 = vld [vmem:[#allocation9 + $0x180] sm:$0xff]  ;;  %v431_v29 = vld [vmem:[#allocation9 + $0x188] sm:$0xff] }
 0x1c9   : > { %9028 = vst [vmem:[#allocation33_spill] sm:$0xff] %v6750_v60  ;;  %9031 = vst [vmem:[#allocation38_spill] sm:$0xff] %v6760_v39  ;;  %v418_v50 = vld [vmem:[#allocation9 + $0x120] sm:$0xff] }
 0x1ca   : > { %v1406_v61 = vadd.f32 %v4888_v31, %v1366_v40  ;;  %9026 = vst [vmem:[#allocation30_spill] sm:$0xff] %v6744_v46  ;;  %1747 = vmatpush1.bf16.msra.mxu0 %v6744_v46  ;;  %9030 = vst [vmem:[#allocation36_spill] sm:$0xff] %v6756_v37  ;;  %v414_v40 = vld [vmem:[#allocation9 + $0x100] sm:$0xff] }
 0x1cb   : > { %1748 = vmatprep.subr.bf16.mxu0 %v6750_v60  ;;  %v6772_v53 = vcombine.low %v414_v40, %v418_v50  ;;  %v434_v28 = vld [vmem:[#allocation9 + $0x1a0] sm:$0xff] }
 0x1cc   : > { %1411 = vmax.xlane.f32.xlu0 %v1406_v61 }
 0x1cd   : > { %9034 = vst [vmem:[#allocation42_spill] sm:$0xff] %v6772_v53 }
 0x1ce   : > { %1749 = vmatpush1.bf16.msra.mxu0 %v6756_v37 }
 0x219   : > { %v1176_v49 = vpop.xlane.xlu0 %1175 }
 0x21a   : > { %v6711_v57 = vsub.f32 %v1170_v42, %v1176_v49  ;;  %v6728_v42 = vcombine.high %v391_v45, %v395_v55  ;;  %v415_v49 = vld [vmem:[#allocation9 + $0x108] sm:$0xff] }
 0x21b   : > { %v6770_v58 = vcombine.high %v415_v49, %v419_v13  ;;  %v6774_v48 = vcombine.low %v415_v49, %v419_v13  ;;  %v427_v55 = vld [vmem:[#allocation9 + $0x168] sm:$0xff]  ;;  %v6797_v13 = vcombine.low %v430_v2, %v434_v28 }
 0x21c   : > { %9015 = vst [vmem:[#allocation19_spill] sm:$0xff] %v6711_v57  ;;  %v1178_v11 = vmul.f32 1.442695, %v6711_v57  ;;  %9021 = vst [vmem:[#allocation25_spill] sm:$0xff] %v6728_v42  ;;  %1785 = vmatprep.subr.bf16.mxu1 %v6728_v42  ;;  %v6782_v22 = vcombine.high %v423_v15, %v427_v55  ;;  %v6788_v35 = vcombine.low %v423_v15, %v427_v55  ;;  %v443_v49 = vld [vmem:[#allocation9 + $0x1e8] sm:$0xff]  ;;  %v384_v55 = vld [vmem:[#allocation9 + $0x10] sm:$0xff] }
 0x21d   : > { %1786 = vmatpush1.bf16.msra.mxu1 %v6736_v41  ;;  %9033 = vst [vmem:[#allocation41_spill] sm:$0xff] %v6770_v58  ;;  %9035 = vst [vmem:[#allocation43_spill] sm:$0xff] %v6774_v48  ;;  %v388_v57 = vld [vmem:[#allocation9 + $0x30] sm:$0xff] }
 0x21e   : > { %5645 = vpow2.f32 %v1178_v11  ;;  %1787 = vmatprep.subr.bf16.mxu1 %v6741_v16  ;;  %v6768_v11 = vcombine.high %v414_v40, %v418_v50  ;;  %9037 = vst [vmem:[#allocation53_spill] sm:$0xff] %v6782_v22  ;;  %9039 = vst [vmem:[#allocation55_spill] sm:$0xff] %v6788_v35  ;;  %v442_v40 = vld [vmem:[#allocation9 + $0x1e0] sm:$0xff]  ;;  %v439_v50 = vld [vmem:[#allocation9 + $0x1c8] sm:$0xff] }
 0x21f   : > { %9042 = vst [vmem:[#allocation58_spill] sm:$0xff] %v6797_v13  ;;  %v6806_v15 = vcombine.high %v439_v50, %v443_v49 }
 0x220   : > { %9032 = vst [vmem:[#allocation40_spill] sm:$0xff] %v6768_v11  ;;  %1750 = vmatprep.subr.bf16.mxu0 %v6768_v11 }
 0x221   : > { %1788 = vmatpush1.bf16.msra.mxu1 %v6748_v8  ;;  %1751 = vmatpush1.bf16.msra.mxu0 %v6772_v53  ;;  %9045 = vst [vmem:[#allocation61_spill] sm:$0xff] %v6806_v15 }
 0x222   : > { %1789 = vmatprep.subr.bf16.mxu1 %v6753_v36 }
 0x225   : > { %1790 = vmatpush1.bf16.msra.mxu1 %v6760_v39 }
 0x226   : > { %1791 = vmatprep.subr.bf16.mxu1 %v6770_v58 }
 0x228   : > { %v6714_v12 = vpop.eup %5645 }
 0x229   : > { %1180 = vadd.xlane.f32.xlu1 %v6714_v12  ;;  %1792 = vmatpush1.bf16.msra.mxu1 %v6774_v48 }
 0x22a   : > { %1793 = vmatprep.subr.bf16.mxu1 %v6782_v22 }
 0x22d   : > { %1794 = vmatpush1.bf16.msra.mxu1 %v6788_v35  ;;  %v413_v35 = vld [vmem:[#allocation9 + $0xf8] sm:$0xff] }
 0x259   : > { %v1412_v9 = vpop.xlane.xlu0 %1411 }
 0x25a   : > { %v1413_v31 = vsub.f32 %v1406_v61, %v1412_v9  ;;  %v426_v61 = vld [vmem:[#allocation9 + $0x160] sm:$0xff]  ;;  %v6790_v9 = vcombine.high %v430_v2, %v434_v28  ;;  %v6813_v28 = vcombine.low %v439_v50, %v443_v49 }
 0x25b   : > { %v6777_v45 = vcombine.high %v422_v56, %v426_v61  ;;  %v6784_v25 = vcombine.low %v422_v56, %v426_v61  ;;  %v6801_v56 = vcombine.low %v431_v29, %v435_v7 }
 0x25c   : > { %v1414_v62 = vmul.f32 1.442695, %v1413_v31  ;;  %9040 = vst [vmem:[#allocation56_spill] sm:$0xff] %v6790_v9  ;;  %v6793_v31 = vcombine.high %v431_v29, %v435_v7  ;;  %9047 = vst [vmem:[#allocation63_spill] sm:$0xff] %v6813_v28  ;;  %v6815_v29 = vcombine.high %v384_v55, %v388_v57  ;;  %v6818_v7 = vcombine.high %v385_v63, %v389_v20 }
 0x25d   : > { %9036 = vst [vmem:[#allocation44_spill] sm:$0xff] %v6777_v45  ;;  %9038 = vst [vmem:[#allocation54_spill] sm:$0xff] %v6784_v25  ;;  %1752 = vmatprep.subr.bf16.mxu0 %v6777_v45 }
 0x25e   : > { %5647 = vpow2.f32 %v1414_v62  ;;  %9041 = vst [vmem:[#allocation57_spill] sm:$0xff] %v6793_v31  ;;  %v438_v62 = vld [vmem:[#allocation9 + $0x1c0] sm:$0xff]  ;;  %1753 = vmatpush1.bf16.msra.mxu0 %v6784_v25  ;;  %9043 = vst [vmem:[#allocation59_spill] sm:$0xff] %v6801_v56  ;;  %1795 = vmatprep.subr.bf16.mxu1 %v6793_v31  ;;  %v401_v31 = vld [vmem:[#allocation9 + $0x98] sm:$0xff]  ;;  %v9060_v25 = vmov 0  }
 0x25f   : > { %1754 = vmatprep.subr.bf16.mxu0 %v6790_v9  ;;  %v6803_v61 = vcombine.high %v438_v62, %v442_v40  ;;  %v6809_v2 = vcombine.low %v438_v62, %v442_v40  ;;  %1796 = vmatpush1.bf16.msra.mxu1 %v6801_v56  ;;  %9048 = vst [vmem:[#allocation64_spill] sm:$0xff] %v6815_v29  ;;  %9049 = vst [vmem:[#allocation65_spill] sm:$0xff] %v6818_v7  ;;  %v396_v56 = vld [vmem:[#allocation9 + $0x70] sm:$0xff]  ;;  %v405_v9 = vld [vmem:[#allocation9 + $0xb8] sm:$0xff] }
 0x260   : > { %1797 = vmatprep.subr.bf16.mxu1 %v6806_v15  ;;  %v6824_v62 = vcombine.low %v384_v55, %v388_v57  ;;  %v6826_v40 = vcombine.low %v385_v63, %v389_v20  ;;  %v397_v57 = vld [vmem:[#allocation9 + $0x78] sm:$0xff] }
 0x261   : > { %9044 = vst [vmem:[#allocation60_spill] sm:$0xff] %v6803_v61  ;;  %9046 = vst [vmem:[#allocation62_spill] sm:$0xff] %v6809_v2 }
 0x262   : > { %1755 = vmatpush1.bf16.msra.mxu0 %v6797_v13  ;;  %9050 = vst [vmem:[#allocation66_spill] sm:$0xff] %v6824_v62  ;;  %9051 = vst [vmem:[#allocation67_spill] sm:$0xff] %v6826_v40  ;;  %v404_v13 = vld [vmem:[#allocation9 + $0xb0] sm:$0xff] }
 0x263   : > { %1756 = vmatprep.subr.bf16.mxu0 %v6803_v61  ;;  %1798 = vmatpush1.bf16.msra.mxu1 %v6813_v28 }
 0x264   : > { %1865 = vmatprep.subr.bf16.mxu1 %v6818_v7  ;;  %v393_v7 = vld [vmem:[#allocation9 + $0x58] sm:$0xff] }
 0x266   : > { %1757 = vmatpush1.bf16.msra.mxu0 %v6809_v2 }
 0x267   : > { %1824 = vmatprep.subr.bf16.mxu0 %v6815_v29  ;;  %v392_v29 = vld [vmem:[#allocation9 + $0x50] sm:$0xff] }
 0x268   : > { %v6765_v10 = vpop.eup %5647  ;;  %v6838_v55 = vcombine.high %v392_v29, %v396_v56 }
 0x269   : > { %1416 = vadd.xlane.f32.xlu1 %v6765_v10 }
 0x26a   : > { %9054 = vst [vmem:[#allocation70_spill] sm:$0xff] %v6838_v55 }
 0x2b6   : > { %v6828_v50 = vpop.xlane.xlu1 %1180 }
 0x2b7   : > { %9052 = vst [vmem:[#allocation68_spill] sm:$0xff] %v6828_v50  ;;  %5649 = vrcp.f32 %v6828_v50  ;;  %v6840_v50 = vcombine.high %v393_v7, %v397_v57 }
 0x2b9   : > { %9055 = vst [vmem:[#allocation71_spill] sm:$0xff] %v6840_v50 }
 0x2c1   : > { %v5650_v15 = vpop.eup %5649 }
 0x2c2   : > { %v6832_v2 = vmul.f32 %v5650_v15, %v6714_v12  ;;  %v6846_v12 = vcombine.low %v392_v29, %v396_v56  ;;  %v6854_v15 = vcombine.high %v401_v31, %v405_v9  ;;  %v6862_v29 = vcombine.low %v401_v31, %v405_v9 }
 0x2c4   : > { %9053 = vst [vmem:[#allocation69_spill] sm:$0xff] %v6832_v2  ;;  %9056 = vst [vmem:[#allocation72_spill] sm:$0xff] %v6846_v12 }
 0x2c5   : > { %9059 = vst [vmem:[#allocation75_spill] sm:$0xff] %v6854_v15  ;;  %9062 = vst [vmem:[#allocation77_spill] sm:$0xff] %v6862_v29 }
 0x2f6   : > { %v1417_v49 = vpop.xlane.xlu1 %1416 }
 0x2f7   : > { %5651 = vrcp.f32 %v1417_v49  ;;  %v400_v49 = vld [vmem:[#allocation9 + $0x90] sm:$0xff] }
 0x2f8   : > { %v6860_v56 = vcombine.low %v400_v49, %v404_v13 }
 0x2fa   : > { %9061 = vst [vmem:[#allocation76_spill] sm:$0xff] %v6860_v56 }
 0x301   : > { %v5652_v61 = vpop.eup %5651 }
 0x302   : > { %v1419_v28 = vmul.f32 %v5652_v61, %v6765_v10  ;;  %v6848_v10 = vcombine.low %v393_v7, %v397_v57  ;;  %v6852_v61 = vcombine.high %v400_v49, %v404_v13 }
 0x304   : > { %v1420_v63 = vsub.f32 %v1419_v28, %v6832_v2  ;;  %9057 = vst [vmem:[#allocation73_spill] sm:$0xff] %v6848_v10  ;;  %9058 = vst [vmem:[#allocation74_spill] sm:$0xff] %v6852_v61  ;;  %v408_v28 = vld [vmem:[#allocation9 + $0xd0] sm:$0xff]  ;;  %v409_v2 = vld [vmem:[#allocation9 + $0xd8] sm:$0xff] }
 0x305   : > { %v6868_v57 = vcombine.high %v409_v2, %v413_v35  ;;  %v6874_v9 = vcombine.low %v409_v2, %v413_v35 }
 0x306   : > { %v6836_v20 = vpack.c.bf16 %v1420_v63, %v1420_v63  ;;  %v412_v63 = vld [vmem:[#allocation9 + $0xf0] sm:$0xff] }
 0x307   : > { %v6866_v7 = vcombine.high %v408_v28, %v412_v63  ;;  %9064 = vst [vmem:[#allocation79_spill] sm:$0xff] %v6868_v57  ;;  %v6872_v13 = vcombine.low %v408_v28, %v412_v63  ;;  %9066 = vst [vmem:[#allocation81_spill] sm:$0xff] %v6874_v9 }
 0x308   : > { %1775 = vmatmul.mubr.bf16.vlgmr.msra.gmra.mrb[16].mxu0 %v6836_v20  ;;  %1816 = vmatmul.mubr.bf16.vlgmr.msra.gmra.mrb[16].mxu1 %v6836_v20 }
 0x309   : > { %1825 = vmatpush1.bf16.msra.mxu0 %v6824_v62  ;;  %1866 = vmatpush1.bf16.msra.mxu1 %v6826_v40  ;;  %9063 = vst [vmem:[#allocation78_spill] sm:$0xff] %v6866_v7  ;;  %v417_v40 = vld [vmem:[#allocation9 + $0x118] sm:$0xff]  ;;  %9065 = vst [vmem:[#allocation80_spill] sm:$0xff] %v6872_v13 }
 0x30a   : > { %1826 = vmatprep.subr.bf16.mxu0 %v6838_v55  ;;  %1867 = vmatprep.subr.bf16.mxu1 %v6840_v50  ;;  %v416_v50 = vld [vmem:[#allocation9 + $0x110] sm:$0xff]  ;;  %v421_v62 = vld [vmem:[#allocation9 + $0x138] sm:$0xff] }
 0x30b   : > { %1856 = vmatprep.mubr.bf16.mxu0 %v9060_v25  ;;  %1897 = vmatprep.mubr.bf16.mxu1 %v9060_v25  ;;  %v420_v55 = vld [vmem:[#allocation9 + $0x130] sm:$0xff]  ;;  %v6880_v49 = vcombine.high %v417_v40, %v421_v62  ;;  %v6886_v35 = vcombine.low %v417_v40, %v421_v62 }
 0x30c   : > { %v6878_v31 = vcombine.high %v416_v50, %v420_v55  ;;  %v6884_v28 = vcombine.low %v416_v50, %v420_v55 }
 0x30d   : > { %1827 = vmatpush1.bf16.msra.mxu0 %v6846_v12  ;;  %1868 = vmatpush1.bf16.msra.mxu1 %v6848_v10  ;;  %9068 = vst [vmem:[#allocation83_spill] sm:$0xff] %v6880_v49  ;;  %v425_v10 = vld [vmem:[#allocation9 + $0x158] sm:$0xff]  ;;  %9070 = vst [vmem:[#allocation85_spill] sm:$0xff] %v6886_v35 }
 0x30e   : > { %1828 = vmatprep.subr.bf16.mxu0 %v6852_v61  ;;  %1869 = vmatprep.subr.bf16.mxu1 %v6854_v15  ;;  %9067 = vst [vmem:[#allocation82_spill] sm:$0xff] %v6878_v31  ;;  %v424_v15 = vld [vmem:[#allocation9 + $0x150] sm:$0xff]  ;;  %v429_v12 = vld [vmem:[#allocation9 + $0x178] sm:$0xff]  ;;  %9069 = vst [vmem:[#allocation84_spill] sm:$0xff] %v6884_v28 }
 0x30f   : > { %v428_v61 = vld [vmem:[#allocation9 + $0x170] sm:$0xff]  ;;  %v6892_v63 = vcombine.high %v425_v10, %v429_v12  ;;  %v6898_v62 = vcombine.low %v425_v10, %v429_v12 }
 0x310   : > { %v6890_v2 = vcombine.high %v424_v15, %v428_v61  ;;  %v6896_v50 = vcombine.low %v424_v15, %v428_v61 }
 0x311   : > { %1829 = vmatpush1.bf16.msra.mxu0 %v6860_v56  ;;  %1870 = vmatpush1.bf16.msra.mxu1 %v6862_v29  ;;  %9072 = vst [vmem:[#allocation87_spill] sm:$0xff] %v6892_v63  ;;  %v433_v29 = vld [vmem:[#allocation9 + $0x198] sm:$0xff]  ;;  %9074 = vst [vmem:[#allocation89_spill] sm:$0xff] %v6898_v62 }
 0x312   : > { %1830 = vmatprep.subr.bf16.mxu0 %v6866_v7  ;;  %1871 = vmatprep.subr.bf16.mxu1 %v6868_v57  ;;  %9071 = vst [vmem:[#allocation86_spill] sm:$0xff] %v6890_v2  ;;  %v432_v57 = vld [vmem:[#allocation9 + $0x190] sm:$0xff]  ;;  %v437_v56 = vld [vmem:[#allocation9 + $0x1b8] sm:$0xff]  ;;  %9073 = vst [vmem:[#allocation88_spill] sm:$0xff] %v6896_v50 }
 0x313   : > { %v436_v7 = vld [vmem:[#allocation9 + $0x1b0] sm:$0xff]  ;;  %v6904_v55 = vcombine.high %v433_v29, %v437_v56  ;;  %v6910_v12 = vcombine.low %v433_v29, %v437_v56  ;;  %v6928_v56 = vld [vmem:[#allocation7 + $0x40] sm:$0xff]  }
 0x314   : > { %v6902_v40 = vcombine.high %v432_v57, %v436_v7  ;;  %v6908_v61 = vcombine.low %v432_v57, %v436_v7  ;;  %9083 = vst [vmem:[#allocation98_spill] sm:$0xff] %v6928_v56  ;;  %v6931_v29 = vld [vmem:[#allocation7 + $0xc0] sm:$0xff]  }
 0x315   : > { %1831 = vmatpush1.bf16.msra.mxu0 %v6872_v13  ;;  %1872 = vmatpush1.bf16.msra.mxu1 %v6874_v9  ;;  %9076 = vst [vmem:[#allocation91_spill] sm:$0xff] %v6904_v55  ;;  %v441_v9 = vld [vmem:[#allocation9 + $0x1d8] sm:$0xff]  ;;  %9078 = vst [vmem:[#allocation93_spill] sm:$0xff] %v6910_v12  ;;  %v6936_v7 = vld [vmem:[#allocation7] sm:$0xff]  }
 0x316   : > { %1832 = vmatprep.subr.bf16.mxu0 %v6878_v31  ;;  %1873 = vmatprep.subr.bf16.mxu1 %v6880_v49  ;;  %9075 = vst [vmem:[#allocation90_spill] sm:$0xff] %v6902_v40  ;;  %v440_v49 = vld [vmem:[#allocation9 + $0x1d0] sm:$0xff]  ;;  %v445_v13 = vld [vmem:[#allocation9 + $0x1f8] sm:$0xff]  ;;  %9077 = vst [vmem:[#allocation92_spill] sm:$0xff] %v6908_v61 }
 0x317   : > { %v444_v31 = vld [vmem:[#allocation9 + $0x1f0] sm:$0xff]  ;;  %v6916_v15 = vcombine.high %v441_v9, %v445_v13  ;;  %9084 = vst [vmem:[#allocation99_spill] sm:$0xff] %v6931_v29  ;;  %9085 = vst [vmem:[#allocation100_spill] sm:$0xff] %v6936_v7  ;;  %v6939_v57 = vld [vmem:[#allocation7 + $0x80] sm:$0xff]  }
 0x318   : > { %v6914_v10 = vcombine.high %v440_v49, %v444_v31  ;;  %9086 = vst [vmem:[#allocation101_spill] sm:$0xff] %v6939_v57 }
 0x319   : > { %1833 = vmatpush1.bf16.msra.mxu0 %v6884_v28  ;;  %1874 = vmatpush1.bf16.msra.mxu1 %v6886_v35  ;;  %9080 = vst [vmem:[#allocation95_spill] sm:$0xff] %v6916_v15 }
 0x31a   : > { %1834 = vmatprep.subr.bf16.mxu0 %v6890_v2  ;;  %1875 = vmatprep.subr.bf16.mxu1 %v6892_v63  ;;  %9079 = vst [vmem:[#allocation94_spill] sm:$0xff] %v6914_v10  ;;  %v6920_v63 = vcombine.low %v440_v49, %v444_v31  ;;  %v6948_v31 = vld [vmem:[#allocation7 + $0x8] sm:$0xff]   ;;  %v6954_v49 = vld [vmem:[#allocation7 + $0x50] sm:$0xff]  }
 0x31b   : > { %9089 = vst [vmem:[#allocation104_spill] sm:$0xff] %v6948_v31  ;;  %9091 = vst [vmem:[#allocation106_spill] sm:$0xff] %v6954_v49 }
 0x31c   : > { %9081 = vst [vmem:[#allocation96_spill] sm:$0xff] %v6920_v63 }
 0x31d   : > { %1835 = vmatpush1.bf16.msra.mxu0 %v6896_v50  ;;  %1876 = vmatpush1.bf16.msra.mxu1 %v6898_v62  ;;  %v6922_v50 = vcombine.low %v441_v9, %v445_v13  ;;  %v6942_v13 = vld [vmem:[#allocation7 + $0x48] sm:$0xff]  }
 0x31e   : > { %1836 = vmatprep.subr.bf16.mxu0 %v6902_v40  ;;  %1877 = vmatprep.subr.bf16.mxu1 %v6904_v55  ;;  %9087 = vst [vmem:[#allocation102_spill] sm:$0xff] %v6942_v13  ;;  %v6945_v9 = vld [vmem:[#allocation7 + $0xc8] sm:$0xff]  }
 0x31f   : > { %9082 = vst [vmem:[#allocation97_spill] sm:$0xff] %v6922_v50  ;;  %9088 = vst [vmem:[#allocation103_spill] sm:$0xff] %v6945_v9 }
 0x321   : > { %1837 = vmatpush1.bf16.msra.mxu0 %v6908_v61  ;;  %1878 = vmatpush1.bf16.msra.mxu1 %v6910_v12 }
 0x322   : > { %1838 = vmatprep.subr.bf16.mxu0 %v6914_v10  ;;  %1879 = vmatprep.subr.bf16.mxu1 %v6916_v15 }
 0x325   : > { %1839 = vmatpush1.bf16.msra.mxu0 %v6920_v63  ;;  %1880 = vmatpush1.bf16.msra.mxu1 %v6922_v50 }
 0x326   : > { %4892 = vmatprep.subr.bf16.mxu0 %v6928_v56  ;;  %4914 = vmatprep.subr.bf16.mxu1 %v6931_v29  ;;  %v8662_v56 = vmov -0.007843138  }
 0x328   : > { %1857 = vmatmul.mubr.bf16.vlgmr.msra.gmra.mrb[20].mxu0 %v6836_v20  ;;  %1898 = vmatmul.mubr.bf16.vlgmr.msra.gmra.mrb[20].mxu1 %v6836_v20  ;;  %v6951_v20 = vld [vmem:[#allocation7 + $0x88] sm:$0xff]  }
 0x329   : > { %4893 = vmatpush3.bf16.msra.mxu0 %v6936_v7  ;;  %4915 = vmatpush3.bf16.msra.mxu1 %v6939_v57  ;;  %9090 = vst [vmem:[#allocation105_spill] sm:$0xff] %v6951_v20  ;;  %v6957_v57 = vld [vmem:[#allocation7 + $0xd0] sm:$0xff]  }
 0x32a   : > { %4894 = vmatprep.subr.bf16.mxu0 %v6942_v13  ;;  %4916 = vmatprep.subr.bf16.mxu1 %v6945_v9  ;;  %9092 = vst [vmem:[#allocation107_spill] sm:$0xff] %v6957_v57  ;;  %v6960_v13 = vld [vmem:[#allocation7 + $0x10] sm:$0xff]  }
 0x32b   : > { %9093 = vst [vmem:[#allocation108_spill] sm:$0xff] %v6960_v13  ;;  %v6963_v9 = vld [vmem:[#allocation7 + $0x90] sm:$0xff]  }
 0x32c   : > { %9094 = vst [vmem:[#allocation109_spill] sm:$0xff] %v6963_v9 }
 0x32d   : > { %4895 = vmatpush3.bf16.msra.mxu0 %v6948_v31  ;;  %4917 = vmatpush3.bf16.msra.mxu1 %v6951_v20  ;;  %v6966_v31 = vld [vmem:[#allocation7 + $0x58] sm:$0xff]  }
 0x32e   : > { %4896 = vmatprep.subr.bf16.mxu0 %v6954_v49  ;;  %4918 = vmatprep.subr.bf16.mxu1 %v6957_v57  ;;  %9095 = vst [vmem:[#allocation110_spill] sm:$0xff] %v6966_v31  ;;  %v6969_v20 = vld [vmem:[#allocation7 + $0xd8] sm:$0xff]  }
 0x32f   : > { %9096 = vst [vmem:[#allocation111_spill] sm:$0xff] %v6969_v20  ;;  %v6972_v49 = vld [vmem:[#allocation7 + $0x18] sm:$0xff]  }
 0x330   : > { %9097 = vst [vmem:[#allocation112_spill] sm:$0xff] %v6972_v49  ;;  %v6975_v57 = vld [vmem:[#allocation7 + $0x98] sm:$0xff]  }
 0x331   : > { %4897 = vmatpush3.bf16.msra.mxu0 %v6960_v13  ;;  %4919 = vmatpush3.bf16.msra.mxu1 %v6963_v9  ;;  %9098 = vst [vmem:[#allocation113_spill] sm:$0xff] %v6975_v57  ;;  %v6978_v13 = vld [vmem:[#allocation7 + $0x60] sm:$0xff]  }
 0x332   : > { %4898 = vmatprep.subr.bf16.mxu0 %v6966_v31  ;;  %4920 = vmatprep.subr.bf16.mxu1 %v6969_v20  ;;  %9099 = vst [vmem:[#allocation114_spill] sm:$0xff] %v6978_v13  ;;  %v6981_v9 = vld [vmem:[#allocation7 + $0xe0] sm:$0xff]  }
 0x333   : > { %9100 = vst [vmem:[#allocation115_spill] sm:$0xff] %v6981_v9  ;;  %v6984_v31 = vld [vmem:[#allocation7 + $0x20] sm:$0xff]  }
 0x334   : > { %9101 = vst [vmem:[#allocation116_spill] sm:$0xff] %v6984_v31  ;;  %v6987_v20 = vld [vmem:[#allocation7 + $0xa0] sm:$0xff]  }
 0x335   : > { %4899 = vmatpush3.bf16.msra.mxu0 %v6972_v49  ;;  %4921 = vmatpush3.bf16.msra.mxu1 %v6975_v57  ;;  %9102 = vst [vmem:[#allocation117_spill] sm:$0xff] %v6987_v20  ;;  %v6990_v49 = vld [vmem:[#allocation7 + $0x68] sm:$0xff]  }
 0x336   : > { %4900 = vmatprep.subr.bf16.mxu0 %v6978_v13  ;;  %4922 = vmatprep.subr.bf16.mxu1 %v6981_v9  ;;  %9103 = vst [vmem:[#allocation118_spill] sm:$0xff] %v6990_v49  ;;  %v6993_v57 = vld [vmem:[#allocation7 + $0xe8] sm:$0xff]  }
 0x337   : > { %9104 = vst [vmem:[#allocation119_spill] sm:$0xff] %v6993_v57  ;;  %v6996_v13 = vld [vmem:[#allocation7 + $0x28] sm:$0xff]  }
 0x338   : > { %9105 = vst [vmem:[#allocation120_spill] sm:$0xff] %v6996_v13  ;;  %v6999_v9 = vld [vmem:[#allocation7 + $0xa8] sm:$0xff]  }
 0x339   : > { %4901 = vmatpush3.bf16.msra.mxu0 %v6984_v31  ;;  %4923 = vmatpush3.bf16.msra.mxu1 %v6987_v20  ;;  %9106 = vst [vmem:[#allocation121_spill] sm:$0xff] %v6999_v9  ;;  %v7002_v31 = vld [vmem:[#allocation7 + $0x70] sm:$0xff]  }
 0x33a   : > { %4902 = vmatprep.subr.bf16.mxu0 %v6990_v49  ;;  %4924 = vmatprep.subr.bf16.mxu1 %v6993_v57  ;;  %9107 = vst [vmem:[#allocation122_spill] sm:$0xff] %v7002_v31  ;;  %v7005_v20 = vld [vmem:[#allocation7 + $0xf0] sm:$0xff]  }
 0x33b   : > { %9108 = vst [vmem:[#allocation123_spill] sm:$0xff] %v7005_v20  ;;  %v7008_v49 = vld [vmem:[#allocation7 + $0x30] sm:$0xff]  }
 0x33c   : > { %9109 = vst [vmem:[#allocation124_spill] sm:$0xff] %v7008_v49  ;;  %v7011_v57 = vld [vmem:[#allocation7 + $0xb0] sm:$0xff]  }
 0x33d   : > { %4903 = vmatpush3.bf16.msra.mxu0 %v6996_v13  ;;  %4925 = vmatpush3.bf16.msra.mxu1 %v6999_v9  ;;  %9110 = vst [vmem:[#allocation125_spill] sm:$0xff] %v7011_v57  ;;  %v7014_v13 = vld [vmem:[#allocation7 + $0x78] sm:$0xff]  }
 0x33e   : > { %4904 = vmatprep.subr.bf16.mxu0 %v7002_v31  ;;  %4926 = vmatprep.subr.bf16.mxu1 %v7005_v20  ;;  %9111 = vst [vmem:[#allocation126_spill] sm:$0xff] %v7014_v13  ;;  %v7017_v9 = vld [vmem:[#allocation7 + $0xf8] sm:$0xff]  }
 0x33f   : > { %9112 = vst [vmem:[#allocation127_spill] sm:$0xff] %v7017_v9  ;;  %v7020_v31 = vld [vmem:[#allocation7 + $0x38] sm:$0xff]  }
 0x340   : > { %9113 = vst [vmem:[#allocation128_spill] sm:$0xff] %v7020_v31  ;;  %v7023_v20 = vld [vmem:[#allocation7 + $0xb8] sm:$0xff]  }
 0x341   : > { %4905 = vmatpush3.bf16.msra.mxu0 %v7008_v49  ;;  %4927 = vmatpush3.bf16.msra.mxu1 %v7011_v57  ;;  %9114 = vst [vmem:[#allocation129_spill] sm:$0xff] %v7023_v20  ;;  %v7026_v49 = vld [vmem:[#allocation7 + $0x140] sm:$0xff]  }
 0x342   : > { %4906 = vmatprep.subr.bf16.mxu0 %v7014_v13  ;;  %4928 = vmatprep.subr.bf16.mxu1 %v7017_v9  ;;  %9115 = vst [vmem:[#allocation130_spill] sm:$0xff] %v7026_v49  ;;  %v7029_v57 = vld [vmem:[#allocation7 + $0x1c0] sm:$0xff]  }
 0x343   : > { %9116 = vst [vmem:[#allocation131_spill] sm:$0xff] %v7029_v57 }
 0x345   : > { %4907 = vmatpush3.bf16.msra.mxu0 %v7020_v31  ;;  %4929 = vmatpush3.bf16.msra.mxu1 %v7023_v20 }
 0x346   : > { %4936 = vmatprep.subr.bf16.mxu0 %v7026_v49  ;;  %4958 = vmatprep.subr.bf16.mxu1 %v7029_v57 }
 0x3db   : > { %v1776_v13 = vpop.f32.mrb[16].mxu0  ;;  %v1817_v7 = vpop.f32.mrb[16].mxu1 }
 0x3dc   : > { %vm1906_vm0 = vcmp.ge.f32.partialorder %v1776_v13, 0.0  ;;  %vm1908_vm1 = vcmp.ge.f32.partialorder %v1817_v7, 0.0  ;;  %v1778_v9 = vpop.f32.mrb[17].mxu0  ;;  %v1819_v29 = vpop.f32.mrb[17].mxu1 }
 0x3dd   : > { %v1914_v31 = vsel %vm1906_vm0, 0.007843138, %v8662_v56  ;;  %v1916_v50 = vsel %vm1908_vm1, 0.007843138, %v8662_v56  ;;  %vm1907_vm2 = vcmp.ge.f32.partialorder %v1778_v9, 0.0  ;;  %vm1909_vm3 = vcmp.ge.f32.partialorder %v1819_v29, 0.0 }
 0x3de   : > { %v1922_v20 = vadd.f32 %v1914_v31, %v6616_v43  ;;  %v1924_v49 = vadd.f32 %v1916_v50, %v6619_v26  ;;  %v1915_v63 = vsel %vm1907_vm2, 0.007843138, %v8662_v56  ;;  %v1917_v57 = vsel %vm1909_vm3, 0.007843138, %v8662_v56  ;;  %v1780_v15 = vpop.f32.mrb[18].mxu0  ;;  %v1821_v13 = vpop.f32.mrb[18].mxu1 }
 0x3df   : > { %v1923_v7 = vadd.f32 %v1915_v63, %v6528_v23  ;;  %v1925_v10 = vadd.f32 %v1917_v57, %v6540_v33  ;;  %v1781_v12 = vpop.f32.mrb[19].mxu0  ;;  %v1822_v61 = vpop.f32.mrb[19].mxu1  ;;  %v9117_v9 = vld [vmem:[#allocation32_spill] sm:$0xff]  ;;  %v9118_v31 = vld [vmem:[#allocation34_spill] sm:$0xff]  ;;  %v9119_v13 = vld [vmem:[#allocation37_spill] sm:$0xff] }
 0x3e0   : > { %v1930_v55 = vmax.f32 %v6583_v0, %v1922_v20  ;;  %v1932_v29 = vmax.f32 %v6587_v14, %v1924_v49  ;;  %v9120_v33 = vld [vmem:[#allocation39_spill] sm:$0xff]  ;;  %v7064_v57 = vld [vmem:[#allocation7 + $0x100] sm:$0xff]   ;;  %v7070_v49 = vld [vmem:[#allocation7 + $0x148] sm:$0xff]  }
 0x3e1   : > { %v1931_v43 = vmax.f32 %v9117_v9, %v1923_v7  ;;  %v1933_v26 = vmax.f32 %v9118_v31, %v1925_v10  ;;  %9121 = vst [vmem:[#allocation132_spill] sm:$0xff] %v7064_v57  ;;  %v7067_v20 = vld [vmem:[#allocation7 + $0x180] sm:$0xff]   ;;  %9123 = vst [vmem:[#allocation134_spill] sm:$0xff] %v7070_v49  ;;  %v7073_v7 = vld [vmem:[#allocation7 + $0x1c8] sm:$0xff]  }
 0x3e2   : > { %v7045_v50 = vmin.f32 %v6592_v51, %v1930_v55  ;;  %v7048_v15 = vmin.f32 %v6594_v38, %v1932_v29  ;;  %9122 = vst [vmem:[#allocation133_spill] sm:$0xff] %v7067_v20  ;;  %9124 = vst [vmem:[#allocation135_spill] sm:$0xff] %v7073_v7  ;;  %v7076_v29 = vld [vmem:[#allocation7 + $0x108] sm:$0xff]   ;;  %v7097_v56 = vld [vmem:[#allocation7 + $0x1d8] sm:$0xff]  }
 0x3e3   : > { %v7051_v23 = vmin.f32 %v9119_v13, %v1931_v43  ;;  %v7054_v63 = vmin.f32 %v9120_v33, %v1933_v26  ;;  %9125 = vst [vmem:[#allocation136_spill] sm:$0xff] %v7076_v29  ;;  %v7079_v43 = vld [vmem:[#allocation7 + $0x188] sm:$0xff]   ;;  %v7082_v26 = vld [vmem:[#allocation7 + $0x150] sm:$0xff]   ;;  %9132 = vst [vmem:[#allocation143_spill] sm:$0xff] %v7097_v56 }
 0x3e4   : > { %v1946_v10 = vpack.c.bf16 %v7045_v50, %v7045_v50  ;;  %v1948_v55 = vpack.c.bf16 %v7048_v15, %v7048_v15  ;;  %9126 = vst [vmem:[#allocation137_spill] sm:$0xff] %v7079_v43  ;;  %9127 = vst [vmem:[#allocation138_spill] sm:$0xff] %v7082_v26  ;;  %v7148_v13 = vld [vmem:[#allocation7 + $0x130] sm:$0xff]  }
 0x3e5   : > { %v1947_v61 = vpack.c.bf16 %v7051_v23, %v7051_v23  ;;  %v1949_v12 = vpack.c.bf16 %v7054_v63, %v7054_v63 }
 0x3e7   : > { %1986 = vmatprep.mubr.bf16.mxu0 %v1947_v61  ;;  %2026 = vmatprep.mubr.bf16.mxu1 %v1949_v12  ;;  %v7085_v61 = vld [vmem:[#allocation7 + $0x1d0] sm:$0xff]  }
 0x3e8   : > { %1987 = vmatmul.mubr.bf16.vlgmr.msra.gmra.mrb[24].mxu0 %v1946_v10  ;;  %2027 = vmatmul.mubr.bf16.vlgmr.msra.gmra.mrb[24].mxu1 %v1948_v55  ;;  %9128 = vst [vmem:[#allocation139_spill] sm:$0xff] %v7085_v61  ;;  %v7088_v12 = vld [vmem:[#allocation7 + $0x110] sm:$0xff]   ;;  %v7094_v55 = vld [vmem:[#allocation7 + $0x158] sm:$0xff]  }
 0x3e9   : > { %4937 = vmatpush3.bf16.msra.mxu0 %v7064_v57  ;;  %4959 = vmatpush3.bf16.msra.mxu1 %v7067_v20  ;;  %9129 = vst [vmem:[#allocation140_spill] sm:$0xff] %v7088_v12  ;;  %v7091_v10 = vld [vmem:[#allocation7 + $0x190] sm:$0xff]   ;;  %9131 = vst [vmem:[#allocation142_spill] sm:$0xff] %v7094_v55 }
 0x3ea   : > { %4938 = vmatprep.subr.bf16.mxu0 %v7070_v49  ;;  %4960 = vmatprep.subr.bf16.mxu1 %v7073_v7  ;;  %9130 = vst [vmem:[#allocation141_spill] sm:$0xff] %v7091_v10  ;;  %v9141_v7 = vmov -0.007843138  }
 0x3ed   : > { %4939 = vmatpush3.bf16.msra.mxu0 %v7076_v29  ;;  %4961 = vmatpush3.bf16.msra.mxu1 %v7079_v43 }
 0x3ee   : > { %4940 = vmatprep.subr.bf16.mxu0 %v7082_v26  ;;  %4962 = vmatprep.subr.bf16.mxu1 %v7085_v61  ;;  %v7100_v26 = vld [vmem:[#allocation7 + $0x118] sm:$0xff]  }
 0x3ef   : > { %9133 = vst [vmem:[#allocation144_spill] sm:$0xff] %v7100_v26  ;;  %v7103_v61 = vld [vmem:[#allocation7 + $0x198] sm:$0xff]  }
 0x3f0   : > { %9134 = vst [vmem:[#allocation145_spill] sm:$0xff] %v7103_v61 }
 0x3f1   : > { %4941 = vmatpush3.bf16.msra.mxu0 %v7088_v12  ;;  %4963 = vmatpush3.bf16.msra.mxu1 %v7091_v10  ;;  %v7106_v12 = vld [vmem:[#allocation7 + $0x160] sm:$0xff]  }
 0x3f2   : > { %4942 = vmatprep.subr.bf16.mxu0 %v7094_v55  ;;  %4964 = vmatprep.subr.bf16.mxu1 %v7097_v56  ;;  %9135 = vst [vmem:[#allocation146_spill] sm:$0xff] %v7106_v12  ;;  %v7109_v10 = vld [vmem:[#allocation7 + $0x1e0] sm:$0xff]  }
 0x3f3   : > { %9136 = vst [vmem:[#allocation147_spill] sm:$0xff] %v7109_v10  ;;  %v7112_v55 = vld [vmem:[#allocation7 + $0x120] sm:$0xff]  }
 0x3f4   : > { %9137 = vst [vmem:[#allocation148_spill] sm:$0xff] %v7112_v55  ;;  %v7115_v56 = vld [vmem:[#allocation7 + $0x1a0] sm:$0xff]  }
 0x3f5   : > { %4943 = vmatpush3.bf16.msra.mxu0 %v7100_v26  ;;  %4965 = vmatpush3.bf16.msra.mxu1 %v7103_v61  ;;  %9138 = vst [vmem:[#allocation149_spill] sm:$0xff] %v7115_v56  ;;  %v7118_v26 = vld [vmem:[#allocation7 + $0x168] sm:$0xff]  }
 0x3f6   : > { %4944 = vmatprep.subr.bf16.mxu0 %v7106_v12  ;;  %4966 = vmatprep.subr.bf16.mxu1 %v7109_v10  ;;  %9139 = vst [vmem:[#allocation150_spill] sm:$0xff] %v7118_v26  ;;  %v7121_v61 = vld [vmem:[#allocation7 + $0x1e8] sm:$0xff]  }
 0x3f7   : > { %9140 = vst [vmem:[#allocation151_spill] sm:$0xff] %v7121_v61 }
 0x3f9   : > { %4945 = vmatpush3.bf16.msra.mxu0 %v7112_v55  ;;  %4967 = vmatpush3.bf16.msra.mxu1 %v7115_v56  ;;  %v7126_v56 = vld [vmem:[#allocation7 + $0x128] sm:$0xff]  }
 0x3fa   : > { %4946 = vmatprep.subr.bf16.mxu0 %v7118_v26  ;;  %4968 = vmatprep.subr.bf16.mxu1 %v7121_v61  ;;  %9142 = vst [vmem:[#allocation152_spill] sm:$0xff] %v7126_v56  ;;  %v7129_v26 = vld [vmem:[#allocation7 + $0x1a8] sm:$0xff]  }
 0x3fb   : > { %v1858_v12 = vpop.f32.mrb[20].mxu0  ;;  %v1899_v43 = vpop.f32.mrb[20].mxu1  ;;  %9143 = vst [vmem:[#allocation153_spill] sm:$0xff] %v7129_v26 }
 0x3fc   : > { %vm1910_vm4 = vcmp.ge.f32.partialorder %v1858_v12, 0.0  ;;  %vm1912_vm5 = vcmp.ge.f32.partialorder %v1899_v43, 0.0  ;;  %v1860_v10 = vpop.f32.mrb[21].mxu0  ;;  %v1901_v29 = vpop.f32.mrb[21].mxu1 }
 0x3fd   : > { %v1918_v55 = vsel %vm1910_vm4, 0.007843138, %v9141_v7  ;;  %v1920_v49 = vsel %vm1912_vm5, 0.007843138, %v9141_v7  ;;  %vm1911_vm6 = vcmp.ge.f32.partialorder %v1860_v10, 0.0  ;;  %vm1913_vm7 = vcmp.ge.f32.partialorder %v1901_v29, 0.0  ;;  %4947 = vmatpush3.bf16.msra.mxu0 %v7126_v56  ;;  %4969 = vmatpush3.bf16.msra.mxu1 %v7129_v26 }
 0x3fe   : > { %v1926_v61 = vadd.f32 %v1918_v55, %v6689_v47  ;;  %v1928_v43 = vadd.f32 %v1920_v49, %v6693_v32  ;;  %v1919_v12 = vsel %vm1911_vm6, 0.007843138, %v9141_v7  ;;  %v1921_v20 = vsel %vm1913_vm7, 0.007843138, %v9141_v7  ;;  %v1862_v57 = vpop.f32.mrb[22].mxu0  ;;  %v1903_v33 = vpop.f32.mrb[22].mxu1 }
 0x3ff   : > { %v7136_v10 = vld [vmem:[#allocation7 + $0x170] sm:$0xff]   ;;  %v1927_v26 = vadd.f32 %v1919_v12, %v6630_v30  ;;  %v1929_v47 = vadd.f32 %v1921_v20, %v6639_v34  ;;  %v1863_v55 = vpop.f32.mrb[23].mxu0  ;;  %v1904_v32 = vpop.f32.mrb[23].mxu1  ;;  %v7160_v20 = vld [vmem:[#allocation7 + $0x178] sm:$0xff]  }
 0x400   : > { %9144 = vst [vmem:[#allocation154_spill] sm:$0xff] %v7136_v10  ;;  %4948 = vmatprep.subr.bf16.mxu0 %v7136_v10  ;;  %v7139_v29 = vld [vmem:[#allocation7 + $0x1f0] sm:$0xff]   ;;  %v1934_v49 = vmax.f32 %v6666_v19, %v1926_v61  ;;  %v1936_v56 = vmax.f32 %v6670_v3, %v1928_v43  ;;  %v7172_v12 = vld [vmem:[#allocation7 + $0x138] sm:$0xff]  }
 0x401   : > { %4970 = vmatprep.subr.bf16.mxu1 %v7139_v29  ;;  %v1935_v33 = vmax.f32 %v6604_v4, %v1927_v26  ;;  %v1937_v57 = vmax.f32 %v6611_v54, %v1929_v47  ;;  %4949 = vmatpush3.bf16.msra.mxu0 %v7148_v13  ;;  %v7151_v10 = vld [vmem:[#allocation7 + $0x1b0] sm:$0xff]   ;;  %v7163_v26 = vld [vmem:[#allocation7 + $0x1f8] sm:$0xff]   ;;  %9146 = vst [vmem:[#allocation156_spill] sm:$0xff] %v7172_v12 }
 0x402   : > { %4971 = vmatpush3.bf16.msra.mxu1 %v7151_v10  ;;  %v7155_v30 = vmin.f32 %v6678_v21, %v1934_v49  ;;  %v7158_v34 = vmin.f32 %v6681_v27, %v1936_v56  ;;  %4950 = vmatprep.subr.bf16.mxu0 %v7160_v20  ;;  %9145 = vst [vmem:[#allocation155_spill] sm:$0xff] %v7163_v26  ;;  %v7175_v56 = vld [vmem:[#allocation7 + $0x1b8] sm:$0xff]  }
 0x403   : > { %4972 = vmatprep.subr.bf16.mxu1 %v7163_v26  ;;  %v7167_v61 = vmin.f32 %v6609_v24, %v1935_v33  ;;  %v7170_v43 = vmin.f32 %v6621_v6, %v1937_v57  ;;  %9147 = vst [vmem:[#allocation157_spill] sm:$0xff] %v7175_v56  ;;  %v9148_v33 = vld [vmem:[#allocation54_spill] sm:$0xff]  ;;  %v9149_v57 = vld [vmem:[#allocation55_spill] sm:$0xff] }
 0x404   : > { %v1950_v32 = vpack.c.bf16 %v7155_v30, %v7155_v30  ;;  %v1952_v49 = vpack.c.bf16 %v7158_v34, %v7158_v34 }
 0x405   : > { %4951 = vmatpush3.bf16.msra.mxu0 %v7172_v12  ;;  %v1951_v47 = vpack.c.bf16 %v7167_v61, %v7167_v61  ;;  %v1953_v55 = vpack.c.bf16 %v7170_v43, %v7170_v43 }
 0x406   : > { %4973 = vmatpush3.bf16.msra.mxu1 %v7175_v56  ;;  %2125 = vmatprep.subr.bf16.mxu0 %v6717_v44 }
 0x407   : > { %2166 = vmatprep.subr.bf16.mxu1 %v6721_v1  ;;  %2066 = vmatprep.mubr.bf16.mxu0 %v1951_v47  ;;  %v9150_v47 = vld [vmem:[#allocation56_spill] sm:$0xff] }
 0x408   : > { %2106 = vmatprep.mubr.bf16.mxu1 %v1953_v55  ;;  %2067 = vmatmul.mubr.bf16.vlgmr.msra.gmra.mrb[28].mxu0 %v1950_v32  ;;  %v9151_v55 = vld [vmem:[#allocation57_spill] sm:$0xff]  ;;  %v9152_v32 = vld [vmem:[#allocation58_spill] sm:$0xff] }
 0x409   : > { %2107 = vmatmul.mubr.bf16.vlgmr.msra.gmra.mrb[28].mxu1 %v1952_v49  ;;  %2126 = vmatpush1.bf16.msra.mxu0 %v6719_v59  ;;  %v9153_v49 = vld [vmem:[#allocation59_spill] sm:$0xff] }
 0x40a   : > { %2167 = vmatpush1.bf16.msra.mxu1 %v6723_v17  ;;  %2127 = vmatprep.subr.bf16.mxu0 %v6725_v18 }
 0x40b   : > { %2168 = vmatprep.subr.bf16.mxu1 %v6728_v42  ;;  %2157 = vmatprep.mubr.bf16.mxu0 %v9060_v25 }
 0x40c   : > { %2198 = vmatprep.mubr.bf16.mxu1 %v9060_v25 }
 0x40d   : > { %2128 = vmatpush1.bf16.msra.mxu0 %v6732_v5 }
 0x40e   : > { %2169 = vmatpush1.bf16.msra.mxu1 %v6736_v41  ;;  %2129 = vmatprep.subr.bf16.mxu0 %v6738_v52 }
 0x40f   : > { %2170 = vmatprep.subr.bf16.mxu1 %v6741_v16 }
 0x411   : > { %2130 = vmatpush1.bf16.msra.mxu0 %v6744_v46 }
 0x412   : > { %2171 = vmatpush1.bf16.msra.mxu1 %v6748_v8  ;;  %2131 = vmatprep.subr.bf16.mxu0 %v6750_v60  ;;  %v9160_v60 = vld [vmem:[#allocation18_spill] sm:$0xff] }
 0x413   : > { %2172 = vmatprep.subr.bf16.mxu1 %v6753_v36 }
 0x415   : > { %2132 = vmatpush1.bf16.msra.mxu0 %v6756_v37 }
 0x416   : > { %2173 = vmatpush1.bf16.msra.mxu1 %v6760_v39  ;;  %2133 = vmatprep.subr.bf16.mxu0 %v6768_v11 }
 0x417   : > { %2174 = vmatprep.subr.bf16.mxu1 %v6770_v58  ;;  %v9154_v58 = vld [vmem:[#allocation60_spill] sm:$0xff] }
 0x419   : > { %2134 = vmatpush1.bf16.msra.mxu0 %v6772_v53  ;;  %v9155_v53 = vld [vmem:[#allocation61_spill] sm:$0xff] }
 0x41a   : > { %2175 = vmatpush1.bf16.msra.mxu1 %v6774_v48  ;;  %2135 = vmatprep.subr.bf16.mxu0 %v6777_v45  ;;  %v9156_v48 = vld [vmem:[#allocation62_spill] sm:$0xff]  ;;  %v9157_v45 = vld [vmem:[#allocation63_spill] sm:$0xff] }
 0x41b   : > { %2176 = vmatprep.subr.bf16.mxu1 %v6782_v22  ;;  %v9158_v22 = vld [vmem:[#allocation64_spill] sm:$0xff] }
 0x41d   : > { %2136 = vmatpush1.bf16.msra.mxu0 %v9148_v33  ;;  %v9159_v33 = vld [vmem:[#allocation65_spill] sm:$0xff] }
 0x41e   : > { %2177 = vmatpush1.bf16.msra.mxu1 %v9149_v57  ;;  %2137 = vmatprep.subr.bf16.mxu0 %v9150_v47 }
 0x41f   : > { %2178 = vmatprep.subr.bf16.mxu1 %v9151_v55 }
 0x421   : > { %2138 = vmatpush1.bf16.msra.mxu0 %v9152_v32 }
 0x422   : > { %2179 = vmatpush1.bf16.msra.mxu1 %v9153_v49  ;;  %2139 = vmatprep.subr.bf16.mxu0 %v9154_v58 }
 0x423   : > { %2180 = vmatprep.subr.bf16.mxu1 %v9155_v53 }
 0x425   : > { %2140 = vmatpush1.bf16.msra.mxu0 %v9156_v48 }
 0x426   : > { %2181 = vmatpush1.bf16.msra.mxu1 %v9157_v45  ;;  %2207 = vmatprep.subr.bf16.mxu0 %v9158_v22 }
 0x427   : > { %2248 = vmatprep.subr.bf16.mxu1 %v9159_v33 }
 0x4bb   : > { %v4908_v57 = vpop.f32.mrb[24].mxu0  ;;  %v4930_v47 = vpop.f32.mrb[24].mxu1 }
 0x4bc   : > { %v4909_v11 = vpop.f32.mrb[25].mxu0  ;;  %v4931_v55 = vpop.f32.mrb[25].mxu1 }
 0x4bd   : > { %v4910_v39 = vadd.f32 %v4909_v11, %v4908_v57  ;;  %v4932_v32 = vadd.f32 %v4931_v55, %v4930_v47  ;;  %v4911_v37 = vpop.f32.mrb[26].mxu0  ;;  %v4933_v49 = vpop.f32.mrb[26].mxu1  ;;  %v9161_v47 = vld [vmem:[#allocation69_spill] sm:$0xff]  ;;  %v9172_v55 = vld [vmem:[#allocation78_spill] sm:$0xff] }
 0x4be   : > { %v4912_v36 = vpop.f32.mrb[27].mxu0  ;;  %v4934_v58 = vpop.f32.mrb[27].mxu1  ;;  %v9174_v49 = vld [vmem:[#allocation80_spill] sm:$0xff] }
 0x4bf   : > { %v1989_v53 = vadd.f32 %v4910_v39, %v9160_v60 }
 0x4c1   : > { %v2029_v8 = vadd.f32 %v4932_v32, %v1989_v53  ;;  %v9173_v32 = vld [vmem:[#allocation79_spill] sm:$0xff] }
 0x4db   : > { %v4952_v48 = vpop.f32.mrb[28].mxu0 }
 0x4dc   : > { %v4974_v46 = vpop.f32.mrb[28].mxu1  ;;  %v4953_v45 = vpop.f32.mrb[29].mxu0 }
 0x4dd   : > { %v4975_v16 = vpop.f32.mrb[29].mxu1  ;;  %v4954_v22 = vadd.f32 %v4953_v45, %v4952_v48  ;;  %v4955_v33 = vpop.f32.mrb[30].mxu0  ;;  %v9169_v45 = vld [vmem:[#allocation75_spill] sm:$0xff] }
 0x4de   : > { %v4976_v52 = vadd.f32 %v4975_v16, %v4974_v46  ;;  %v4977_v41 = vpop.f32.mrb[30].mxu1  ;;  %v4956_v5 = vpop.f32.mrb[31].mxu0  ;;  %v9167_v46 = vld [vmem:[#allocation73_spill] sm:$0xff] }
 0x4df   : > { %v4978_v42 = vpop.f32.mrb[31].mxu1  ;;  %v2069_v18 = vadd.f32 %v4954_v22, %v2029_v8  ;;  %v9162_v5 = vld [vmem:[#allocation66_spill] sm:$0xff]  ;;  %v9165_v41 = vld [vmem:[#allocation71_spill] sm:$0xff]  ;;  %v9170_v22 = vld [vmem:[#allocation76_spill] sm:$0xff] }
 0x4e0   : > { %v9163_v42 = vld [vmem:[#allocation67_spill] sm:$0xff]  ;;  %v9168_v8 = vld [vmem:[#allocation74_spill] sm:$0xff]  ;;  %v9171_v33 = vld [vmem:[#allocation77_spill] sm:$0xff] }
 0x4e1   : > { %v2109_v11 = vadd.f32 %v4976_v52, %v2069_v18  ;;  %v9164_v18 = vld [vmem:[#allocation70_spill] sm:$0xff]  ;;  %v9166_v52 = vld [vmem:[#allocation72_spill] sm:$0xff] }
 0x4e3   : > { %2114 = vmax.xlane.f32.xlu0 %v2109_v11 }
 0x570   : > { %v2115_v37 = vpop.xlane.xlu0 %2114 }
 0x571   : > { %v2116_v57 = vsub.f32 %v2109_v11, %v2115_v37  ;;  %v9175_v11 = vld [vmem:[#allocation81_spill] sm:$0xff]  ;;  %v9176_v37 = vld [vmem:[#allocation82_spill] sm:$0xff] }
 0x573   : > { %v2117_v36 = vmul.f32 1.442695, %v2116_v57  ;;  %v9177_v57 = vld [vmem:[#allocation83_spill] sm:$0xff] }
 0x575   : > { %5653 = vpow2.f32 %v2117_v36  ;;  %v9178_v36 = vld [vmem:[#allocation87_spill] sm:$0xff] }
 0x57f   : > { %v5654_v58 = vpop.eup %5653 }
 0x580   : > { %2119 = vadd.xlane.f32.xlu1 %v5654_v58 }
 0x60d   : > { %v2120_v60 = vpop.xlane.xlu1 %2119 }
 0x60e   : > { %5655 = vrcp.f32 %v2120_v60  ;;  %v9180_v60 = vld [vmem:[#allocation91_spill] sm:$0xff] }
 0x618   : > { %v5656_v39 = vpop.eup %5655 }
 0x619   : > { %v2122_v53 = vmul.f32 %v5656_v39, %v5654_v58  ;;  %v9179_v58 = vld [vmem:[#allocation88_spill] sm:$0xff] }
 0x61a   : > { %v9181_v39 = vld [vmem:[#allocation92_spill] sm:$0xff] }
 0x61b   : > { %v2123_v48 = vsub.f32 %v2122_v53, %v9161_v47  ;;  %v9182_v53 = vld [vmem:[#allocation93_spill] sm:$0xff] }
 0x61d   : > { %v2124_v16 = vpack.c.bf16 %v2123_v48, %v2123_v48  ;;  %v9183_v48 = vld [vmem:[#allocation94_spill] sm:$0xff] }
 0x61f   : > { %2158 = vmatmul.mubr.bf16.vlgmr.msra.gmra.mrb[32].mxu0 %v2124_v16  ;;  %2199 = vmatmul.mubr.bf16.vlgmr.msra.gmra.mrb[32].mxu1 %v2124_v16 }
 0x620   : > { %2208 = vmatpush1.bf16.msra.mxu0 %v9162_v5  ;;  %2249 = vmatpush1.bf16.msra.mxu1 %v9163_v42 }
 0x621   : > { %2209 = vmatprep.subr.bf16.mxu0 %v9164_v18  ;;  %2250 = vmatprep.subr.bf16.mxu1 %v9165_v41 }
 0x622   : > { %2239 = vmatprep.mubr.bf16.mxu0 %v9060_v25  ;;  %2280 = vmatprep.mubr.bf16.mxu1 %v9060_v25 }
 0x624   : > { %2210 = vmatpush1.bf16.msra.mxu0 %v9166_v52  ;;  %2251 = vmatpush1.bf16.msra.mxu1 %v9167_v46 }
 0x625   : > { %2211 = vmatprep.subr.bf16.mxu0 %v9168_v8  ;;  %2252 = vmatprep.subr.bf16.mxu1 %v9169_v45 }
 0x628   : > { %2212 = vmatpush1.bf16.msra.mxu0 %v9170_v22  ;;  %2253 = vmatpush1.bf16.msra.mxu1 %v9171_v33 }
 0x629   : > { %2213 = vmatprep.subr.bf16.mxu0 %v9172_v55  ;;  %2254 = vmatprep.subr.bf16.mxu1 %v9173_v32 }
 0x62c   : > { %2214 = vmatpush1.bf16.msra.mxu0 %v9174_v49  ;;  %2255 = vmatpush1.bf16.msra.mxu1 %v9175_v11 }
 0x62d   : > { %2215 = vmatprep.subr.bf16.mxu0 %v9176_v37  ;;  %2256 = vmatprep.subr.bf16.mxu1 %v9177_v57 }
 0x630   : > { %2216 = vmatpush1.bf16.msra.mxu0 %v6884_v28  ;;  %2257 = vmatpush1.bf16.msra.mxu1 %v6886_v35  ;;  %v9184_v28 = vld [vmem:[#allocation95_spill] sm:$0xff]  ;;  %v9185_v35 = vld [vmem:[#allocation96_spill] sm:$0xff] }
 0x631   : > { %2217 = vmatprep.subr.bf16.mxu0 %v6890_v2  ;;  %2258 = vmatprep.subr.bf16.mxu1 %v9178_v36  ;;  %v9186_v2 = vld [vmem:[#allocation97_spill] sm:$0xff]  ;;  %v9187_v36 = vld [vmem:[#allocation98_spill] sm:$0xff] }
 0x634   : > { %2218 = vmatpush1.bf16.msra.mxu0 %v9179_v58  ;;  %2259 = vmatpush1.bf16.msra.mxu1 %v6898_v62  ;;  %v9188_v58 = vld [vmem:[#allocation99_spill] sm:$0xff] }
 0x635   : > { %2219 = vmatprep.subr.bf16.mxu0 %v6902_v40  ;;  %2260 = vmatprep.subr.bf16.mxu1 %v9180_v60  ;;  %v9189_v40 = vld [vmem:[#allocation100_spill] sm:$0xff]  ;;  %v9190_v60 = vld [vmem:[#allocation101_spill] sm:$0xff] }
 0x638   : > { %2220 = vmatpush1.bf16.msra.mxu0 %v9181_v39  ;;  %2261 = vmatpush1.bf16.msra.mxu1 %v9182_v53  ;;  %v9191_v39 = vld [vmem:[#allocation102_spill] sm:$0xff]  ;;  %v9192_v53 = vld [vmem:[#allocation103_spill] sm:$0xff] }
 0x639   : > { %2221 = vmatprep.subr.bf16.mxu0 %v9183_v48  ;;  %2262 = vmatprep.subr.bf16.mxu1 %v9184_v28  ;;  %v9193_v48 = vld [vmem:[#allocation104_spill] sm:$0xff]  ;;  %v9194_v28 = vld [vmem:[#allocation105_spill] sm:$0xff] }
 0x63c   : > { %2222 = vmatpush1.bf16.msra.mxu0 %v9185_v35  ;;  %2263 = vmatpush1.bf16.msra.mxu1 %v9186_v2  ;;  %v9195_v35 = vld [vmem:[#allocation106_spill] sm:$0xff]  ;;  %v9196_v2 = vld [vmem:[#allocation107_spill] sm:$0xff] }
 0x63d   : > { %4980 = vmatprep.subr.bf16.mxu0 %v9187_v36  ;;  %5002 = vmatprep.subr.bf16.mxu1 %v9188_v58  ;;  %v9197_v36 = vld [vmem:[#allocation108_spill] sm:$0xff]  ;;  %v9198_v58 = vld [vmem:[#allocation109_spill] sm:$0xff] }
 0x63f   : > { %2240 = vmatmul.mubr.bf16.vlgmr.msra.gmra.mrb[36].mxu0 %v2124_v16  ;;  %2281 = vmatmul.mubr.bf16.vlgmr.msra.gmra.mrb[36].mxu1 %v2124_v16  ;;  %v9199_v16 = vld [vmem:[#allocation110_spill] sm:$0xff] }
 0x640   : > { %4981 = vmatpush3.bf16.msra.mxu0 %v9189_v40  ;;  %5003 = vmatpush3.bf16.msra.mxu1 %v9190_v60  ;;  %v9200_v40 = vld [vmem:[#allocation111_spill] sm:$0xff]  ;;  %v9201_v60 = vld [vmem:[#allocation112_spill] sm:$0xff] }
 0x641   : > { %4982 = vmatprep.subr.bf16.mxu0 %v9191_v39  ;;  %5004 = vmatprep.subr.bf16.mxu1 %v9192_v53  ;;  %v9202_v39 = vld [vmem:[#allocation113_spill] sm:$0xff]  ;;  %v9203_v53 = vld [vmem:[#allocation114_spill] sm:$0xff] }
 0x644   : > { %4983 = vmatpush3.bf16.msra.mxu0 %v9193_v48  ;;  %5005 = vmatpush3.bf16.msra.mxu1 %v9194_v28  ;;  %v9204_v48 = vld [vmem:[#allocation115_spill] sm:$0xff]  ;;  %v9205_v28 = vld [vmem:[#allocation116_spill] sm:$0xff] }
 0x645   : > { %4984 = vmatprep.subr.bf16.mxu0 %v9195_v35  ;;  %5006 = vmatprep.subr.bf16.mxu1 %v9196_v2  ;;  %v9206_v35 = vld [vmem:[#allocation117_spill] sm:$0xff]  ;;  %v9207_v2 = vld [vmem:[#allocation118_spill] sm:$0xff] }
 0x648   : > { %4985 = vmatpush3.bf16.msra.mxu0 %v9197_v36  ;;  %5007 = vmatpush3.bf16.msra.mxu1 %v9198_v58  ;;  %v9208_v36 = vld [vmem:[#allocation119_spill] sm:$0xff]  ;;  %v9209_v58 = vld [vmem:[#allocation120_spill] sm:$0xff] }
 0x649   : > { %4986 = vmatprep.subr.bf16.mxu0 %v9199_v16  ;;  %5008 = vmatprep.subr.bf16.mxu1 %v9200_v40  ;;  %v9210_v16 = vld [vmem:[#allocation121_spill] sm:$0xff]  ;;  %v9211_v40 = vld [vmem:[#allocation122_spill] sm:$0xff] }
 0x64c   : > { %4987 = vmatpush3.bf16.msra.mxu0 %v9201_v60  ;;  %5009 = vmatpush3.bf16.msra.mxu1 %v9202_v39  ;;  %v9212_v60 = vld [vmem:[#allocation123_spill] sm:$0xff]  ;;  %v9213_v39 = vld [vmem:[#allocation124_spill] sm:$0xff] }
 0x64d   : > { %4988 = vmatprep.subr.bf16.mxu0 %v9203_v53  ;;  %5010 = vmatprep.subr.bf16.mxu1 %v9204_v48  ;;  %v9214_v53 = vld [vmem:[#allocation125_spill] sm:$0xff]  ;;  %v9215_v48 = vld [vmem:[#allocation126_spill] sm:$0xff] }
 0x650   : > { %4989 = vmatpush3.bf16.msra.mxu0 %v9205_v28  ;;  %5011 = vmatpush3.bf16.msra.mxu1 %v9206_v35  ;;  %v9216_v28 = vld [vmem:[#allocation127_spill] sm:$0xff]  ;;  %v9217_v35 = vld [vmem:[#allocation128_spill] sm:$0xff] }
 0x651   : > { %4990 = vmatprep.subr.bf16.mxu0 %v9207_v2  ;;  %5012 = vmatprep.subr.bf16.mxu1 %v9208_v36  ;;  %v9218_v2 = vld [vmem:[#allocation129_spill] sm:$0xff]  ;;  %v9219_v36 = vld [vmem:[#allocation130_spill] sm:$0xff] }
 0x654   : > { %4991 = vmatpush3.bf16.msra.mxu0 %v9209_v58  ;;  %5013 = vmatpush3.bf16.msra.mxu1 %v9210_v16  ;;  %v9220_v58 = vld [vmem:[#allocation131_spill] sm:$0xff] }
 0x655   : > { %4992 = vmatprep.subr.bf16.mxu0 %v9211_v40  ;;  %5014 = vmatprep.subr.bf16.mxu1 %v9212_v60 }
 0x658   : > { %4993 = vmatpush3.bf16.msra.mxu0 %v9213_v39  ;;  %5015 = vmatpush3.bf16.msra.mxu1 %v9214_v53 }
 0x659   : > { %4994 = vmatprep.subr.bf16.mxu0 %v9215_v48  ;;  %5016 = vmatprep.subr.bf16.mxu1 %v9216_v28 }
 0x65c   : > { %4995 = vmatpush3.bf16.msra.mxu0 %v9217_v35  ;;  %5017 = vmatpush3.bf16.msra.mxu1 %v9218_v2 }
 0x65d   : > { %5024 = vmatprep.subr.bf16.mxu0 %v9219_v36  ;;  %5046 = vmatprep.subr.bf16.mxu1 %v9220_v58 }
 0x6f2   : > { %v2159_v16 = vpop.f32.mrb[32].mxu0  ;;  %v2200_v40 = vpop.f32.mrb[32].mxu1 }
 0x6f3   : > { %vm2289_vm8 = vcmp.ge.f32.partialorder %v2159_v16, 0.0  ;;  %vm2291_vm9 = vcmp.ge.f32.partialorder %v2200_v40, 0.0  ;;  %v2161_v60 = vpop.f32.mrb[33].mxu0  ;;  %v2202_v39 = vpop.f32.mrb[33].mxu1 }
 0x6f4   : > { %v2297_v53 = vsel %vm2289_vm8, 0.007843138, %v9141_v7  ;;  %v2299_v48 = vsel %vm2291_vm9, 0.007843138, %v9141_v7  ;;  %vm2290_vm10 = vcmp.ge.f32.partialorder %v2161_v60, 0.0  ;;  %vm2292_vm11 = vcmp.ge.f32.partialorder %v2202_v39, 0.0 }
 0x6f5   : > { %v2305_v35 = vadd.f32 %v2297_v53, %v7045_v50  ;;  %v2307_v2 = vadd.f32 %v2299_v48, %v7048_v15  ;;  %v2298_v36 = vsel %vm2290_vm10, 0.007843138, %v9141_v7  ;;  %v2300_v58 = vsel %vm2292_vm11, 0.007843138, %v9141_v7  ;;  %v2163_v28 = vpop.f32.mrb[34].mxu0  ;;  %v2204_v62 = vpop.f32.mrb[34].mxu1 }
 0x6f6   : > { %v2306_v40 = vadd.f32 %v2298_v36, %v7051_v23  ;;  %v2308_v16 = vadd.f32 %v2300_v58, %v7054_v63  ;;  %v2164_v57 = vpop.f32.mrb[35].mxu0  ;;  %v2205_v37 = vpop.f32.mrb[35].mxu1  ;;  %v9221_v62 = vld [vmem:[#allocation37_spill] sm:$0xff]  ;;  %v9222_v63 = vld [vmem:[#allocation39_spill] sm:$0xff]  ;;  %v9223_v36 = vld [vmem:[#allocation132_spill] sm:$0xff] }
 0x6f7   : > { %v2313_v11 = vmax.f32 %v6583_v0, %v2305_v35  ;;  %v2315_v60 = vmax.f32 %v6587_v14, %v2307_v2  ;;  %v9224_v58 = vld [vmem:[#allocation133_spill] sm:$0xff]  ;;  %v9225_v53 = vld [vmem:[#allocation134_spill] sm:$0xff]  ;;  %v9226_v48 = vld [vmem:[#allocation135_spill] sm:$0xff] }
 0x6f8   : > { %v2314_v50 = vmax.f32 %v9117_v9, %v2306_v40  ;;  %v2316_v15 = vmax.f32 %v9118_v31, %v2308_v16  ;;  %v9227_v40 = vld [vmem:[#allocation136_spill] sm:$0xff]  ;;  %v9228_v16 = vld [vmem:[#allocation137_spill] sm:$0xff] }
 0x6f9   : > { %v7303_v39 = vmin.f32 %v6592_v51, %v2313_v11  ;;  %v7306_v28 = vmin.f32 %v6594_v38, %v2315_v60  ;;  %v9229_v60 = vld [vmem:[#allocation138_spill] sm:$0xff] }
 0x6fa   : > { %v7309_v23 = vmin.f32 %v9221_v62, %v2314_v50  ;;  %v7312_v57 = vmin.f32 %v9222_v63, %v2316_v15  ;;  %v9230_v50 = vld [vmem:[#allocation139_spill] sm:$0xff]  ;;  %v9231_v15 = vld [vmem:[#allocation140_spill] sm:$0xff] }
 0x6fb   : > { %v2329_v37 = vpack.c.bf16 %v7303_v39, %v7303_v39  ;;  %v2331_v11 = vpack.c.bf16 %v7306_v28, %v7306_v28 }
 0x6fc   : > { %v2330_v35 = vpack.c.bf16 %v7309_v23, %v7309_v23  ;;  %v2332_v2 = vpack.c.bf16 %v7312_v57, %v7312_v57 }
 0x6fe   : > { %2369 = vmatprep.mubr.bf16.mxu0 %v2330_v35  ;;  %2409 = vmatprep.mubr.bf16.mxu1 %v2332_v2  ;;  %v9232_v35 = vld [vmem:[#allocation141_spill] sm:$0xff]  ;;  %v9233_v2 = vld [vmem:[#allocation142_spill] sm:$0xff] }
 0x6ff   : > { %2370 = vmatmul.mubr.bf16.vlgmr.msra.gmra.mrb[40].mxu0 %v2329_v37  ;;  %2410 = vmatmul.mubr.bf16.vlgmr.msra.gmra.mrb[40].mxu1 %v2331_v11  ;;  %v9234_v37 = vld [vmem:[#allocation143_spill] sm:$0xff]  ;;  %v9235_v11 = vld [vmem:[#allocation144_spill] sm:$0xff] }
 0x700   : > { %5025 = vmatpush3.bf16.msra.mxu0 %v9223_v36  ;;  %5047 = vmatpush3.bf16.msra.mxu1 %v9224_v58  ;;  %v9245_v36 = vld [vmem:[#allocation154_spill] sm:$0xff] }
 0x701   : > { %5026 = vmatprep.subr.bf16.mxu0 %v9225_v53  ;;  %5048 = vmatprep.subr.bf16.mxu1 %v9226_v48  ;;  %v9236_v53 = vld [vmem:[#allocation145_spill] sm:$0xff]  ;;  %v9237_v48 = vld [vmem:[#allocation146_spill] sm:$0xff] }
 0x704   : > { %5027 = vmatpush3.bf16.msra.mxu0 %v9227_v40  ;;  %5049 = vmatpush3.bf16.msra.mxu1 %v9228_v16  ;;  %v9238_v40 = vld [vmem:[#allocation147_spill] sm:$0xff]  ;;  %v9239_v16 = vld [vmem:[#allocation148_spill] sm:$0xff] }
 0x705   : > { %5028 = vmatprep.subr.bf16.mxu0 %v9229_v60  ;;  %5050 = vmatprep.subr.bf16.mxu1 %v9230_v50  ;;  %v9240_v60 = vld [vmem:[#allocation149_spill] sm:$0xff]  ;;  %v9241_v50 = vld [vmem:[#allocation150_spill] sm:$0xff] }
 0x708   : > { %5029 = vmatpush3.bf16.msra.mxu0 %v9231_v15  ;;  %5051 = vmatpush3.bf16.msra.mxu1 %v9232_v35  ;;  %v9242_v15 = vld [vmem:[#allocation151_spill] sm:$0xff] }
 0x709   : > { %5030 = vmatprep.subr.bf16.mxu0 %v9233_v2  ;;  %5052 = vmatprep.subr.bf16.mxu1 %v9234_v37 }
 0x70c   : > { %5031 = vmatpush3.bf16.msra.mxu0 %v9235_v11  ;;  %5053 = vmatpush3.bf16.msra.mxu1 %v9236_v53 }
 0x70d   : > { %5032 = vmatprep.subr.bf16.mxu0 %v9237_v48  ;;  %5054 = vmatprep.subr.bf16.mxu1 %v9238_v40  ;;  %v9243_v40 = vld [vmem:[#allocation152_spill] sm:$0xff] }
 0x710   : > { %5033 = vmatpush3.bf16.msra.mxu0 %v9239_v16  ;;  %5055 = vmatpush3.bf16.msra.mxu1 %v9240_v60  ;;  %v9244_v16 = vld [vmem:[#allocation153_spill] sm:$0xff] }
 0x711   : > { %5034 = vmatprep.subr.bf16.mxu0 %v9241_v50  ;;  %5056 = vmatprep.subr.bf16.mxu1 %v9242_v15 }
 0x712   : > { %v2241_v35 = vpop.f32.mrb[36].mxu0  ;;  %v2282_v2 = vpop.f32.mrb[36].mxu1 }
 0x713   : > { %vm2293_vm12 = vcmp.ge.f32.partialorder %v2241_v35, 0.0  ;;  %vm2295_vm13 = vcmp.ge.f32.partialorder %v2282_v2, 0.0  ;;  %v2243_v37 = vpop.f32.mrb[37].mxu0  ;;  %v2284_v11 = vpop.f32.mrb[37].mxu1 }
 0x714   : > { %v2301_v53 = vsel %vm2293_vm12, 0.007843138, %v9141_v7  ;;  %v2303_v48 = vsel %vm2295_vm13, 0.007843138, %v9141_v7  ;;  %vm2294_vm14 = vcmp.ge.f32.partialorder %v2243_v37, 0.0  ;;  %vm2296_vm15 = vcmp.ge.f32.partialorder %v2284_v11, 0.0  ;;  %5035 = vmatpush3.bf16.msra.mxu0 %v9243_v40  ;;  %5057 = vmatpush3.bf16.msra.mxu1 %v9244_v16 }
 0x715   : > { %v2309_v50 = vadd.f32 %v2301_v53, %v7155_v30  ;;  %v2311_v15 = vadd.f32 %v2303_v48, %v7158_v34  ;;  %v2302_v60 = vsel %vm2294_vm14, 0.007843138, %v9141_v7  ;;  %v2304_v35 = vsel %vm2296_vm15, 0.007843138, %v9141_v7  ;;  %v2245_v2 = vpop.f32.mrb[38].mxu0  ;;  %v2286_v58 = vpop.f32.mrb[38].mxu1  ;;  %5036 = vmatprep.subr.bf16.mxu0 %v9245_v36  ;;  %5058 = vmatprep.subr.bf16.mxu1 %v7139_v29 }
 0x716   : > { %v2310_v37 = vadd.f32 %v2302_v60, %v7167_v61  ;;  %v2312_v11 = vadd.f32 %v2304_v35, %v7170_v43  ;;  %v2246_v40 = vpop.f32.mrb[39].mxu0  ;;  %v2287_v16 = vpop.f32.mrb[39].mxu1  ;;  %v9246_v35 = vld [vmem:[#allocation24_spill] sm:$0xff]  ;;  %v9247_v2 = vld [vmem:[#allocation25_spill] sm:$0xff] }
 0x717   : > { %v2317_v30 = vmax.f32 %v6666_v19, %v2309_v50  ;;  %v2319_v34 = vmax.f32 %v6670_v3, %v2311_v15 }
 0x718   : > { %v2318_v53 = vmax.f32 %v6604_v4, %v2310_v37  ;;  %v2320_v48 = vmax.f32 %v6611_v54, %v2312_v11  ;;  %5037 = vmatpush3.bf16.msra.mxu0 %v7148_v13  ;;  %5059 = vmatpush3.bf16.msra.mxu1 %v7151_v10  ;;  %v9248_v37 = vld [vmem:[#allocation26_spill] sm:$0xff]  ;;  %v9249_v11 = vld [vmem:[#allocation27_spill] sm:$0xff] }
 0x719   : > { %v7361_v58 = vmin.f32 %v6678_v21, %v2317_v30  ;;  %v7364_v61 = vmin.f32 %v6681_v27, %v2319_v34  ;;  %5038 = vmatprep.subr.bf16.mxu0 %v7160_v20  ;;  %5060 = vmatprep.subr.bf16.mxu1 %v7163_v26  ;;  %v9250_v30 = vld [vmem:[#allocation28_spill] sm:$0xff]  ;;  %v9251_v34 = vld [vmem:[#allocation29_spill] sm:$0xff] }
 0x71a   : > { %v7369_v43 = vmin.f32 %v6609_v24, %v2318_v53  ;;  %v7372_v40 = vmin.f32 %v6621_v6, %v2320_v48  ;;  %v9252_v53 = vld [vmem:[#allocation30_spill] sm:$0xff]  ;;  %v9253_v48 = vld [vmem:[#allocation31_spill] sm:$0xff] }
 0x71b   : > { %v2333_v50 = vpack.c.bf16 %v7361_v58, %v7361_v58  ;;  %v2335_v15 = vpack.c.bf16 %v7364_v61, %v7364_v61 }
 0x71c   : > { %5039 = vmatpush3.bf16.msra.mxu0 %v7172_v12  ;;  %5061 = vmatpush3.bf16.msra.mxu1 %v7175_v56  ;;  %v2334_v16 = vpack.c.bf16 %v7369_v43, %v7369_v43  ;;  %v2336_v60 = vpack.c.bf16 %v7372_v40, %v7372_v40 }
 0x71d   : > { %2508 = vmatprep.subr.bf16.mxu0 %v6717_v44  ;;  %2549 = vmatprep.subr.bf16.mxu1 %v6721_v1 }
 0x71e   : > { %2449 = vmatprep.mubr.bf16.mxu0 %v2334_v16  ;;  %2489 = vmatprep.mubr.bf16.mxu1 %v2336_v60  ;;  %v9254_v16 = vld [vmem:[#allocation33_spill] sm:$0xff]  ;;  %v9255_v60 = vld [vmem:[#allocation35_spill] sm:$0xff] }
 0x71f   : > { %2450 = vmatmul.mubr.bf16.vlgmr.msra.gmra.mrb[44].mxu0 %v2333_v50  ;;  %2490 = vmatmul.mubr.bf16.vlgmr.msra.gmra.mrb[44].mxu1 %v2335_v15  ;;  %v9256_v50 = vld [vmem:[#allocation36_spill] sm:$0xff]  ;;  %v9257_v15 = vld [vmem:[#allocation38_spill] sm:$0xff] }
 0x720   : > { %2509 = vmatpush1.bf16.msra.mxu0 %v6719_v59  ;;  %2550 = vmatpush1.bf16.msra.mxu1 %v6723_v17 }
 0x721   : > { %2510 = vmatprep.subr.bf16.mxu0 %v9246_v35  ;;  %2551 = vmatprep.subr.bf16.mxu1 %v9247_v2  ;;  %v9258_v2 = vld [vmem:[#allocation40_spill] sm:$0xff] }
 0x722   : > { %2540 = vmatprep.mubr.bf16.mxu0 %v9060_v25  ;;  %2581 = vmatprep.mubr.bf16.mxu1 %v9060_v25 }
 0x724   : > { %2511 = vmatpush1.bf16.msra.mxu0 %v9248_v37  ;;  %2552 = vmatpush1.bf16.msra.mxu1 %v9249_v11  ;;  %v9259_v37 = vld [vmem:[#allocation41_spill] sm:$0xff]  ;;  %v9260_v11 = vld [vmem:[#allocation42_spill] sm:$0xff] }
 0x725   : > { %2512 = vmatprep.subr.bf16.mxu0 %v9250_v30  ;;  %2553 = vmatprep.subr.bf16.mxu1 %v9251_v34  ;;  %v9261_v30 = vld [vmem:[#allocation43_spill] sm:$0xff]  ;;  %v9262_v34 = vld [vmem:[#allocation44_spill] sm:$0xff] }
 0x728   : > { %2513 = vmatpush1.bf16.msra.mxu0 %v9252_v53  ;;  %2554 = vmatpush1.bf16.msra.mxu1 %v9253_v48  ;;  %v9263_v53 = vld [vmem:[#allocation53_spill] sm:$0xff]  ;;  %v9264_v48 = vld [vmem:[#allocation54_spill] sm:$0xff] }
 0x729   : > { %2514 = vmatprep.subr.bf16.mxu0 %v9254_v16  ;;  %2555 = vmatprep.subr.bf16.mxu1 %v9255_v60  ;;  %v9265_v16 = vld [vmem:[#allocation55_spill] sm:$0xff]  ;;  %v9266_v60 = vld [vmem:[#allocation56_spill] sm:$0xff] }
 0x72c   : > { %2515 = vmatpush1.bf16.msra.mxu0 %v9256_v50  ;;  %2556 = vmatpush1.bf16.msra.mxu1 %v9257_v15  ;;  %v9267_v50 = vld [vmem:[#allocation57_spill] sm:$0xff]  ;;  %v9268_v15 = vld [vmem:[#allocation58_spill] sm:$0xff] }
 0x72d   : > { %2516 = vmatprep.subr.bf16.mxu0 %v9258_v2  ;;  %2557 = vmatprep.subr.bf16.mxu1 %v9259_v37  ;;  %v9269_v2 = vld [vmem:[#allocation59_spill] sm:$0xff]  ;;  %v9270_v37 = vld [vmem:[#allocation60_spill] sm:$0xff] }
 0x730   : > { %2517 = vmatpush1.bf16.msra.mxu0 %v9260_v11  ;;  %2558 = vmatpush1.bf16.msra.mxu1 %v9261_v30  ;;  %v9271_v11 = vld [vmem:[#allocation61_spill] sm:$0xff]  ;;  %v9272_v30 = vld [vmem:[#allocation62_spill] sm:$0xff] }
 0x731   : > { %2518 = vmatprep.subr.bf16.mxu0 %v9262_v34  ;;  %2559 = vmatprep.subr.bf16.mxu1 %v9263_v53  ;;  %v9273_v34 = vld [vmem:[#allocation63_spill] sm:$0xff]  ;;  %v9274_v53 = vld [vmem:[#allocation64_spill] sm:$0xff] }
 0x734   : > { %2519 = vmatpush1.bf16.msra.mxu0 %v9264_v48  ;;  %2560 = vmatpush1.bf16.msra.mxu1 %v9265_v16  ;;  %v9275_v48 = vld [vmem:[#allocation65_spill] sm:$0xff] }
 0x735   : > { %2520 = vmatprep.subr.bf16.mxu0 %v9266_v60  ;;  %2561 = vmatprep.subr.bf16.mxu1 %v9267_v50 }
 0x738   : > { %2521 = vmatpush1.bf16.msra.mxu0 %v9268_v15  ;;  %2562 = vmatpush1.bf16.msra.mxu1 %v9269_v2 }
 0x739   : > { %2522 = vmatprep.subr.bf16.mxu0 %v9270_v37  ;;  %2563 = vmatprep.subr.bf16.mxu1 %v9271_v11 }
 0x73c   : > { %2523 = vmatpush1.bf16.msra.mxu0 %v9272_v30  ;;  %2564 = vmatpush1.bf16.msra.mxu1 %v9273_v34  ;;  %v7423_v30 = vld [vmem:[%s8473_s4] ss:$0 sm:$0xff] }
 0x73d   : > { %2590 = vmatprep.subr.bf16.mxu0 %v9274_v53  ;;  %2631 = vmatprep.subr.bf16.mxu1 %v9275_v48 }
 0x7d2   : > { %v4996_v16 = vpop.f32.mrb[40].mxu0  ;;  %v5018_v60 = vpop.f32.mrb[40].mxu1 }
 0x7d3   : > { %v4997_v35 = vpop.f32.mrb[41].mxu0  ;;  %v5019_v50 = vpop.f32.mrb[41].mxu1 }
 0x7d4   : > { %v4998_v17 = vadd.f32 %v4997_v35, %v4996_v16  ;;  %v5020_v15 = vadd.f32 %v5019_v50, %v5018_v60  ;;  %v4999_v59 = vpop.f32.mrb[42].mxu0  ;;  %v5021_v2 = vpop.f32.mrb[42].mxu1 }
 0x7d5   : > { %v5000_v1 = vpop.f32.mrb[43].mxu0  ;;  %v5022_v37 = vpop.f32.mrb[43].mxu1 }
 0x7d6   : > { %v2372_v34 = vadd.f32 %v7423_v30, %v4998_v17 }
 0x7d8   : > { %v2412_v53 = vadd.f32 %v5020_v15, %v2372_v34 }
 0x7f2   : > { %v5040_v11 = vpop.f32.mrb[44].mxu0  ;;  %v5062_v48 = vpop.f32.mrb[44].mxu1 }
 0x7f3   : > { %v5041_v44 = vpop.f32.mrb[45].mxu0  ;;  %v5063_v56 = vpop.f32.mrb[45].mxu1 }
 0x7f4   : > { %v5042_v12 = vadd.f32 %v5041_v44, %v5040_v11  ;;  %v5064_v6 = vadd.f32 %v5063_v56, %v5062_v48  ;;  %v5043_v35 = vpop.f32.mrb[46].mxu0  ;;  %v5065_v16 = vpop.f32.mrb[46].mxu1  ;;  %v9280_v11 = vld [vmem:[#allocation85_spill] sm:$0xff]  ;;  %v9282_v48 = vld [vmem:[#allocation87_spill] sm:$0xff] }
 0x7f5   : > { %v5044_v59 = vpop.f32.mrb[47].mxu0  ;;  %v5066_v2 = vpop.f32.mrb[47].mxu1  ;;  %v9283_v35 = vld [vmem:[#allocation88_spill] sm:$0xff]  ;;  %v9284_v16 = vld [vmem:[#allocation89_spill] sm:$0xff] }
 0x7f6   : > { %v2452_v1 = vadd.f32 %v5042_v12, %v2412_v53  ;;  %v9279_v12 = vld [vmem:[#allocation84_spill] sm:$0xff]  ;;  %v9281_v53 = vld [vmem:[#allocation86_spill] sm:$0xff]  ;;  %v9286_v2 = vld [vmem:[#allocation91_spill] sm:$0xff] }
 0x7f7   : > { %v9285_v59 = vld [vmem:[#allocation90_spill] sm:$0xff] }
 0x7f8   : > { %v2492_v37 = vadd.f32 %v5064_v6, %v2452_v1  ;;  %v9277_v6 = vld [vmem:[#allocation82_spill] sm:$0xff]  ;;  %v9287_v1 = vld [vmem:[#allocation92_spill] sm:$0xff] }
 0x7fa   : > { %2497 = vmax.xlane.f32.xlu0 %v2492_v37 }
 0x887   : > { %v2498_v60 = vpop.xlane.xlu0 %2497 }
 0x888   : > { %v2499_v50 = vsub.f32 %v2492_v37, %v2498_v60  ;;  %v9288_v37 = vld [vmem:[#allocation93_spill] sm:$0xff]  ;;  %v9289_v60 = vld [vmem:[#allocation94_spill] sm:$0xff] }
 0x88a   : > { %v2500_v24 = vmul.f32 1.442695, %v2499_v50  ;;  %v9290_v50 = vld [vmem:[#allocation95_spill] sm:$0xff] }
 0x88c   : > { %5657 = vpow2.f32 %v2500_v24  ;;  %v9276_v24 = vld [vmem:[#allocation81_spill] sm:$0xff] }
 0x896   : > { %v5658_v26 = vpop.eup %5657 }
 0x897   : > { %2502 = vadd.xlane.f32.xlu1 %v5658_v26 }
 0x924   : > { %v2503_v17 = vpop.xlane.xlu1 %2502 }
 0x925   : > { %5659 = vrcp.f32 %v2503_v17  ;;  %v9291_v17 = vld [vmem:[#allocation96_spill] sm:$0xff] }
 0x92f   : > { %v5660_v34 = vpop.eup %5659 }
 0x930   : > { %v2505_v15 = vmul.f32 %v5660_v34, %v5658_v26  ;;  %v9278_v26 = vld [vmem:[#allocation83_spill] sm:$0xff]  ;;  %v9292_v34 = vld [vmem:[#allocation97_spill] sm:$0xff] }
 0x932   : > { %v2506_v44 = vsub.f32 %v2505_v15, %v9161_v47  ;;  %v9293_v15 = vld [vmem:[#allocation98_spill] sm:$0xff] }
 0x934   : > { %v2507_v56 = vpack.c.bf16 %v2506_v44, %v2506_v44  ;;  %v9294_v44 = vld [vmem:[#allocation99_spill] sm:$0xff] }
 0x936   : > { %2541 = vmatmul.mubr.bf16.vlgmr.msra.gmra.mrb[48].mxu0 %v2507_v56  ;;  %2582 = vmatmul.mubr.bf16.vlgmr.msra.gmra.mrb[48].mxu1 %v2507_v56 }
 0x937   : > { %2591 = vmatpush1.bf16.msra.mxu0 %v9162_v5  ;;  %2632 = vmatpush1.bf16.msra.mxu1 %v9163_v42 }
 0x938   : > { %2592 = vmatprep.subr.bf16.mxu0 %v9164_v18  ;;  %2633 = vmatprep.subr.bf16.mxu1 %v9165_v41 }
 0x939   : > { %2622 = vmatprep.mubr.bf16.mxu0 %v9060_v25  ;;  %2663 = vmatprep.mubr.bf16.mxu1 %v9060_v25 }
 0x93b   : > { %2593 = vmatpush1.bf16.msra.mxu0 %v9166_v52  ;;  %2634 = vmatpush1.bf16.msra.mxu1 %v9167_v46 }
 0x93c   : > { %2594 = vmatprep.subr.bf16.mxu0 %v9168_v8  ;;  %2635 = vmatprep.subr.bf16.mxu1 %v9169_v45 }
 0x93f   : > { %2595 = vmatpush1.bf16.msra.mxu0 %v9170_v22  ;;  %2636 = vmatpush1.bf16.msra.mxu1 %v9171_v33 }
 0x940   : > { %2596 = vmatprep.subr.bf16.mxu0 %v9172_v55  ;;  %2637 = vmatprep.subr.bf16.mxu1 %v9173_v32 }
 0x943   : > { %2597 = vmatpush1.bf16.msra.mxu0 %v9174_v49  ;;  %2638 = vmatpush1.bf16.msra.mxu1 %v9276_v24 }
 0x944   : > { %2598 = vmatprep.subr.bf16.mxu0 %v9277_v6  ;;  %2639 = vmatprep.subr.bf16.mxu1 %v9278_v26 }
 0x947   : > { %2599 = vmatpush1.bf16.msra.mxu0 %v9279_v12  ;;  %2640 = vmatpush1.bf16.msra.mxu1 %v9280_v11 }
 0x948   : > { %2600 = vmatprep.subr.bf16.mxu0 %v9281_v53  ;;  %2641 = vmatprep.subr.bf16.mxu1 %v9282_v48 }
 0x94b   : > { %2601 = vmatpush1.bf16.msra.mxu0 %v9283_v35  ;;  %2642 = vmatpush1.bf16.msra.mxu1 %v9284_v16 }
 0x94c   : > { %2602 = vmatprep.subr.bf16.mxu0 %v9285_v59  ;;  %2643 = vmatprep.subr.bf16.mxu1 %v9286_v2  ;;  %v9295_v59 = vld [vmem:[#allocation100_spill] sm:$0xff]  ;;  %v9296_v2 = vld [vmem:[#allocation101_spill] sm:$0xff] }
 0x94f   : > { %2603 = vmatpush1.bf16.msra.mxu0 %v9287_v1  ;;  %2644 = vmatpush1.bf16.msra.mxu1 %v9288_v37  ;;  %v9297_v1 = vld [vmem:[#allocation102_spill] sm:$0xff]  ;;  %v9298_v37 = vld [vmem:[#allocation103_spill] sm:$0xff] }
 0x950   : > { %2604 = vmatprep.subr.bf16.mxu0 %v9289_v60  ;;  %2645 = vmatprep.subr.bf16.mxu1 %v9290_v50  ;;  %v9299_v60 = vld [vmem:[#allocation104_spill] sm:$0xff]  ;;  %v9300_v50 = vld [vmem:[#allocation105_spill] sm:$0xff] }
 0x953   : > { %2605 = vmatpush1.bf16.msra.mxu0 %v9291_v17  ;;  %2646 = vmatpush1.bf16.msra.mxu1 %v9292_v34  ;;  %v9301_v17 = vld [vmem:[#allocation106_spill] sm:$0xff]  ;;  %v9302_v34 = vld [vmem:[#allocation107_spill] sm:$0xff] }
 0x954   : > { %5068 = vmatprep.subr.bf16.mxu0 %v9293_v15  ;;  %5090 = vmatprep.subr.bf16.mxu1 %v9294_v44  ;;  %v9303_v15 = vld [vmem:[#allocation108_spill] sm:$0xff]  ;;  %v9304_v44 = vld [vmem:[#allocation109_spill] sm:$0xff] }
 0x956   : > { %2623 = vmatmul.mubr.bf16.vlgmr.msra.gmra.mrb[52].mxu0 %v2507_v56  ;;  %2664 = vmatmul.mubr.bf16.vlgmr.msra.gmra.mrb[52].mxu1 %v2507_v56  ;;  %v9305_v56 = vld [vmem:[#allocation110_spill] sm:$0xff] }
 0x957   : > { %5069 = vmatpush3.bf16.msra.mxu0 %v9295_v59  ;;  %5091 = vmatpush3.bf16.msra.mxu1 %v9296_v2  ;;  %v9306_v59 = vld [vmem:[#allocation111_spill] sm:$0xff]  ;;  %v9307_v2 = vld [vmem:[#allocation112_spill] sm:$0xff] }
 0x958   : > { %5070 = vmatprep.subr.bf16.mxu0 %v9297_v1  ;;  %5092 = vmatprep.subr.bf16.mxu1 %v9298_v37  ;;  %v9308_v1 = vld [vmem:[#allocation113_spill] sm:$0xff]  ;;  %v9309_v37 = vld [vmem:[#allocation114_spill] sm:$0xff] }
 0x95b   : > { %5071 = vmatpush3.bf16.msra.mxu0 %v9299_v60  ;;  %5093 = vmatpush3.bf16.msra.mxu1 %v9300_v50  ;;  %v9310_v60 = vld [vmem:[#allocation115_spill] sm:$0xff]  ;;  %v9311_v50 = vld [vmem:[#allocation116_spill] sm:$0xff] }
 0x95c   : > { %5072 = vmatprep.subr.bf16.mxu0 %v9301_v17  ;;  %5094 = vmatprep.subr.bf16.mxu1 %v9302_v34  ;;  %v9312_v17 = vld [vmem:[#allocation117_spill] sm:$0xff]  ;;  %v9313_v34 = vld [vmem:[#allocation118_spill] sm:$0xff] }
 0x95f   : > { %5073 = vmatpush3.bf16.msra.mxu0 %v9303_v15  ;;  %5095 = vmatpush3.bf16.msra.mxu1 %v9304_v44  ;;  %v9314_v15 = vld [vmem:[#allocation119_spill] sm:$0xff]  ;;  %v9315_v44 = vld [vmem:[#allocation120_spill] sm:$0xff] }
 0x960   : > { %5074 = vmatprep.subr.bf16.mxu0 %v9305_v56  ;;  %5096 = vmatprep.subr.bf16.mxu1 %v9306_v59  ;;  %v9316_v56 = vld [vmem:[#allocation121_spill] sm:$0xff]  ;;  %v9317_v59 = vld [vmem:[#allocation122_spill] sm:$0xff] }
 0x963   : > { %5075 = vmatpush3.bf16.msra.mxu0 %v9307_v2  ;;  %5097 = vmatpush3.bf16.msra.mxu1 %v9308_v1  ;;  %v9318_v2 = vld [vmem:[#allocation123_spill] sm:$0xff]  ;;  %v9319_v1 = vld [vmem:[#allocation124_spill] sm:$0xff] }
 0x964   : > { %5076 = vmatprep.subr.bf16.mxu0 %v9309_v37  ;;  %5098 = vmatprep.subr.bf16.mxu1 %v9310_v60  ;;  %v9320_v37 = vld [vmem:[#allocation125_spill] sm:$0xff]  ;;  %v9321_v60 = vld [vmem:[#allocation126_spill] sm:$0xff] }
 0x967   : > { %5077 = vmatpush3.bf16.msra.mxu0 %v9311_v50  ;;  %5099 = vmatpush3.bf16.msra.mxu1 %v9312_v17  ;;  %v9322_v50 = vld [vmem:[#allocation127_spill] sm:$0xff]  ;;  %v9323_v17 = vld [vmem:[#allocation128_spill] sm:$0xff] }
 0x968   : > { %5078 = vmatprep.subr.bf16.mxu0 %v9313_v34  ;;  %5100 = vmatprep.subr.bf16.mxu1 %v9314_v15  ;;  %v9324_v34 = vld [vmem:[#allocation129_spill] sm:$0xff]  ;;  %v9325_v15 = vld [vmem:[#allocation130_spill] sm:$0xff] }
 0x96b   : > { %5079 = vmatpush3.bf16.msra.mxu0 %v9315_v44  ;;  %5101 = vmatpush3.bf16.msra.mxu1 %v9316_v56  ;;  %v9326_v44 = vld [vmem:[#allocation131_spill] sm:$0xff] }
 0x96c   : > { %5080 = vmatprep.subr.bf16.mxu0 %v9317_v59  ;;  %5102 = vmatprep.subr.bf16.mxu1 %v9318_v2 }
 0x96f   : > { %5081 = vmatpush3.bf16.msra.mxu0 %v9319_v1  ;;  %5103 = vmatpush3.bf16.msra.mxu1 %v9320_v37 }
 0x970   : > { %5082 = vmatprep.subr.bf16.mxu0 %v9321_v60  ;;  %5104 = vmatprep.subr.bf16.mxu1 %v9322_v50 }
 0x973   : > { %5083 = vmatpush3.bf16.msra.mxu0 %v9323_v17  ;;  %5105 = vmatpush3.bf16.msra.mxu1 %v9324_v34 }
 0x974   : > { %5112 = vmatprep.subr.bf16.mxu0 %v9325_v15  ;;  %5134 = vmatprep.subr.bf16.mxu1 %v9326_v44 }
 0xa09   : > { %v2542_v56 = vpop.f32.mrb[48].mxu0  ;;  %v2583_v59 = vpop.f32.mrb[48].mxu1 }
 0xa0a   : > { %vm2672_vm0 = vcmp.ge.f32.partialorder %v2542_v56, 0.0  ;;  %vm2674_vm1 = vcmp.ge.f32.partialorder %v2583_v59, 0.0  ;;  %v2544_v2 = vpop.f32.mrb[49].mxu0  ;;  %v2585_v1 = vpop.f32.mrb[49].mxu1 }
 0xa0b   : > { %v2680_v37 = vsel %vm2672_vm0, 0.007843138, %v9141_v7  ;;  %v2682_v60 = vsel %vm2674_vm1, 0.007843138, %v9141_v7  ;;  %vm2673_vm2 = vcmp.ge.f32.partialorder %v2544_v2, 0.0  ;;  %vm2675_vm3 = vcmp.ge.f32.partialorder %v2585_v1, 0.0 }
 0xa0c   : > { %v2688_v50 = vadd.f32 %v2680_v37, %v7303_v39  ;;  %v2690_v17 = vadd.f32 %v2682_v60, %v7306_v28  ;;  %v2681_v34 = vsel %vm2673_vm2, 0.007843138, %v9141_v7  ;;  %v2683_v15 = vsel %vm2675_vm3, 0.007843138, %v9141_v7  ;;  %v2546_v44 = vpop.f32.mrb[50].mxu0  ;;  %v2587_v16 = vpop.f32.mrb[50].mxu1 }
 0xa0d   : > { %v2689_v56 = vadd.f32 %v2681_v34, %v7309_v23  ;;  %v2691_v59 = vadd.f32 %v2683_v15, %v7312_v57  ;;  %v2547_v35 = vpop.f32.mrb[51].mxu0  ;;  %v2588_v48 = vpop.f32.mrb[51].mxu1  ;;  %v9327_v60 = vld [vmem:[#allocation132_spill] sm:$0xff]  ;;  %v9330_v34 = vld [vmem:[#allocation135_spill] sm:$0xff]  ;;  %v9332_v44 = vld [vmem:[#allocation137_spill] sm:$0xff] }
 0xa0e   : > { %v2696_v53 = vmax.f32 %v6583_v0, %v2688_v50  ;;  %v2698_v2 = vmax.f32 %v6587_v14, %v2690_v17  ;;  %v9328_v50 = vld [vmem:[#allocation133_spill] sm:$0xff]  ;;  %v9329_v17 = vld [vmem:[#allocation134_spill] sm:$0xff]  ;;  %v9331_v15 = vld [vmem:[#allocation136_spill] sm:$0xff] }
 0xa0f   : > { %v2697_v39 = vmax.f32 %v9117_v9, %v2689_v56  ;;  %v2699_v28 = vmax.f32 %v9118_v31, %v2691_v59  ;;  %v9333_v56 = vld [vmem:[#allocation138_spill] sm:$0xff]  ;;  %v9334_v59 = vld [vmem:[#allocation139_spill] sm:$0xff] }
 0xa10   : > { %v7506_v1 = vmin.f32 %v6592_v51, %v2696_v53  ;;  %v7509_v37 = vmin.f32 %v6594_v38, %v2698_v2  ;;  %v9335_v2 = vld [vmem:[#allocation140_spill] sm:$0xff] }
 0xa11   : > { %v7512_v23 = vmin.f32 %v9221_v62, %v2697_v39  ;;  %v7515_v57 = vmin.f32 %v9222_v63, %v2699_v28  ;;  %v9336_v39 = vld [vmem:[#allocation141_spill] sm:$0xff]  ;;  %v9337_v28 = vld [vmem:[#allocation142_spill] sm:$0xff] }
 0xa12   : > { %v2712_v16 = vpack.c.bf16 %v7506_v1, %v7506_v1  ;;  %v2714_v53 = vpack.c.bf16 %v7509_v37, %v7509_v37 }
 0xa13   : > { %v2713_v48 = vpack.c.bf16 %v7512_v23, %v7512_v23  ;;  %v2715_v35 = vpack.c.bf16 %v7515_v57, %v7515_v57 }
 0xa15   : > { %2752 = vmatprep.mubr.bf16.mxu0 %v2713_v48  ;;  %2792 = vmatprep.mubr.bf16.mxu1 %v2715_v35  ;;  %v9338_v48 = vld [vmem:[#allocation143_spill] sm:$0xff]  ;;  %v9339_v35 = vld [vmem:[#allocation144_spill] sm:$0xff] }
 0xa16   : > { %2753 = vmatmul.mubr.bf16.vlgmr.msra.gmra.mrb[56].mxu0 %v2712_v16  ;;  %2793 = vmatmul.mubr.bf16.vlgmr.msra.gmra.mrb[56].mxu1 %v2714_v53  ;;  %v9340_v16 = vld [vmem:[#allocation145_spill] sm:$0xff]  ;;  %v9341_v53 = vld [vmem:[#allocation146_spill] sm:$0xff] }
 0xa17   : > { %5113 = vmatpush3.bf16.msra.mxu0 %v9327_v60  ;;  %5135 = vmatpush3.bf16.msra.mxu1 %v9328_v50  ;;  %v9342_v60 = vld [vmem:[#allocation147_spill] sm:$0xff]  ;;  %v9343_v50 = vld [vmem:[#allocation148_spill] sm:$0xff] }
 0xa18   : > { %5114 = vmatprep.subr.bf16.mxu0 %v9329_v17  ;;  %5136 = vmatprep.subr.bf16.mxu1 %v9330_v34  ;;  %v9344_v17 = vld [vmem:[#allocation149_spill] sm:$0xff]  ;;  %v9345_v34 = vld [vmem:[#allocation150_spill] sm:$0xff] }
 0xa1b   : > { %5115 = vmatpush3.bf16.msra.mxu0 %v9331_v15  ;;  %5137 = vmatpush3.bf16.msra.mxu1 %v9332_v44  ;;  %v9346_v15 = vld [vmem:[#allocation151_spill] sm:$0xff] }
 0xa1c   : > { %5116 = vmatprep.subr.bf16.mxu0 %v9333_v56  ;;  %5138 = vmatprep.subr.bf16.mxu1 %v9334_v59 }
 0xa1f   : > { %5117 = vmatpush3.bf16.msra.mxu0 %v9335_v2  ;;  %5139 = vmatpush3.bf16.msra.mxu1 %v9336_v39 }
 0xa20   : > { %5118 = vmatprep.subr.bf16.mxu0 %v9337_v28  ;;  %5140 = vmatprep.subr.bf16.mxu1 %v9338_v48  ;;  %v9347_v48 = vld [vmem:[#allocation152_spill] sm:$0xff] }
 0xa23   : > { %5119 = vmatpush3.bf16.msra.mxu0 %v9339_v35  ;;  %5141 = vmatpush3.bf16.msra.mxu1 %v9340_v16  ;;  %v9348_v35 = vld [vmem:[#allocation153_spill] sm:$0xff] }
 0xa24   : > { %5120 = vmatprep.subr.bf16.mxu0 %v9341_v53  ;;  %5142 = vmatprep.subr.bf16.mxu1 %v9342_v60 }
 0xa27   : > { %5121 = vmatpush3.bf16.msra.mxu0 %v9343_v50  ;;  %5143 = vmatpush3.bf16.msra.mxu1 %v9344_v17 }
 0xa28   : > { %5122 = vmatprep.subr.bf16.mxu0 %v9345_v34  ;;  %5144 = vmatprep.subr.bf16.mxu1 %v9346_v15 }
 0xa29   : > { %v2624_v44 = vpop.f32.mrb[52].mxu0  ;;  %v2665_v56 = vpop.f32.mrb[52].mxu1 }
 0xa2a   : > { %vm2676_vm4 = vcmp.ge.f32.partialorder %v2624_v44, 0.0  ;;  %vm2678_vm5 = vcmp.ge.f32.partialorder %v2665_v56, 0.0  ;;  %v2626_v59 = vpop.f32.mrb[53].mxu0  ;;  %v2667_v2 = vpop.f32.mrb[53].mxu1 }
 0xa2b   : > { %v2684_v39 = vsel %vm2676_vm4, 0.007843138, %v9141_v7  ;;  %v2686_v28 = vsel %vm2678_vm5, 0.007843138, %v9141_v7  ;;  %vm2677_vm6 = vcmp.ge.f32.partialorder %v2626_v59, 0.0  ;;  %vm2679_vm7 = vcmp.ge.f32.partialorder %v2667_v2, 0.0  ;;  %5123 = vmatpush3.bf16.msra.mxu0 %v9347_v48  ;;  %5145 = vmatpush3.bf16.msra.mxu1 %v9348_v35 }
 0xa2c   : > { %v2692_v16 = vadd.f32 %v2684_v39, %v7361_v58  ;;  %v2694_v53 = vadd.f32 %v2686_v28, %v7364_v61  ;;  %v2685_v60 = vsel %vm2677_vm6, 0.007843138, %v9141_v7  ;;  %v2687_v50 = vsel %vm2679_vm7, 0.007843138, %v9141_v7  ;;  %v2628_v17 = vpop.f32.mrb[54].mxu0  ;;  %v2669_v34 = vpop.f32.mrb[54].mxu1  ;;  %5124 = vmatprep.subr.bf16.mxu0 %v9245_v36  ;;  %5146 = vmatprep.subr.bf16.mxu1 %v7139_v29 }
 0xa2d   : > { %v2693_v15 = vadd.f32 %v2685_v60, %v7369_v43  ;;  %v2695_v44 = vadd.f32 %v2687_v50, %v7372_v40  ;;  %v2629_v56 = vpop.f32.mrb[55].mxu0  ;;  %v2670_v59 = vpop.f32.mrb[55].mxu1  ;;  %v9349_v43 = vld [vmem:[#allocation155_spill] sm:$0xff]  ;;  %v9350_v40 = vld [vmem:[#allocation50_spill] sm:$0xff]  ;;  %v9351_v48 = vld [vmem:[#allocation52_spill] sm:$0xff] }
 0xa2e   : > { %v2700_v58 = vmax.f32 %v6666_v19, %v2692_v16  ;;  %v2702_v61 = vmax.f32 %v6670_v3, %v2694_v53  ;;  %v9352_v16 = vld [vmem:[#allocation156_spill] sm:$0xff]  ;;  %v9355_v17 = vld [vmem:[#allocation22_spill] sm:$0xff]  ;;  %v9356_v34 = vld [vmem:[#allocation21_spill] sm:$0xff] }
 0xa2f   : > { %v2701_v2 = vmax.f32 %v6604_v4, %v2693_v15  ;;  %v2703_v39 = vmax.f32 %v6611_v54, %v2695_v44  ;;  %5125 = vmatpush3.bf16.msra.mxu0 %v7148_v13  ;;  %5147 = vmatpush3.bf16.msra.mxu1 %v7151_v10  ;;  %v9353_v13 = vld [vmem:[#allocation157_spill] sm:$0xff]  ;;  %v9354_v50 = vld [vmem:[#allocation20_spill] sm:$0xff]  ;;  %v9357_v15 = vld [vmem:[#allocation23_spill] sm:$0xff] }
 0xa30   : > { %v7564_v29 = vmin.f32 %v6678_v21, %v2700_v58  ;;  %v7567_v36 = vmin.f32 %v6681_v27, %v2702_v61  ;;  %5126 = vmatprep.subr.bf16.mxu0 %v7160_v20  ;;  %5148 = vmatprep.subr.bf16.mxu1 %v9349_v43  ;;  %v9358_v44 = vld [vmem:[#allocation24_spill] sm:$0xff]  ;;  %v9359_v56 = vld [vmem:[#allocation25_spill] sm:$0xff]  ;;  %v9360_v59 = vld [vmem:[#allocation26_spill] sm:$0xff] }
 0xa31   : > { %v7572_v28 = vmin.f32 %v9350_v40, %v2701_v2  ;;  %v7575_v35 = vmin.f32 %v9351_v48, %v2703_v39  ;;  %v9361_v58 = vld [vmem:[#allocation27_spill] sm:$0xff]  ;;  %v9362_v61 = vld [vmem:[#allocation28_spill] sm:$0xff]  ;;  %v9363_v2 = vld [vmem:[#allocation29_spill] sm:$0xff] }
 0xa32   : > { %v2716_v20 = vpack.c.bf16 %v7564_v29, %v7564_v29  ;;  %v2718_v60 = vpack.c.bf16 %v7567_v36, %v7567_v36  ;;  %v9364_v39 = vld [vmem:[#allocation30_spill] sm:$0xff]  ;;  %v9365_v43 = vld [vmem:[#allocation31_spill] sm:$0xff] }
 0xa33   : > { %5127 = vmatpush3.bf16.msra.mxu0 %v9352_v16  ;;  %5149 = vmatpush3.bf16.msra.mxu1 %v9353_v13  ;;  %v2717_v10 = vpack.c.bf16 %v7572_v28, %v7572_v28  ;;  %v2719_v53 = vpack.c.bf16 %v7575_v35, %v7575_v35  ;;  %v9366_v16 = vld [vmem:[#allocation33_spill] sm:$0xff]  ;;  %v9367_v13 = vld [vmem:[#allocation35_spill] sm:$0xff] }
 0xa34   : > { %2891 = vmatprep.subr.bf16.mxu0 %v9354_v50  ;;  %2932 = vmatprep.subr.bf16.mxu1 %v9355_v17 }
 0xa35   : > { %2832 = vmatprep.mubr.bf16.mxu0 %v2717_v10  ;;  %2872 = vmatprep.mubr.bf16.mxu1 %v2719_v53  ;;  %v9368_v10 = vld [vmem:[#allocation36_spill] sm:$0xff]  ;;  %v9369_v53 = vld [vmem:[#allocation38_spill] sm:$0xff] }
 0xa36   : > { %2833 = vmatmul.mubr.bf16.vlgmr.msra.gmra.mrb[60].mxu0 %v2716_v20  ;;  %2873 = vmatmul.mubr.bf16.vlgmr.msra.gmra.mrb[60].mxu1 %v2718_v60  ;;  %v9370_v20 = vld [vmem:[#allocation40_spill] sm:$0xff]  ;;  %v9371_v60 = vld [vmem:[#allocation41_spill] sm:$0xff] }
 0xa37   : > { %2892 = vmatpush1.bf16.msra.mxu0 %v9356_v34  ;;  %2933 = vmatpush1.bf16.msra.mxu1 %v9357_v15 }
 0xa38   : > { %2893 = vmatprep.subr.bf16.mxu0 %v9358_v44  ;;  %2934 = vmatprep.subr.bf16.mxu1 %v9359_v56 }
 0xa39   : > { %2923 = vmatprep.mubr.bf16.mxu0 %v9060_v25  ;;  %2964 = vmatprep.mubr.bf16.mxu1 %v9060_v25 }
 0xa3b   : > { %2894 = vmatpush1.bf16.msra.mxu0 %v9360_v59  ;;  %2935 = vmatpush1.bf16.msra.mxu1 %v9361_v58  ;;  %v9372_v58 = vld [vmem:[#allocation42_spill] sm:$0xff] }
 0xa3c   : > { %2895 = vmatprep.subr.bf16.mxu0 %v9362_v61  ;;  %2936 = vmatprep.subr.bf16.mxu1 %v9363_v2  ;;  %v9373_v61 = vld [vmem:[#allocation43_spill] sm:$0xff]  ;;  %v9374_v2 = vld [vmem:[#allocation44_spill] sm:$0xff] }
 0xa3f   : > { %2896 = vmatpush1.bf16.msra.mxu0 %v9364_v39  ;;  %2937 = vmatpush1.bf16.msra.mxu1 %v9365_v43  ;;  %v9375_v39 = vld [vmem:[#allocation53_spill] sm:$0xff]  ;;  %v9376_v43 = vld [vmem:[#allocation54_spill] sm:$0xff] }
 0xa40   : > { %2897 = vmatprep.subr.bf16.mxu0 %v9366_v16  ;;  %2938 = vmatprep.subr.bf16.mxu1 %v9367_v13  ;;  %v9377_v16 = vld [vmem:[#allocation55_spill] sm:$0xff]  ;;  %v9378_v13 = vld [vmem:[#allocation56_spill] sm:$0xff] }
 0xa43   : > { %2898 = vmatpush1.bf16.msra.mxu0 %v9368_v10  ;;  %2939 = vmatpush1.bf16.msra.mxu1 %v9369_v53  ;;  %v9379_v10 = vld [vmem:[#allocation57_spill] sm:$0xff]  ;;  %v9380_v53 = vld [vmem:[#allocation58_spill] sm:$0xff] }
 0xa44   : > { %2899 = vmatprep.subr.bf16.mxu0 %v9370_v20  ;;  %2940 = vmatprep.subr.bf16.mxu1 %v9371_v60  ;;  %v9381_v20 = vld [vmem:[#allocation59_spill] sm:$0xff]  ;;  %v9382_v60 = vld [vmem:[#allocation60_spill] sm:$0xff] }
 0xa47   : > { %2900 = vmatpush1.bf16.msra.mxu0 %v9372_v58  ;;  %2941 = vmatpush1.bf16.msra.mxu1 %v9373_v61  ;;  %v9383_v58 = vld [vmem:[#allocation61_spill] sm:$0xff]  ;;  %v9384_v61 = vld [vmem:[#allocation62_spill] sm:$0xff] }
 0xa48   : > { %2901 = vmatprep.subr.bf16.mxu0 %v9374_v2  ;;  %2942 = vmatprep.subr.bf16.mxu1 %v9375_v39  ;;  %v9385_v2 = vld [vmem:[#allocation63_spill] sm:$0xff]  ;;  %v9386_v39 = vld [vmem:[#allocation64_spill] sm:$0xff] }
 0xa4b   : > { %2902 = vmatpush1.bf16.msra.mxu0 %v9376_v43  ;;  %2943 = vmatpush1.bf16.msra.mxu1 %v9377_v16  ;;  %v9387_v43 = vld [vmem:[#allocation65_spill] sm:$0xff] }
 0xa4c   : > { %2903 = vmatprep.subr.bf16.mxu0 %v9378_v13  ;;  %2944 = vmatprep.subr.bf16.mxu1 %v9379_v10 }
 0xa4f   : > { %2904 = vmatpush1.bf16.msra.mxu0 %v9380_v53  ;;  %2945 = vmatpush1.bf16.msra.mxu1 %v9381_v20 }
 0xa50   : > { %2905 = vmatprep.subr.bf16.mxu0 %v9382_v60  ;;  %2946 = vmatprep.subr.bf16.mxu1 %v9383_v58 }
 0xa53   : > { %2906 = vmatpush1.bf16.msra.mxu0 %v9384_v61  ;;  %2947 = vmatpush1.bf16.msra.mxu1 %v9385_v2 }
 0xa54   : > { %2973 = vmatprep.subr.bf16.mxu0 %v9386_v39  ;;  %3014 = vmatprep.subr.bf16.mxu1 %v9387_v43 }
 0xae9   : > { %v5084_v16 = vpop.f32.mrb[56].mxu0  ;;  %v5106_v13 = vpop.f32.mrb[56].mxu1 }
 0xaea   : > { %v5085_v59 = vpop.f32.mrb[57].mxu0  ;;  %v5107_v10 = vpop.f32.mrb[57].mxu1 }
 0xaeb   : > { %v5086_v56 = vadd.f32 %v5085_v59, %v5084_v16  ;;  %v5108_v53 = vadd.f32 %v5107_v10, %v5106_v13  ;;  %v5087_v44 = vpop.f32.mrb[58].mxu0  ;;  %v5109_v20 = vpop.f32.mrb[58].mxu1 }
 0xaec   : > { %v5088_v15 = vpop.f32.mrb[59].mxu0  ;;  %v5110_v60 = vpop.f32.mrb[59].mxu1  ;;  %v9399_v20 = vld [vmem:[#allocation97_spill] sm:$0xff] }
 0xaed   : > { %v2755_v58 = vadd.f32 %v7423_v30, %v5086_v56  ;;  %v7657_v60 = vld [vmem:[#allocation7 + $0x40] sm:$0xff]  }
 0xaee   : > { %9400 = vst [vmem:[#allocation18_spill] sm:$0xff] %v7657_v60 }
 0xaef   : > { %v2795_v34 = vadd.f32 %v5108_v53, %v2755_v58  ;;  %v9398_v53 = vld [vmem:[#allocation96_spill] sm:$0xff] }
 0xb09   : > { %v5128_v61 = vpop.f32.mrb[60].mxu0  ;;  %v5150_v17 = vpop.f32.mrb[60].mxu1 }
 0xb0a   : > { %v5129_v2 = vpop.f32.mrb[61].mxu0  ;;  %v5151_v50 = vpop.f32.mrb[61].mxu1 }
 0xb0b   : > { %v5130_v39 = vadd.f32 %v5129_v2, %v5128_v61  ;;  %v5152_v48 = vadd.f32 %v5151_v50, %v5150_v17  ;;  %v5131_v43 = vpop.f32.mrb[62].mxu0  ;;  %v5153_v40 = vpop.f32.mrb[62].mxu1  ;;  %v9393_v17 = vld [vmem:[#allocation91_spill] sm:$0xff]  ;;  %v9395_v2 = vld [vmem:[#allocation93_spill] sm:$0xff] }
 0xb0c   : > { %v5132_v27 = vpop.f32.mrb[63].mxu0  ;;  %v5154_v21 = vpop.f32.mrb[63].mxu1  ;;  %v9391_v40 = vld [vmem:[#allocation89_spill] sm:$0xff]  ;;  %v9397_v43 = vld [vmem:[#allocation95_spill] sm:$0xff] }
 0xb0d   : > { %v2835_v54 = vadd.f32 %v5130_v39, %v2795_v34  ;;  %v9389_v21 = vld [vmem:[#allocation87_spill] sm:$0xff]  ;;  %v9390_v27 = vld [vmem:[#allocation88_spill] sm:$0xff]  ;;  %v9396_v39 = vld [vmem:[#allocation94_spill] sm:$0xff] }
 0xb0e   : > { %v9394_v34 = vld [vmem:[#allocation92_spill] sm:$0xff] }
 0xb0f   : > { %v2875_v59 = vadd.f32 %v5152_v48, %v2835_v54  ;;  %v9388_v54 = vld [vmem:[#allocation86_spill] sm:$0xff] }
 0xb10   : > { %v9392_v48 = vld [vmem:[#allocation90_spill] sm:$0xff] }
 0xb11   : > { %2880 = vmax.xlane.f32.xlu0 %v2875_v59 }
 0xb9e   : > { %v2881_v44 = vpop.xlane.xlu0 %2880 }
 0xb9f   : > { %v2882_v16 = vsub.f32 %v2875_v59, %v2881_v44  ;;  %v7660_v59 = vld [vmem:[#allocation7 + $0xc0] sm:$0xff]  }
 0xba0   : > { %9401 = vst [vmem:[#allocation69_spill] sm:$0xff] %v7660_v59  ;;  %v7663_v44 = vld [vmem:[#allocation7] sm:$0xff]  }
 0xba1   : > { %v2883_v15 = vmul.f32 1.442695, %v2882_v16  ;;  %9402 = vst [vmem:[#allocation66_spill] sm:$0xff] %v7663_v44  ;;  %v7666_v16 = vld [vmem:[#allocation7 + $0x80] sm:$0xff]  }
 0xba2   : > { %9403 = vst [vmem:[#allocation67_spill] sm:$0xff] %v7666_v16 }
 0xba3   : > { %5661 = vpow2.f32 %v2883_v15  ;;  %v7669_v15 = vld [vmem:[#allocation7 + $0x48] sm:$0xff]  }
 0xba4   : > { %9404 = vst [vmem:[#allocation70_spill] sm:$0xff] %v7669_v15 }
 0xbad   : > { %v5662_v13 = vpop.eup %5661 }
 0xbae   : > { %2885 = vadd.xlane.f32.xlu1 %v5662_v13 }
 0xc3b   : > { %v2886_v56 = vpop.xlane.xlu1 %2885 }
 0xc3c   : > { %5663 = vrcp.f32 %v2886_v56  ;;  %v7675_v56 = vld [vmem:[#allocation7 + $0x8] sm:$0xff]  }
 0xc3d   : > { %9406 = vst [vmem:[#allocation72_spill] sm:$0xff] %v7675_v56 }
 0xc46   : > { %v5664_v58 = vpop.eup %5663 }
 0xc47   : > { %v2888_v10 = vmul.f32 %v5664_v58, %v5662_v13  ;;  %v7672_v13 = vld [vmem:[#allocation7 + $0xc8] sm:$0xff]  }
 0xc48   : > { %9405 = vst [vmem:[#allocation71_spill] sm:$0xff] %v7672_v13  ;;  %v7678_v58 = vld [vmem:[#allocation7 + $0x88] sm:$0xff]  }
 0xc49   : > { %v2889_v61 = vsub.f32 %v2888_v10, %v9161_v47  ;;  %9407 = vst [vmem:[#allocation73_spill] sm:$0xff] %v7678_v58  ;;  %v7681_v10 = vld [vmem:[#allocation7 + $0x50] sm:$0xff]  }
 0xc4a   : > { %9408 = vst [vmem:[#allocation74_spill] sm:$0xff] %v7681_v10 }
 0xc4b   : > { %v2890_v50 = vpack.c.bf16 %v2889_v61, %v2889_v61  ;;  %v7684_v61 = vld [vmem:[#allocation7 + $0xd0] sm:$0xff]  }
 0xc4c   : > { %9409 = vst [vmem:[#allocation75_spill] sm:$0xff] %v7684_v61 }
 0xc4d   : > { %2924 = vmatmul.mubr.bf16.vlgmr.msra.gmra.mrb[64].mxu0 %v2890_v50  ;;  %2965 = vmatmul.mubr.bf16.vlgmr.msra.gmra.mrb[64].mxu1 %v2890_v50 }
 0xc4e   : > { %2974 = vmatpush1.bf16.msra.mxu0 %v9162_v5  ;;  %3015 = vmatpush1.bf16.msra.mxu1 %v9163_v42 }
 0xc4f   : > { %2975 = vmatprep.subr.bf16.mxu0 %v9164_v18  ;;  %3016 = vmatprep.subr.bf16.mxu1 %v9165_v41 }
 0xc50   : > { %3005 = vmatprep.mubr.bf16.mxu0 %v9060_v25  ;;  %3046 = vmatprep.mubr.bf16.mxu1 %v9060_v25 }
 0xc52   : > { %2976 = vmatpush1.bf16.msra.mxu0 %v9166_v52  ;;  %3017 = vmatpush1.bf16.msra.mxu1 %v9167_v46 }
 0xc53   : > { %2977 = vmatprep.subr.bf16.mxu0 %v9168_v8  ;;  %3018 = vmatprep.subr.bf16.mxu1 %v9169_v45 }
 0xc56   : > { %2978 = vmatpush1.bf16.msra.mxu0 %v9170_v22  ;;  %3019 = vmatpush1.bf16.msra.mxu1 %v9171_v33 }
 0xc57   : > { %2979 = vmatprep.subr.bf16.mxu0 %v9172_v55  ;;  %3020 = vmatprep.subr.bf16.mxu1 %v9173_v32 }
 0xc5a   : > { %2980 = vmatpush1.bf16.msra.mxu0 %v9174_v49  ;;  %3021 = vmatpush1.bf16.msra.mxu1 %v9276_v24 }
 0xc5b   : > { %2981 = vmatprep.subr.bf16.mxu0 %v9277_v6  ;;  %3022 = vmatprep.subr.bf16.mxu1 %v9278_v26 }
 0xc5e   : > { %2982 = vmatpush1.bf16.msra.mxu0 %v9279_v12  ;;  %3023 = vmatpush1.bf16.msra.mxu1 %v9280_v11 }
 0xc5f   : > { %2983 = vmatprep.subr.bf16.mxu0 %v9388_v54  ;;  %3024 = vmatprep.subr.bf16.mxu1 %v9389_v21 }
 0xc62   : > { %2984 = vmatpush1.bf16.msra.mxu0 %v9390_v27  ;;  %3025 = vmatpush1.bf16.msra.mxu1 %v9391_v40 }
 0xc63   : > { %2985 = vmatprep.subr.bf16.mxu0 %v9392_v48  ;;  %3026 = vmatprep.subr.bf16.mxu1 %v9393_v17 }
 0xc66   : > { %2986 = vmatpush1.bf16.msra.mxu0 %v9394_v34  ;;  %3027 = vmatpush1.bf16.msra.mxu1 %v9395_v2 }
 0xc67   : > { %2987 = vmatprep.subr.bf16.mxu0 %v9396_v39  ;;  %3028 = vmatprep.subr.bf16.mxu1 %v9397_v43 }
 0xc6a   : > { %2988 = vmatpush1.bf16.msra.mxu0 %v9398_v53  ;;  %3029 = vmatpush1.bf16.msra.mxu1 %v9399_v20 }
 0xc6b   : > { %5156 = vmatprep.subr.bf16.mxu0 %v7657_v60  ;;  %5178 = vmatprep.subr.bf16.mxu1 %v7660_v59 }
 0xc6d   : > { %3006 = vmatmul.mubr.bf16.vlgmr.msra.gmra.mrb[68].mxu0 %v2890_v50  ;;  %3047 = vmatmul.mubr.bf16.vlgmr.msra.gmra.mrb[68].mxu1 %v2890_v50  ;;  %v7687_v50 = vld [vmem:[#allocation7 + $0x10] sm:$0xff]  }
 0xc6e   : > { %5157 = vmatpush3.bf16.msra.mxu0 %v7663_v44  ;;  %5179 = vmatpush3.bf16.msra.mxu1 %v7666_v16  ;;  %9410 = vst [vmem:[#allocation76_spill] sm:$0xff] %v7687_v50 }
 0xc6f   : > { %5158 = vmatprep.subr.bf16.mxu0 %v7669_v15  ;;  %5180 = vmatprep.subr.bf16.mxu1 %v7672_v13  ;;  %v7690_v13 = vld [vmem:[#allocation7 + $0x90] sm:$0xff]  }
 0xc70   : > { %9411 = vst [vmem:[#allocation77_spill] sm:$0xff] %v7690_v13 }
 0xc72   : > { %5159 = vmatpush3.bf16.msra.mxu0 %v7675_v56  ;;  %5181 = vmatpush3.bf16.msra.mxu1 %v7678_v58  ;;  %v7693_v56 = vld [vmem:[#allocation7 + $0x58] sm:$0xff]  }
 0xc73   : > { %5160 = vmatprep.subr.bf16.mxu0 %v7681_v10  ;;  %5182 = vmatprep.subr.bf16.mxu1 %v7684_v61  ;;  %9412 = vst [vmem:[#allocation78_spill] sm:$0xff] %v7693_v56  ;;  %v7696_v58 = vld [vmem:[#allocation7 + $0xd8] sm:$0xff]  }
 0xc74   : > { %9413 = vst [vmem:[#allocation79_spill] sm:$0xff] %v7696_v58  ;;  %v7699_v10 = vld [vmem:[#allocation7 + $0x18] sm:$0xff]  }
 0xc75   : > { %9414 = vst [vmem:[#allocation80_spill] sm:$0xff] %v7699_v10  ;;  %v7702_v61 = vld [vmem:[#allocation7 + $0x98] sm:$0xff]  }
 0xc76   : > { %5161 = vmatpush3.bf16.msra.mxu0 %v7687_v50  ;;  %5183 = vmatpush3.bf16.msra.mxu1 %v7690_v13  ;;  %9415 = vst [vmem:[#allocation154_spill] sm:$0xff] %v7702_v61  ;;  %v7705_v50 = vld [vmem:[#allocation7 + $0x60] sm:$0xff]  }
 0xc77   : > { %5162 = vmatprep.subr.bf16.mxu0 %v7693_v56  ;;  %5184 = vmatprep.subr.bf16.mxu1 %v7696_v58  ;;  %9416 = vst [vmem:[#allocation81_spill] sm:$0xff] %v7705_v50  ;;  %v7708_v13 = vld [vmem:[#allocation7 + $0xe0] sm:$0xff]  }
 0xc78   : > { %9417 = vst [vmem:[#allocation82_spill] sm:$0xff] %v7708_v13  ;;  %v7711_v56 = vld [vmem:[#allocation7 + $0x20] sm:$0xff]  }
 0xc79   : > { %9418 = vst [vmem:[#allocation83_spill] sm:$0xff] %v7711_v56  ;;  %v7714_v58 = vld [vmem:[#allocation7 + $0xa0] sm:$0xff]  }
 0xc7a   : > { %5163 = vmatpush3.bf16.msra.mxu0 %v7699_v10  ;;  %5185 = vmatpush3.bf16.msra.mxu1 %v7702_v61  ;;  %9419 = vst [vmem:[#allocation84_spill] sm:$0xff] %v7714_v58  ;;  %v7717_v10 = vld [vmem:[#allocation7 + $0x68] sm:$0xff]  }
 0xc7b   : > { %5164 = vmatprep.subr.bf16.mxu0 %v7705_v50  ;;  %5186 = vmatprep.subr.bf16.mxu1 %v7708_v13  ;;  %9420 = vst [vmem:[#allocation85_spill] sm:$0xff] %v7717_v10  ;;  %v7720_v61 = vld [vmem:[#allocation7 + $0xe8] sm:$0xff]  }
 0xc7c   : > { %9421 = vst [vmem:[#allocation98_spill] sm:$0xff] %v7720_v61  ;;  %v7723_v50 = vld [vmem:[#allocation7 + $0x28] sm:$0xff]  }
 0xc7d   : > { %9422 = vst [vmem:[#allocation99_spill] sm:$0xff] %v7723_v50  ;;  %v7726_v13 = vld [vmem:[#allocation7 + $0xa8] sm:$0xff]  }
 0xc7e   : > { %5165 = vmatpush3.bf16.msra.mxu0 %v7711_v56  ;;  %5187 = vmatpush3.bf16.msra.mxu1 %v7714_v58  ;;  %9423 = vst [vmem:[#allocation100_spill] sm:$0xff] %v7726_v13  ;;  %v7729_v56 = vld [vmem:[#allocation7 + $0x70] sm:$0xff]  }
 0xc7f   : > { %5166 = vmatprep.subr.bf16.mxu0 %v7717_v10  ;;  %5188 = vmatprep.subr.bf16.mxu1 %v7720_v61  ;;  %9424 = vst [vmem:[#allocation101_spill] sm:$0xff] %v7729_v56  ;;  %v7732_v58 = vld [vmem:[#allocation7 + $0xf0] sm:$0xff]  }
 0xc80   : > { %9425 = vst [vmem:[#allocation102_spill] sm:$0xff] %v7732_v58  ;;  %v7735_v10 = vld [vmem:[#allocation7 + $0x30] sm:$0xff]  }
 0xc81   : > { %9426 = vst [vmem:[#allocation103_spill] sm:$0xff] %v7735_v10  ;;  %v7738_v61 = vld [vmem:[#allocation7 + $0xb0] sm:$0xff]  }
 0xc82   : > { %5167 = vmatpush3.bf16.msra.mxu0 %v7723_v50  ;;  %5189 = vmatpush3.bf16.msra.mxu1 %v7726_v13  ;;  %9427 = vst [vmem:[#allocation104_spill] sm:$0xff] %v7738_v61  ;;  %v7741_v50 = vld [vmem:[#allocation7 + $0x78] sm:$0xff]  }
 0xc83   : > { %5168 = vmatprep.subr.bf16.mxu0 %v7729_v56  ;;  %5190 = vmatprep.subr.bf16.mxu1 %v7732_v58  ;;  %9428 = vst [vmem:[#allocation105_spill] sm:$0xff] %v7741_v50  ;;  %v7744_v13 = vld [vmem:[#allocation7 + $0xf8] sm:$0xff]  }
 0xc84   : > { %9429 = vst [vmem:[#allocation106_spill] sm:$0xff] %v7744_v13  ;;  %v7747_v56 = vld [vmem:[#allocation7 + $0x38] sm:$0xff]  }
 0xc85   : > { %9430 = vst [vmem:[#allocation107_spill] sm:$0xff] %v7747_v56  ;;  %v7750_v58 = vld [vmem:[#allocation7 + $0xb8] sm:$0xff]  }
 0xc86   : > { %5169 = vmatpush3.bf16.msra.mxu0 %v7735_v10  ;;  %5191 = vmatpush3.bf16.msra.mxu1 %v7738_v61  ;;  %9431 = vst [vmem:[#allocation108_spill] sm:$0xff] %v7750_v58  ;;  %v7753_v10 = vld [vmem:[#allocation7 + $0x140] sm:$0xff]  }
 0xc87   : > { %5170 = vmatprep.subr.bf16.mxu0 %v7741_v50  ;;  %5192 = vmatprep.subr.bf16.mxu1 %v7744_v13  ;;  %9432 = vst [vmem:[#allocation109_spill] sm:$0xff] %v7753_v10  ;;  %v7756_v61 = vld [vmem:[#allocation7 + $0x1c0] sm:$0xff]  }
 0xc88   : > { %9433 = vst [vmem:[#allocation110_spill] sm:$0xff] %v7756_v61 }
 0xc8a   : > { %5171 = vmatpush3.bf16.msra.mxu0 %v7747_v56  ;;  %5193 = vmatpush3.bf16.msra.mxu1 %v7750_v58 }
 0xc8b   : > { %5200 = vmatprep.subr.bf16.mxu0 %v7753_v10  ;;  %5222 = vmatprep.subr.bf16.mxu1 %v7756_v61 }
 0xd20   : > { %v2925_v50 = vpop.f32.mrb[64].mxu0  ;;  %v2966_v15 = vpop.f32.mrb[64].mxu1 }
 0xd21   : > { %vm3055_vm8 = vcmp.ge.f32.partialorder %v2925_v50, 0.0  ;;  %vm3057_vm9 = vcmp.ge.f32.partialorder %v2966_v15, 0.0  ;;  %v2927_v13 = vpop.f32.mrb[65].mxu0  ;;  %v2968_v16 = vpop.f32.mrb[65].mxu1 }
 0xd22   : > { %v3063_v56 = vsel %vm3055_vm8, 0.007843138, %v9141_v7  ;;  %v3065_v44 = vsel %vm3057_vm9, 0.007843138, %v9141_v7  ;;  %vm3056_vm10 = vcmp.ge.f32.partialorder %v2927_v13, 0.0  ;;  %vm3058_vm11 = vcmp.ge.f32.partialorder %v2968_v16, 0.0 }
 0xd23   : > { %v3071_v58 = vadd.f32 %v3063_v56, %v7506_v1  ;;  %v3073_v10 = vadd.f32 %v3065_v44, %v7509_v37  ;;  %v3064_v59 = vsel %vm3056_vm10, 0.007843138, %v9141_v7  ;;  %v3066_v61 = vsel %vm3058_vm11, 0.007843138, %v9141_v7  ;;  %v2929_v60 = vpop.f32.mrb[66].mxu0  ;;  %v2970_v20 = vpop.f32.mrb[66].mxu1 }
 0xd24   : > { %v3072_v15 = vadd.f32 %v3064_v59, %v7512_v23  ;;  %v3074_v50 = vadd.f32 %v3066_v61, %v7515_v57  ;;  %v2930_v53 = vpop.f32.mrb[67].mxu0  ;;  %v2971_v43 = vpop.f32.mrb[67].mxu1  ;;  %v7791_v59 = vld [vmem:[#allocation7 + $0x100] sm:$0xff]   ;;  %v7797_v56 = vld [vmem:[#allocation7 + $0x148] sm:$0xff]  }
 0xd25   : > { %v3079_v39 = vmax.f32 %v6583_v0, %v3071_v58  ;;  %v3081_v16 = vmax.f32 %v6587_v14, %v3073_v10  ;;  %9434 = vst [vmem:[#allocation111_spill] sm:$0xff] %v7791_v59  ;;  %v7794_v13 = vld [vmem:[#allocation7 + $0x180] sm:$0xff]   ;;  %9436 = vst [vmem:[#allocation113_spill] sm:$0xff] %v7797_v56  ;;  %v7800_v58 = vld [vmem:[#allocation7 + $0x1c8] sm:$0xff]  }
 0xd26   : > { %v3080_v1 = vmax.f32 %v9117_v9, %v3072_v15  ;;  %v3082_v37 = vmax.f32 %v9118_v31, %v3074_v50  ;;  %9435 = vst [vmem:[#allocation112_spill] sm:$0xff] %v7794_v13  ;;  %9437 = vst [vmem:[#allocation114_spill] sm:$0xff] %v7800_v58  ;;  %v7803_v10 = vld [vmem:[#allocation7 + $0x108] sm:$0xff]   ;;  %v7809_v15 = vld [vmem:[#allocation7 + $0x150] sm:$0xff]  }
 0xd27   : > { %v7772_v44 = vmin.f32 %v6592_v51, %v3079_v39  ;;  %v7775_v60 = vmin.f32 %v6594_v38, %v3081_v16  ;;  %9438 = vst [vmem:[#allocation115_spill] sm:$0xff] %v7803_v10  ;;  %v7806_v61 = vld [vmem:[#allocation7 + $0x188] sm:$0xff]   ;;  %9440 = vst [vmem:[#allocation117_spill] sm:$0xff] %v7809_v15  ;;  %v7812_v50 = vld [vmem:[#allocation7 + $0x1d0] sm:$0xff]  }
 0xd28   : > { %v7778_v23 = vmin.f32 %v9221_v62, %v3080_v1  ;;  %v7781_v57 = vmin.f32 %v9222_v63, %v3082_v37  ;;  %9439 = vst [vmem:[#allocation116_spill] sm:$0xff] %v7806_v61  ;;  %9441 = vst [vmem:[#allocation118_spill] sm:$0xff] %v7812_v50  ;;  %v7815_v16 = vld [vmem:[#allocation7 + $0x110] sm:$0xff]   ;;  %v7821_v37 = vld [vmem:[#allocation7 + $0x158] sm:$0xff]  }
 0xd29   : > { %v3095_v20 = vpack.c.bf16 %v7772_v44, %v7772_v44  ;;  %v3097_v39 = vpack.c.bf16 %v7775_v60, %v7775_v60  ;;  %9442 = vst [vmem:[#allocation119_spill] sm:$0xff] %v7815_v16  ;;  %v7818_v1 = vld [vmem:[#allocation7 + $0x190] sm:$0xff]   ;;  %9444 = vst [vmem:[#allocation121_spill] sm:$0xff] %v7821_v37 }
 0xd2a   : > { %v3096_v43 = vpack.c.bf16 %v7778_v23, %v7778_v23  ;;  %v3098_v53 = vpack.c.bf16 %v7781_v57, %v7781_v57  ;;  %9443 = vst [vmem:[#allocation120_spill] sm:$0xff] %v7818_v1 }
 0xd2c   : > { %3135 = vmatprep.mubr.bf16.mxu0 %v3096_v43  ;;  %3175 = vmatprep.mubr.bf16.mxu1 %v3098_v53  ;;  %v7824_v43 = vld [vmem:[#allocation7 + $0x1d8] sm:$0xff]  }
 0xd2d   : > { %3136 = vmatmul.mubr.bf16.vlgmr.msra.gmra.mrb[72].mxu0 %v3095_v20  ;;  %3176 = vmatmul.mubr.bf16.vlgmr.msra.gmra.mrb[72].mxu1 %v3097_v39  ;;  %9445 = vst [vmem:[#allocation122_spill] sm:$0xff] %v7824_v43  ;;  %v7827_v53 = vld [vmem:[#allocation7 + $0x118] sm:$0xff]   ;;  %v7833_v39 = vld [vmem:[#allocation7 + $0x160] sm:$0xff]  }
 0xd2e   : > { %5201 = vmatpush3.bf16.msra.mxu0 %v7791_v59  ;;  %5223 = vmatpush3.bf16.msra.mxu1 %v7794_v13  ;;  %9446 = vst [vmem:[#allocation123_spill] sm:$0xff] %v7827_v53  ;;  %v7830_v20 = vld [vmem:[#allocation7 + $0x198] sm:$0xff]   ;;  %9448 = vst [vmem:[#allocation125_spill] sm:$0xff] %v7833_v39  ;;  %v7875_v13 = vld [vmem:[#allocation7 + $0x130] sm:$0xff]  }
 0xd2f   : > { %5202 = vmatprep.subr.bf16.mxu0 %v7797_v56  ;;  %5224 = vmatprep.subr.bf16.mxu1 %v7800_v58  ;;  %9447 = vst [vmem:[#allocation124_spill] sm:$0xff] %v7830_v20  ;;  %9459 = vst [vmem:[#allocation135_spill] sm:$0xff] %v7875_v13 }
 0xd32   : > { %5203 = vmatpush3.bf16.msra.mxu0 %v7803_v10  ;;  %5225 = vmatpush3.bf16.msra.mxu1 %v7806_v61 }
 0xd33   : > { %5204 = vmatprep.subr.bf16.mxu0 %v7809_v15  ;;  %5226 = vmatprep.subr.bf16.mxu1 %v7812_v50 }
 0xd36   : > { %5205 = vmatpush3.bf16.msra.mxu0 %v7815_v16  ;;  %5227 = vmatpush3.bf16.msra.mxu1 %v7818_v1  ;;  %v7836_v1 = vld [vmem:[#allocation7 + $0x1e0] sm:$0xff]  }
 0xd37   : > { %5206 = vmatprep.subr.bf16.mxu0 %v7821_v37  ;;  %5228 = vmatprep.subr.bf16.mxu1 %v7824_v43  ;;  %9449 = vst [vmem:[#allocation126_spill] sm:$0xff] %v7836_v1  ;;  %v7839_v37 = vld [vmem:[#allocation7 + $0x120] sm:$0xff]  }
 0xd38   : > { %9450 = vst [vmem:[#allocation127_spill] sm:$0xff] %v7839_v37  ;;  %v7842_v43 = vld [vmem:[#allocation7 + $0x1a0] sm:$0xff]  }
 0xd39   : > { %9451 = vst [vmem:[#allocation128_spill] sm:$0xff] %v7842_v43 }
 0xd3a   : > { %5207 = vmatpush3.bf16.msra.mxu0 %v7827_v53  ;;  %5229 = vmatpush3.bf16.msra.mxu1 %v7830_v20  ;;  %v7845_v53 = vld [vmem:[#allocation7 + $0x168] sm:$0xff]  }
 0xd3b   : > { %5208 = vmatprep.subr.bf16.mxu0 %v7833_v39  ;;  %5230 = vmatprep.subr.bf16.mxu1 %v7836_v1  ;;  %9452 = vst [vmem:[#allocation129_spill] sm:$0xff] %v7845_v53  ;;  %v7848_v20 = vld [vmem:[#allocation7 + $0x1e8] sm:$0xff]  }
 0xd3c   : > { %9453 = vst [vmem:[#allocation130_spill] sm:$0xff] %v7848_v20 }
 0xd3e   : > { %5209 = vmatpush3.bf16.msra.mxu0 %v7839_v37  ;;  %5231 = vmatpush3.bf16.msra.mxu1 %v7842_v43  ;;  %v7853_v43 = vld [vmem:[#allocation7 + $0x128] sm:$0xff]  }
 0xd3f   : > { %5210 = vmatprep.subr.bf16.mxu0 %v7845_v53  ;;  %5232 = vmatprep.subr.bf16.mxu1 %v7848_v20  ;;  %9454 = vst [vmem:[#allocation131_spill] sm:$0xff] %v7853_v43  ;;  %v7856_v53 = vld [vmem:[#allocation7 + $0x1a8] sm:$0xff]  }
 0xd40   : > { %v3007_v39 = vpop.f32.mrb[68].mxu0  ;;  %v3048_v16 = vpop.f32.mrb[68].mxu1  ;;  %9455 = vst [vmem:[#allocation132_spill] sm:$0xff] %v7856_v53 }
 0xd41   : > { %vm3059_vm12 = vcmp.ge.f32.partialorder %v3007_v39, 0.0  ;;  %vm3061_vm13 = vcmp.ge.f32.partialorder %v3048_v16, 0.0  ;;  %v3009_v1 = vpop.f32.mrb[69].mxu0  ;;  %v3050_v50 = vpop.f32.mrb[69].mxu1 }
 0xd42   : > { %v3067_v37 = vsel %vm3059_vm12, 0.007843138, %v9141_v7  ;;  %v3069_v15 = vsel %vm3061_vm13, 0.007843138, %v9141_v7  ;;  %vm3060_vm14 = vcmp.ge.f32.partialorder %v3009_v1, 0.0  ;;  %vm3062_vm15 = vcmp.ge.f32.partialorder %v3050_v50, 0.0  ;;  %5211 = vmatpush3.bf16.msra.mxu0 %v7853_v43  ;;  %5233 = vmatpush3.bf16.msra.mxu1 %v7856_v53 }
 0xd43   : > { %v3075_v20 = vadd.f32 %v3067_v37, %v7564_v29  ;;  %v3077_v16 = vadd.f32 %v3069_v15, %v7567_v36  ;;  %v3068_v39 = vsel %vm3060_vm14, 0.007843138, %v9141_v7  ;;  %v3070_v61 = vsel %vm3062_vm15, 0.007843138, %v9141_v7  ;;  %v3011_v10 = vpop.f32.mrb[70].mxu0  ;;  %v3052_v58 = vpop.f32.mrb[70].mxu1 }
 0xd44   : > { %v7863_v1 = vld [vmem:[#allocation7 + $0x170] sm:$0xff]   ;;  %v3076_v53 = vadd.f32 %v3068_v39, %v7572_v28  ;;  %v3078_v29 = vadd.f32 %v3070_v61, %v7575_v35  ;;  %v3012_v37 = vpop.f32.mrb[71].mxu0  ;;  %v3053_v36 = vpop.f32.mrb[71].mxu1  ;;  %v9458_v10 = vld [vmem:[#allocation51_spill] sm:$0xff]  ;;  %v9461_v28 = vld [vmem:[#allocation16_spill] sm:$0xff] }
 0xd45   : > { %9456 = vst [vmem:[#allocation133_spill] sm:$0xff] %v7863_v1  ;;  %5212 = vmatprep.subr.bf16.mxu0 %v7863_v1  ;;  %v7866_v50 = vld [vmem:[#allocation7 + $0x1f0] sm:$0xff]   ;;  %v3083_v15 = vmax.f32 %v6666_v19, %v3075_v20  ;;  %v3085_v43 = vmax.f32 %v6670_v3, %v3077_v16  ;;  %v9463_v61 = vld [vmem:[#allocation17_spill] sm:$0xff]  ;;  %v7887_v20 = vld [vmem:[#allocation7 + $0x178] sm:$0xff]  }
 0xd46   : > { %9457 = vst [vmem:[#allocation134_spill] sm:$0xff] %v7866_v50  ;;  %5234 = vmatprep.subr.bf16.mxu1 %v7866_v50  ;;  %v3084_v58 = vmax.f32 %v6604_v4, %v3076_v53  ;;  %v3086_v56 = vmax.f32 %v9458_v10, %v3078_v29  ;;  %5213 = vmatpush3.bf16.msra.mxu0 %v7875_v13  ;;  %v7878_v1 = vld [vmem:[#allocation7 + $0x1b0] sm:$0xff]   ;;  %9465 = vst [vmem:[#allocation139_spill] sm:$0xff] %v7887_v20  ;;  %v7890_v53 = vld [vmem:[#allocation7 + $0x1f8] sm:$0xff]  }
 0xd47   : > { %9460 = vst [vmem:[#allocation136_spill] sm:$0xff] %v7878_v1  ;;  %5235 = vmatpush3.bf16.msra.mxu1 %v7878_v1  ;;  %v7882_v35 = vmin.f32 %v9461_v28, %v3083_v15  ;;  %v7885_v39 = vmin.f32 %v9463_v61, %v3085_v43  ;;  %5214 = vmatprep.subr.bf16.mxu0 %v7887_v20  ;;  %9466 = vst [vmem:[#allocation140_spill] sm:$0xff] %v7890_v53  ;;  %v9467_v16 = vld [vmem:[#allocation50_spill] sm:$0xff]  ;;  %v9469_v37 = vld [vmem:[#allocation52_spill] sm:$0xff] }
 0xd48   : > { %5236 = vmatprep.subr.bf16.mxu1 %v7890_v53  ;;  %v7894_v29 = vmin.f32 %v9467_v16, %v3084_v58  ;;  %v7897_v36 = vmin.f32 %v9469_v37, %v3086_v56  ;;  %v7899_v1 = vld [vmem:[#allocation7 + $0x138] sm:$0xff]   ;;  %v9473_v37 = vld [vmem:[#allocation20_spill] sm:$0xff]  ;;  %v9474_v16 = vld [vmem:[#allocation22_spill] sm:$0xff] }
 0xd49   : > { %9462 = vst [vmem:[#allocation137_spill] sm:$0xff] %v7882_v35  ;;  %9464 = vst [vmem:[#allocation138_spill] sm:$0xff] %v7885_v39  ;;  %v7902_v43 = vld [vmem:[#allocation7 + $0x1b8] sm:$0xff]   ;;  %v3099_v58 = vpack.c.bf16 %v7882_v35, %v7882_v35  ;;  %v3101_v56 = vpack.c.bf16 %v7885_v39, %v7885_v39  ;;  %v9477_v20 = vld [vmem:[#allocation24_spill] sm:$0xff] }
 0xd4a   : > { %9468 = vst [vmem:[#allocation141_spill] sm:$0xff] %v7894_v29  ;;  %9470 = vst [vmem:[#allocation142_spill] sm:$0xff] %v7897_v36  ;;  %5215 = vmatpush3.bf16.msra.mxu0 %v7899_v1  ;;  %v3100_v15 = vpack.c.bf16 %v7894_v29, %v7894_v29  ;;  %v3102_v53 = vpack.c.bf16 %v7897_v36, %v7897_v36  ;;  %v9478_v61 = vld [vmem:[#allocation25_spill] sm:$0xff]  ;;  %v9479_v28 = vld [vmem:[#allocation26_spill] sm:$0xff] }
 0xd4b   : > { %9471 = vst [vmem:[#allocation143_spill] sm:$0xff] %v7899_v1  ;;  %9472 = vst [vmem:[#allocation144_spill] sm:$0xff] %v7902_v43  ;;  %5237 = vmatpush3.bf16.msra.mxu1 %v7902_v43  ;;  %3274 = vmatprep.subr.bf16.mxu0 %v9473_v37  ;;  %v9475_v43 = vld [vmem:[#allocation21_spill] sm:$0xff]  ;;  %v9476_v1 = vld [vmem:[#allocation23_spill] sm:$0xff] }
 0xd4c   : > { %3315 = vmatprep.subr.bf16.mxu1 %v9474_v16  ;;  %3215 = vmatprep.mubr.bf16.mxu0 %v3100_v15  ;;  %v9480_v37 = vld [vmem:[#allocation27_spill] sm:$0xff]  ;;  %v9481_v15 = vld [vmem:[#allocation28_spill] sm:$0xff] }
 0xd4d   : > { %3255 = vmatprep.mubr.bf16.mxu1 %v3102_v53  ;;  %3216 = vmatmul.mubr.bf16.vlgmr.msra.gmra.mrb[76].mxu0 %v3099_v58  ;;  %v9482_v53 = vld [vmem:[#allocation29_spill] sm:$0xff]  ;;  %v9483_v58 = vld [vmem:[#allocation30_spill] sm:$0xff]  ;;  %v9489_v16 = vld [vmem:[#allocation40_spill] sm:$0xff] }
 0xd4e   : > { %3256 = vmatmul.mubr.bf16.vlgmr.msra.gmra.mrb[76].mxu1 %v3101_v56  ;;  %3275 = vmatpush1.bf16.msra.mxu0 %v9475_v43  ;;  %v9484_v56 = vld [vmem:[#allocation31_spill] sm:$0xff]  ;;  %v9488_v43 = vld [vmem:[#allocation38_spill] sm:$0xff] }
 0xd4f   : > { %3316 = vmatpush1.bf16.msra.mxu1 %v9476_v1  ;;  %3276 = vmatprep.subr.bf16.mxu0 %v9477_v20  ;;  %v9485_v1 = vld [vmem:[#allocation33_spill] sm:$0xff]  ;;  %v9486_v20 = vld [vmem:[#allocation35_spill] sm:$0xff] }
 0xd50   : > { %3317 = vmatprep.subr.bf16.mxu1 %v9478_v61  ;;  %3306 = vmatprep.mubr.bf16.mxu0 %v9060_v25  ;;  %v9487_v61 = vld [vmem:[#allocation36_spill] sm:$0xff] }
 0xd51   : > { %3347 = vmatprep.mubr.bf16.mxu1 %v9060_v25 }
 0xd52   : > { %3277 = vmatpush1.bf16.msra.mxu0 %v9479_v28  ;;  %v9490_v28 = vld [vmem:[#allocation41_spill] sm:$0xff] }
 0xd53   : > { %3318 = vmatpush1.bf16.msra.mxu1 %v9480_v37  ;;  %3278 = vmatprep.subr.bf16.mxu0 %v9481_v15  ;;  %v9491_v37 = vld [vmem:[#allocation42_spill] sm:$0xff]  ;;  %v9492_v15 = vld [vmem:[#allocation43_spill] sm:$0xff] }
 0xd54   : > { %3319 = vmatprep.subr.bf16.mxu1 %v9482_v53  ;;  %v9493_v53 = vld [vmem:[#allocation44_spill] sm:$0xff] }
 0xd56   : > { %3279 = vmatpush1.bf16.msra.mxu0 %v9483_v58  ;;  %v9494_v58 = vld [vmem:[#allocation53_spill] sm:$0xff] }
 0xd57   : > { %3320 = vmatpush1.bf16.msra.mxu1 %v9484_v56  ;;  %3280 = vmatprep.subr.bf16.mxu0 %v9485_v1  ;;  %v9495_v56 = vld [vmem:[#allocation54_spill] sm:$0xff]  ;;  %v9496_v1 = vld [vmem:[#allocation55_spill] sm:$0xff] }
 0xd58   : > { %3321 = vmatprep.subr.bf16.mxu1 %v9486_v20  ;;  %v9497_v20 = vld [vmem:[#allocation56_spill] sm:$0xff] }
 0xd5a   : > { %3281 = vmatpush1.bf16.msra.mxu0 %v9487_v61  ;;  %v9498_v61 = vld [vmem:[#allocation57_spill] sm:$0xff] }
 0xd5b   : > { %3322 = vmatpush1.bf16.msra.mxu1 %v9488_v43  ;;  %3282 = vmatprep.subr.bf16.mxu0 %v9489_v16  ;;  %v9499_v43 = vld [vmem:[#allocation58_spill] sm:$0xff]  ;;  %v9500_v16 = vld [vmem:[#allocation59_spill] sm:$0xff] }
 0xd5c   : > { %3323 = vmatprep.subr.bf16.mxu1 %v9490_v28  ;;  %v9501_v28 = vld [vmem:[#allocation60_spill] sm:$0xff] }
 0xd5e   : > { %3283 = vmatpush1.bf16.msra.mxu0 %v9491_v37  ;;  %v9502_v37 = vld [vmem:[#allocation61_spill] sm:$0xff] }
 0xd5f   : > { %3324 = vmatpush1.bf16.msra.mxu1 %v9492_v15  ;;  %3284 = vmatprep.subr.bf16.mxu0 %v9493_v53  ;;  %v9503_v15 = vld [vmem:[#allocation62_spill] sm:$0xff]  ;;  %v9504_v53 = vld [vmem:[#allocation63_spill] sm:$0xff] }
 0xd60   : > { %3325 = vmatprep.subr.bf16.mxu1 %v9494_v58  ;;  %v9505_v58 = vld [vmem:[#allocation64_spill] sm:$0xff] }
 0xd62   : > { %3285 = vmatpush1.bf16.msra.mxu0 %v9495_v56  ;;  %v9506_v56 = vld [vmem:[#allocation65_spill] sm:$0xff] }
 0xd63   : > { %3326 = vmatpush1.bf16.msra.mxu1 %v9496_v1  ;;  %3286 = vmatprep.subr.bf16.mxu0 %v9497_v20 }
 0xd64   : > { %3327 = vmatprep.subr.bf16.mxu1 %v9498_v61 }
 0xd66   : > { %3287 = vmatpush1.bf16.msra.mxu0 %v9499_v43 }
 0xd67   : > { %3328 = vmatpush1.bf16.msra.mxu1 %v9500_v16  ;;  %3288 = vmatprep.subr.bf16.mxu0 %v9501_v28 }
 0xd68   : > { %3329 = vmatprep.subr.bf16.mxu1 %v9502_v37 }
 0xd6a   : > { %3289 = vmatpush1.bf16.msra.mxu0 %v9503_v15 }
 0xd6b   : > { %3330 = vmatpush1.bf16.msra.mxu1 %v9504_v53  ;;  %3356 = vmatprep.subr.bf16.mxu0 %v9505_v58 }
 0xd6c   : > { %3397 = vmatprep.subr.bf16.mxu1 %v9506_v56 }
 0xe00   : > { %v5172_v1 = vpop.f32.mrb[72].mxu0  ;;  %v5194_v20 = vpop.f32.mrb[72].mxu1 }
 0xe01   : > { %v5173_v13 = vpop.f32.mrb[73].mxu0  ;;  %v5195_v61 = vpop.f32.mrb[73].mxu1 }
 0xe02   : > { %v5174_v10 = vadd.f32 %v5173_v13, %v5172_v1  ;;  %v5196_v43 = vadd.f32 %v5195_v61, %v5194_v20  ;;  %v5175_v4 = vpop.f32.mrb[74].mxu0  ;;  %v5197_v16 = vpop.f32.mrb[74].mxu1 }
 0xe03   : > { %v5176_v3 = vpop.f32.mrb[75].mxu0  ;;  %v5198_v28 = vpop.f32.mrb[75].mxu1 }
 0xe04   : > { %v3138_v37 = vadd.f32 %v7423_v30, %v5174_v10 }
 0xe06   : > { %v3178_v19 = vadd.f32 %v5196_v43, %v3138_v37  ;;  %v9514_v37 = vld [vmem:[#allocation67_spill] sm:$0xff] }
 0xe07   : > { %v9516_v43 = vld [vmem:[#allocation71_spill] sm:$0xff] }
 0xe20   : > { %v5216_v15 = vpop.f32.mrb[76].mxu0 }
 0xe21   : > { %v5238_v36 = vpop.f32.mrb[76].mxu1  ;;  %v5217_v53 = vpop.f32.mrb[77].mxu0 }
 0xe22   : > { %v5239_v29 = vpop.f32.mrb[77].mxu1  ;;  %v5218_v58 = vadd.f32 %v5217_v53, %v5216_v15  ;;  %v5219_v56 = vpop.f32.mrb[78].mxu0  ;;  %v9517_v15 = vld [vmem:[#allocation72_spill] sm:$0xff]  ;;  %v9518_v53 = vld [vmem:[#allocation73_spill] sm:$0xff] }
 0xe23   : > { %v5240_v50 = vadd.f32 %v5239_v29, %v5238_v36  ;;  %v5241_v39 = vpop.f32.mrb[78].mxu1  ;;  %v5220_v35 = vpop.f32.mrb[79].mxu0  ;;  %v9513_v29 = vld [vmem:[#allocation66_spill] sm:$0xff]  ;;  %v9520_v56 = vld [vmem:[#allocation75_spill] sm:$0xff] }
 0xe24   : > { %v5242_v59 = vpop.f32.mrb[79].mxu1  ;;  %v3218_v63 = vadd.f32 %v5218_v58, %v3178_v19  ;;  %v9507_v19 = vld [vmem:[#allocation94_spill] sm:$0xff]  ;;  %v9512_v39 = vld [vmem:[#allocation69_spill] sm:$0xff] }
 0xe25   : > { %v9509_v59 = vld [vmem:[#allocation96_spill] sm:$0xff]  ;;  %v9511_v35 = vld [vmem:[#allocation18_spill] sm:$0xff] }
 0xe26   : > { %v3258_v13 = vadd.f32 %v5240_v50, %v3218_v63  ;;  %v9508_v63 = vld [vmem:[#allocation95_spill] sm:$0xff]  ;;  %v9510_v50 = vld [vmem:[#allocation97_spill] sm:$0xff]  ;;  %v9515_v36 = vld [vmem:[#allocation70_spill] sm:$0xff] }
 0xe27   : > { %v9519_v58 = vld [vmem:[#allocation74_spill] sm:$0xff] }
 0xe28   : > { %3263 = vmax.xlane.f32.xlu0 %v3258_v13 }
 0xeb5   : > { %v3264_v4 = vpop.xlane.xlu0 %3263 }
 0xeb6   : > { %v3265_v1 = vsub.f32 %v3258_v13, %v3264_v4  ;;  %v9521_v13 = vld [vmem:[#allocation76_spill] sm:$0xff]  ;;  %v9522_v4 = vld [vmem:[#allocation77_spill] sm:$0xff] }
 0xeb8   : > { %v3266_v3 = vmul.f32 1.442695, %v3265_v1  ;;  %v9523_v1 = vld [vmem:[#allocation78_spill] sm:$0xff] }
 0xeba   : > { %5665 = vpow2.f32 %v3266_v3  ;;  %v9524_v3 = vld [vmem:[#allocation79_spill] sm:$0xff] }
 0xec4   : > { %v5666_v28 = vpop.eup %5665 }
 0xec5   : > { %3268 = vadd.xlane.f32.xlu1 %v5666_v28 }
 0xf52   : > { %v3269_v30 = vpop.xlane.xlu1 %3268 }
 0xf53   : > { %5667 = vrcp.f32 %v3269_v30  ;;  %v9526_v30 = vld [vmem:[#allocation154_spill] sm:$0xff] }
 0xf5d   : > { %v5668_v10 = vpop.eup %5667 }
 0xf5e   : > { %v3271_v61 = vmul.f32 %v5668_v10, %v5666_v28  ;;  %v9525_v28 = vld [vmem:[#allocation80_spill] sm:$0xff]  ;;  %v9527_v10 = vld [vmem:[#allocation81_spill] sm:$0xff] }
 0xf60   : > { %v3272_v20 = vsub.f32 %v3271_v61, %v9161_v47  ;;  %v9528_v61 = vld [vmem:[#allocation82_spill] sm:$0xff] }
 0xf62   : > { %v3273_v16 = vpack.c.bf16 %v3272_v20, %v3272_v20  ;;  %v9529_v20 = vld [vmem:[#allocation83_spill] sm:$0xff] }
 0xf64   : > { %3307 = vmatmul.mubr.bf16.vlgmr.msra.gmra.mrb[80].mxu0 %v3273_v16  ;;  %3348 = vmatmul.mubr.bf16.vlgmr.msra.gmra.mrb[80].mxu1 %v3273_v16 }
 0xf65   : > { %3357 = vmatpush1.bf16.msra.mxu0 %v9162_v5  ;;  %3398 = vmatpush1.bf16.msra.mxu1 %v9163_v42 }
 0xf66   : > { %3358 = vmatprep.subr.bf16.mxu0 %v9164_v18  ;;  %3399 = vmatprep.subr.bf16.mxu1 %v9165_v41 }
 0xf67   : > { %3388 = vmatprep.mubr.bf16.mxu0 %v9060_v25  ;;  %3429 = vmatprep.mubr.bf16.mxu1 %v9060_v25 }
 0xf69   : > { %3359 = vmatpush1.bf16.msra.mxu0 %v9166_v52  ;;  %3400 = vmatpush1.bf16.msra.mxu1 %v9167_v46 }
 0xf6a   : > { %3360 = vmatprep.subr.bf16.mxu0 %v9168_v8  ;;  %3401 = vmatprep.subr.bf16.mxu1 %v9169_v45 }
 0xf6d   : > { %3361 = vmatpush1.bf16.msra.mxu0 %v9170_v22  ;;  %3402 = vmatpush1.bf16.msra.mxu1 %v9171_v33 }
 0xf6e   : > { %3362 = vmatprep.subr.bf16.mxu0 %v9172_v55  ;;  %3403 = vmatprep.subr.bf16.mxu1 %v9173_v32 }
 0xf71   : > { %3363 = vmatpush1.bf16.msra.mxu0 %v9174_v49  ;;  %3404 = vmatpush1.bf16.msra.mxu1 %v9276_v24 }
 0xf72   : > { %3364 = vmatprep.subr.bf16.mxu0 %v9277_v6  ;;  %3405 = vmatprep.subr.bf16.mxu1 %v9278_v26 }
 0xf75   : > { %3365 = vmatpush1.bf16.msra.mxu0 %v9279_v12  ;;  %3406 = vmatpush1.bf16.msra.mxu1 %v9280_v11 }
 0xf76   : > { %3366 = vmatprep.subr.bf16.mxu0 %v9388_v54  ;;  %3407 = vmatprep.subr.bf16.mxu1 %v9389_v21 }
 0xf79   : > { %3367 = vmatpush1.bf16.msra.mxu0 %v9390_v27  ;;  %3408 = vmatpush1.bf16.msra.mxu1 %v9391_v40 }
 0xf7a   : > { %3368 = vmatprep.subr.bf16.mxu0 %v9392_v48  ;;  %3409 = vmatprep.subr.bf16.mxu1 %v9393_v17 }
 0xf7d   : > { %3369 = vmatpush1.bf16.msra.mxu0 %v9394_v34  ;;  %3410 = vmatpush1.bf16.msra.mxu1 %v9395_v2 }
 0xf7e   : > { %3370 = vmatprep.subr.bf16.mxu0 %v9507_v19  ;;  %3411 = vmatprep.subr.bf16.mxu1 %v9508_v63 }
 0xf81   : > { %3371 = vmatpush1.bf16.msra.mxu0 %v9509_v59  ;;  %3412 = vmatpush1.bf16.msra.mxu1 %v9510_v50 }
 0xf82   : > { %5244 = vmatprep.subr.bf16.mxu0 %v9511_v35  ;;  %5266 = vmatprep.subr.bf16.mxu1 %v9512_v39 }
 0xf84   : > { %3389 = vmatmul.mubr.bf16.vlgmr.msra.gmra.mrb[84].mxu0 %v3273_v16  ;;  %3430 = vmatmul.mubr.bf16.vlgmr.msra.gmra.mrb[84].mxu1 %v3273_v16  ;;  %v9530_v16 = vld [vmem:[#allocation84_spill] sm:$0xff] }
 0xf85   : > { %5245 = vmatpush3.bf16.msra.mxu0 %v9513_v29  ;;  %5267 = vmatpush3.bf16.msra.mxu1 %v9514_v37 }
 0xf86   : > { %5246 = vmatprep.subr.bf16.mxu0 %v9515_v36  ;;  %5268 = vmatprep.subr.bf16.mxu1 %v9516_v43 }
 0xf89   : > { %5247 = vmatpush3.bf16.msra.mxu0 %v9517_v15  ;;  %5269 = vmatpush3.bf16.msra.mxu1 %v9518_v53 }
 0xf8a   : > { %5248 = vmatprep.subr.bf16.mxu0 %v9519_v58  ;;  %5270 = vmatprep.subr.bf16.mxu1 %v9520_v56  ;;  %v9531_v56 = vld [vmem:[#allocation85_spill] sm:$0xff] }
 0xf8d   : > { %5249 = vmatpush3.bf16.msra.mxu0 %v9521_v13  ;;  %5271 = vmatpush3.bf16.msra.mxu1 %v9522_v4  ;;  %v9532_v13 = vld [vmem:[#allocation98_spill] sm:$0xff]  ;;  %v9533_v4 = vld [vmem:[#allocation99_spill] sm:$0xff] }
 0xf8e   : > { %5250 = vmatprep.subr.bf16.mxu0 %v9523_v1  ;;  %5272 = vmatprep.subr.bf16.mxu1 %v9524_v3  ;;  %v9534_v1 = vld [vmem:[#allocation100_spill] sm:$0xff]  ;;  %v9535_v3 = vld [vmem:[#allocation101_spill] sm:$0xff] }
 0xf91   : > { %5251 = vmatpush3.bf16.msra.mxu0 %v9525_v28  ;;  %5273 = vmatpush3.bf16.msra.mxu1 %v9526_v30  ;;  %v9536_v28 = vld [vmem:[#allocation102_spill] sm:$0xff]  ;;  %v9537_v30 = vld [vmem:[#allocation103_spill] sm:$0xff] }
 0xf92   : > { %5252 = vmatprep.subr.bf16.mxu0 %v9527_v10  ;;  %5274 = vmatprep.subr.bf16.mxu1 %v9528_v61  ;;  %v9538_v10 = vld [vmem:[#allocation104_spill] sm:$0xff]  ;;  %v9539_v61 = vld [vmem:[#allocation105_spill] sm:$0xff] }
 0xf95   : > { %5253 = vmatpush3.bf16.msra.mxu0 %v9529_v20  ;;  %5275 = vmatpush3.bf16.msra.mxu1 %v9530_v16  ;;  %v9540_v20 = vld [vmem:[#allocation106_spill] sm:$0xff]  ;;  %v9541_v16 = vld [vmem:[#allocation107_spill] sm:$0xff] }
 0xf96   : > { %5254 = vmatprep.subr.bf16.mxu0 %v9531_v56  ;;  %5276 = vmatprep.subr.bf16.mxu1 %v9532_v13  ;;  %v9542_v56 = vld [vmem:[#allocation108_spill] sm:$0xff]  ;;  %v9543_v13 = vld [vmem:[#allocation109_spill] sm:$0xff] }
 0xf99   : > { %5255 = vmatpush3.bf16.msra.mxu0 %v9533_v4  ;;  %5277 = vmatpush3.bf16.msra.mxu1 %v9534_v1  ;;  %v9544_v4 = vld [vmem:[#allocation110_spill] sm:$0xff] }
 0xf9a   : > { %5256 = vmatprep.subr.bf16.mxu0 %v9535_v3  ;;  %5278 = vmatprep.subr.bf16.mxu1 %v9536_v28 }
 0xf9d   : > { %5257 = vmatpush3.bf16.msra.mxu0 %v9537_v30  ;;  %5279 = vmatpush3.bf16.msra.mxu1 %v9538_v10 }
 0xf9e   : > { %5258 = vmatprep.subr.bf16.mxu0 %v9539_v61  ;;  %5280 = vmatprep.subr.bf16.mxu1 %v9540_v20 }
 0xfa1   : > { %5259 = vmatpush3.bf16.msra.mxu0 %v9541_v16  ;;  %5281 = vmatpush3.bf16.msra.mxu1 %v9542_v56 }
 0xfa2   : > { %5288 = vmatprep.subr.bf16.mxu0 %v9543_v13  ;;  %5310 = vmatprep.subr.bf16.mxu1 %v9544_v4 }
0x1037   : > { %v3308_v1 = vpop.f32.mrb[80].mxu0  ;;  %v3349_v3 = vpop.f32.mrb[80].mxu1 }
0x1038   : > { %vm3438_vm0 = vcmp.ge.f32.partialorder %v3308_v1, 0.0  ;;  %vm3440_vm1 = vcmp.ge.f32.partialorder %v3349_v3, 0.0  ;;  %v3310_v28 = vpop.f32.mrb[81].mxu0  ;;  %v3351_v30 = vpop.f32.mrb[81].mxu1 }
0x1039   : > { %v3446_v10 = vsel %vm3438_vm0, 0.007843138, %v9141_v7  ;;  %v3448_v61 = vsel %vm3440_vm1, 0.007843138, %v9141_v7  ;;  %vm3439_vm2 = vcmp.ge.f32.partialorder %v3310_v28, 0.0  ;;  %vm3441_vm3 = vcmp.ge.f32.partialorder %v3351_v30, 0.0 }
0x103a   : > { %v3454_v16 = vadd.f32 %v3446_v10, %v7772_v44  ;;  %v3456_v56 = vadd.f32 %v3448_v61, %v7775_v60  ;;  %v3447_v13 = vsel %vm3439_vm2, 0.007843138, %v9141_v7  ;;  %v3449_v4 = vsel %vm3441_vm3, 0.007843138, %v9141_v7  ;;  %v3312_v20 = vpop.f32.mrb[82].mxu0  ;;  %v3353_v58 = vpop.f32.mrb[82].mxu1 }
0x103b   : > { %v3455_v1 = vadd.f32 %v3447_v13, %v7778_v23  ;;  %v3457_v3 = vadd.f32 %v3449_v4, %v7781_v57  ;;  %v3313_v53 = vpop.f32.mrb[83].mxu0  ;;  %v3354_v15 = vpop.f32.mrb[83].mxu1  ;;  %v9545_v57 = vld [vmem:[#allocation39_spill] sm:$0xff]  ;;  %v9547_v4 = vld [vmem:[#allocation112_spill] sm:$0xff]  ;;  %v9548_v61 = vld [vmem:[#allocation113_spill] sm:$0xff] }
0x103c   : > { %v3462_v43 = vmax.f32 %v6583_v0, %v3454_v16  ;;  %v3464_v28 = vmax.f32 %v6587_v14, %v3456_v56  ;;  %v9546_v13 = vld [vmem:[#allocation111_spill] sm:$0xff]  ;;  %v9549_v20 = vld [vmem:[#allocation114_spill] sm:$0xff] }
0x103d   : > { %v3463_v44 = vmax.f32 %v9117_v9, %v3455_v1  ;;  %v3465_v60 = vmax.f32 %v9118_v31, %v3457_v3  ;;  %v9550_v16 = vld [vmem:[#allocation115_spill] sm:$0xff]  ;;  %v9551_v1 = vld [vmem:[#allocation116_spill] sm:$0xff]  ;;  %v9552_v3 = vld [vmem:[#allocation117_spill] sm:$0xff] }
0x103e   : > { %v8030_v30 = vmin.f32 %v6592_v51, %v3462_v43  ;;  %v8033_v10 = vmin.f32 %v6594_v38, %v3464_v28  ;;  %v9553_v28 = vld [vmem:[#allocation118_spill] sm:$0xff]  ;;  %v9577_v14 = vld [vmem:[#allocation51_spill] sm:$0xff] }
0x103f   : > { %v8036_v23 = vmin.f32 %v9221_v62, %v3463_v44  ;;  %v8039_v53 = vmin.f32 %v9545_v57, %v3465_v60  ;;  %v9554_v44 = vld [vmem:[#allocation119_spill] sm:$0xff]  ;;  %v9555_v60 = vld [vmem:[#allocation120_spill] sm:$0xff]  ;;  %v9570_v57 = vld [vmem:[#allocation133_spill] sm:$0xff] }
0x1040   : > { %v3478_v56 = vpack.c.bf16 %v8030_v30, %v8030_v30  ;;  %v3480_v43 = vpack.c.bf16 %v8033_v10, %v8033_v10  ;;  %v9571_v62 = vld [vmem:[#allocation134_spill] sm:$0xff] }
0x1041   : > { %v3479_v15 = vpack.c.bf16 %v8036_v23, %v8036_v23  ;;  %v3481_v58 = vpack.c.bf16 %v8039_v53, %v8039_v53  ;;  %v9573_v38 = vld [vmem:[#allocation142_spill] sm:$0xff] }
0x1042   : > { %v9574_v31 = vld [vmem:[#allocation14_spill] sm:$0xff] }
0x1043   : > { %3518 = vmatprep.mubr.bf16.mxu0 %v3479_v15  ;;  %3558 = vmatprep.mubr.bf16.mxu1 %v3481_v58  ;;  %v9556_v15 = vld [vmem:[#allocation121_spill] sm:$0xff]  ;;  %v9557_v58 = vld [vmem:[#allocation122_spill] sm:$0xff] }
0x1044   : > { %3519 = vmatmul.mubr.bf16.vlgmr.msra.gmra.mrb[88].mxu0 %v3478_v56  ;;  %3559 = vmatmul.mubr.bf16.vlgmr.msra.gmra.mrb[88].mxu1 %v3480_v43  ;;  %v9558_v56 = vld [vmem:[#allocation123_spill] sm:$0xff]  ;;  %v9559_v43 = vld [vmem:[#allocation124_spill] sm:$0xff] }
0x1045   : > { %5289 = vmatpush3.bf16.msra.mxu0 %v9546_v13  ;;  %5311 = vmatpush3.bf16.msra.mxu1 %v9547_v4 }
0x1046   : > { %5290 = vmatprep.subr.bf16.mxu0 %v9548_v61  ;;  %5312 = vmatprep.subr.bf16.mxu1 %v9549_v20  ;;  %v9560_v20 = vld [vmem:[#allocation125_spill] sm:$0xff]  ;;  %v9569_v61 = vld [vmem:[#allocation138_spill] sm:$0xff] }
0x1049   : > { %5291 = vmatpush3.bf16.msra.mxu0 %v9550_v16  ;;  %5313 = vmatpush3.bf16.msra.mxu1 %v9551_v1  ;;  %v9561_v16 = vld [vmem:[#allocation126_spill] sm:$0xff]  ;;  %v9562_v1 = vld [vmem:[#allocation127_spill] sm:$0xff] }
0x104a   : > { %5292 = vmatprep.subr.bf16.mxu0 %v9552_v3  ;;  %5314 = vmatprep.subr.bf16.mxu1 %v9553_v28  ;;  %v9563_v3 = vld [vmem:[#allocation128_spill] sm:$0xff]  ;;  %v9564_v28 = vld [vmem:[#allocation129_spill] sm:$0xff] }
0x104d   : > { %5293 = vmatpush3.bf16.msra.mxu0 %v9554_v44  ;;  %5315 = vmatpush3.bf16.msra.mxu1 %v9555_v60  ;;  %v9565_v44 = vld [vmem:[#allocation130_spill] sm:$0xff] }
0x104e   : > { %5294 = vmatprep.subr.bf16.mxu0 %v9556_v15  ;;  %5316 = vmatprep.subr.bf16.mxu1 %v9557_v58 }
0x1051   : > { %5295 = vmatpush3.bf16.msra.mxu0 %v9558_v56  ;;  %5317 = vmatpush3.bf16.msra.mxu1 %v9559_v43 }
0x1052   : > { %5296 = vmatprep.subr.bf16.mxu0 %v9560_v20  ;;  %5318 = vmatprep.subr.bf16.mxu1 %v9561_v16  ;;  %v9566_v16 = vld [vmem:[#allocation131_spill] sm:$0xff] }
0x1055   : > { %5297 = vmatpush3.bf16.msra.mxu0 %v9562_v1  ;;  %5319 = vmatpush3.bf16.msra.mxu1 %v9563_v3  ;;  %v9567_v1 = vld [vmem:[#allocation132_spill] sm:$0xff]  ;;  %v9568_v3 = vld [vmem:[#allocation137_spill] sm:$0xff] }
0x1056   : > { %5298 = vmatprep.subr.bf16.mxu0 %v9564_v28  ;;  %5320 = vmatprep.subr.bf16.mxu1 %v9565_v44 }
0x1057   : > { %v3390_v60 = vpop.f32.mrb[84].mxu0  ;;  %v3431_v15 = vpop.f32.mrb[84].mxu1 }
0x1058   : > { %vm3442_vm4 = vcmp.ge.f32.partialorder %v3390_v60, 0.0  ;;  %vm3444_vm5 = vcmp.ge.f32.partialorder %v3431_v15, 0.0  ;;  %v3392_v58 = vpop.f32.mrb[85].mxu0  ;;  %v3433_v56 = vpop.f32.mrb[85].mxu1 }
0x1059   : > { %v3450_v43 = vsel %vm3442_vm4, 0.007843138, %v9141_v7  ;;  %v3452_v20 = vsel %vm3444_vm5, 0.007843138, %v9141_v7  ;;  %vm3443_vm6 = vcmp.ge.f32.partialorder %v3392_v58, 0.0  ;;  %vm3445_vm7 = vcmp.ge.f32.partialorder %v3433_v56, 0.0  ;;  %5299 = vmatpush3.bf16.msra.mxu0 %v9566_v16  ;;  %5321 = vmatpush3.bf16.msra.mxu1 %v9567_v1 }
0x105a   : > { %v3458_v28 = vadd.f32 %v3450_v43, %v9568_v3  ;;  %v3460_v44 = vadd.f32 %v3452_v20, %v9569_v61  ;;  %v3451_v4 = vsel %vm3443_vm6, 0.007843138, %v9141_v7  ;;  %v3453_v60 = vsel %vm3445_vm7, 0.007843138, %v9141_v7  ;;  %v3394_v15 = vpop.f32.mrb[86].mxu0  ;;  %v3435_v13 = vpop.f32.mrb[86].mxu1  ;;  %5300 = vmatprep.subr.bf16.mxu0 %v9570_v57  ;;  %5322 = vmatprep.subr.bf16.mxu1 %v9571_v62 }
0x105b   : > { %v9572_v58 = vld [vmem:[#allocation141_spill] sm:$0xff]  ;;  %v3461_v16 = vadd.f32 %v3453_v60, %v9573_v38  ;;  %v3395_v51 = vpop.f32.mrb[87].mxu0  ;;  %v3436_v1 = vpop.f32.mrb[87].mxu1  ;;  %v9575_v43 = vld [vmem:[#allocation15_spill] sm:$0xff]  ;;  %v9579_v13 = vld [vmem:[#allocation136_spill] sm:$0xff] }
0x105c   : > { %v3459_v56 = vadd.f32 %v3451_v4, %v9572_v58  ;;  %v3466_v3 = vmax.f32 %v9574_v31, %v3458_v28  ;;  %v3468_v61 = vmax.f32 %v9575_v43, %v3460_v44  ;;  %v9576_v20 = vld [vmem:[#allocation49_spill] sm:$0xff]  ;;  %v9578_v15 = vld [vmem:[#allocation135_spill] sm:$0xff]  ;;  %v9580_v57 = vld [vmem:[#allocation16_spill] sm:$0xff] }
0x105d   : > { %v3469_v0 = vmax.f32 %v9577_v14, %v3461_v16  ;;  %5301 = vmatpush3.bf16.msra.mxu0 %v9578_v15  ;;  %5323 = vmatpush3.bf16.msra.mxu1 %v9579_v13  ;;  %v9581_v4 = vld [vmem:[#allocation17_spill] sm:$0xff]  ;;  %v9583_v51 = vld [vmem:[#allocation139_spill] sm:$0xff]  ;;  %v9584_v38 = vld [vmem:[#allocation140_spill] sm:$0xff] }
0x105e   : > { %v3467_v9 = vmax.f32 %v9576_v20, %v3459_v56  ;;  %v8088_v62 = vmin.f32 %v9580_v57, %v3466_v3  ;;  %v8091_v58 = vmin.f32 %v9581_v4, %v3468_v61  ;;  %5302 = vmatprep.subr.bf16.mxu0 %v9583_v51  ;;  %5324 = vmatprep.subr.bf16.mxu1 %v9584_v38  ;;  %v9585_v1 = vld [vmem:[#allocation50_spill] sm:$0xff]  ;;  %v9587_v44 = vld [vmem:[#allocation52_spill] sm:$0xff]  ;;  %v9589_v16 = vld [vmem:[#allocation143_spill] sm:$0xff] }
0x105f   : > { %v8099_v60 = vmin.f32 %v9587_v44, %v3469_v0  ;;  %v9590_v56 = vld [vmem:[#allocation144_spill] sm:$0xff]  ;;  %v9592_v0 = vld [vmem:[#allocation22_spill] sm:$0xff]  ;;  %v9596_v38 = vld [vmem:[#allocation25_spill] sm:$0xff] }
0x1060   : > { %9582 = vst [vmem:[#allocation145_spill] sm:$0xff] %v8091_v58  ;;  %v8096_v28 = vmin.f32 %v9585_v1, %v3467_v9  ;;  %v3482_v51 = vpack.c.bf16 %v8088_v62, %v8088_v62  ;;  %v3484_v9 = vpack.c.bf16 %v8091_v58, %v8091_v58  ;;  %v9591_v1 = vld [vmem:[#allocation20_spill] sm:$0xff]  ;;  %v9597_v4 = vld [vmem:[#allocation26_spill] sm:$0xff] }
0x1061   : > { %9588 = vst [vmem:[#allocation147_spill] sm:$0xff] %v8099_v60  ;;  %5303 = vmatpush3.bf16.msra.mxu0 %v9589_v16  ;;  %5325 = vmatpush3.bf16.msra.mxu1 %v9590_v56  ;;  %v3485_v61 = vpack.c.bf16 %v8099_v60, %v8099_v60  ;;  %v9593_v56 = vld [vmem:[#allocation21_spill] sm:$0xff]  ;;  %v9594_v16 = vld [vmem:[#allocation23_spill] sm:$0xff]  ;;  %v9595_v44 = vld [vmem:[#allocation24_spill] sm:$0xff] }
0x1062   : > { %9586 = vst [vmem:[#allocation146_spill] sm:$0xff] %v8096_v28  ;;  %v3483_v3 = vpack.c.bf16 %v8096_v28, %v8096_v28  ;;  %3657 = vmatprep.subr.bf16.mxu0 %v9591_v1  ;;  %3698 = vmatprep.subr.bf16.mxu1 %v9592_v0  ;;  %v9598_v1 = vld [vmem:[#allocation27_spill] sm:$0xff]  ;;  %v9607_v0 = vld [vmem:[#allocation40_spill] sm:$0xff] }
0x1063   : > { %3638 = vmatprep.mubr.bf16.mxu1 %v3485_v61  ;;  %v9601_v61 = vld [vmem:[#allocation30_spill] sm:$0xff] }
0x1064   : > { %3598 = vmatprep.mubr.bf16.mxu0 %v3483_v3  ;;  %3639 = vmatmul.mubr.bf16.vlgmr.msra.gmra.mrb[92].mxu1 %v3484_v9  ;;  %v9599_v3 = vld [vmem:[#allocation28_spill] sm:$0xff]  ;;  %v9602_v9 = vld [vmem:[#allocation31_spill] sm:$0xff] }
0x1065   : > { %3599 = vmatmul.mubr.bf16.vlgmr.msra.gmra.mrb[92].mxu0 %v3482_v51  ;;  %3699 = vmatpush1.bf16.msra.mxu1 %v9594_v16  ;;  %v9600_v51 = vld [vmem:[#allocation29_spill] sm:$0xff] }
0x1066   : > { %3658 = vmatpush1.bf16.msra.mxu0 %v9593_v56  ;;  %3700 = vmatprep.subr.bf16.mxu1 %v9596_v38  ;;  %v9603_v16 = vld [vmem:[#allocation33_spill] sm:$0xff]  ;;  %v9605_v38 = vld [vmem:[#allocation36_spill] sm:$0xff]  ;;  %v9606_v56 = vld [vmem:[#allocation38_spill] sm:$0xff] }
0x1067   : > { %3659 = vmatprep.subr.bf16.mxu0 %v9595_v44  ;;  %3689 = vmatprep.mubr.bf16.mxu0 %v9060_v25  ;;  %v9604_v44 = vld [vmem:[#allocation35_spill] sm:$0xff] }
0x1068   : > { %3730 = vmatprep.mubr.bf16.mxu1 %v9060_v25 }
0x1069   : > { %3701 = vmatpush1.bf16.msra.mxu1 %v9598_v1  ;;  %v9609_v1 = vld [vmem:[#allocation42_spill] sm:$0xff] }
0x106a   : > { %3660 = vmatpush1.bf16.msra.mxu0 %v9597_v4  ;;  %3702 = vmatprep.subr.bf16.mxu1 %v9600_v51  ;;  %v9608_v4 = vld [vmem:[#allocation41_spill] sm:$0xff]  ;;  %v9611_v51 = vld [vmem:[#allocation44_spill] sm:$0xff] }
0x106b   : > { %3661 = vmatprep.subr.bf16.mxu0 %v9599_v3  ;;  %v9610_v3 = vld [vmem:[#allocation43_spill] sm:$0xff] }
0x106d   : > { %3703 = vmatpush1.bf16.msra.mxu1 %v9602_v9  ;;  %v9613_v9 = vld [vmem:[#allocation54_spill] sm:$0xff] }
0x106e   : > { %3662 = vmatpush1.bf16.msra.mxu0 %v9601_v61  ;;  %3704 = vmatprep.subr.bf16.mxu1 %v9604_v44  ;;  %v9612_v61 = vld [vmem:[#allocation53_spill] sm:$0xff]  ;;  %v9615_v44 = vld [vmem:[#allocation56_spill] sm:$0xff] }
0x106f   : > { %3663 = vmatprep.subr.bf16.mxu0 %v9603_v16  ;;  %v9614_v16 = vld [vmem:[#allocation55_spill] sm:$0xff] }
0x1071   : > { %3705 = vmatpush1.bf16.msra.mxu1 %v9606_v56  ;;  %v9617_v56 = vld [vmem:[#allocation58_spill] sm:$0xff] }
0x1072   : > { %3664 = vmatpush1.bf16.msra.mxu0 %v9605_v38  ;;  %3706 = vmatprep.subr.bf16.mxu1 %v9608_v4  ;;  %v9616_v38 = vld [vmem:[#allocation57_spill] sm:$0xff]  ;;  %v9619_v4 = vld [vmem:[#allocation60_spill] sm:$0xff] }
0x1073   : > { %3665 = vmatprep.subr.bf16.mxu0 %v9607_v0  ;;  %v9618_v0 = vld [vmem:[#allocation59_spill] sm:$0xff] }
0x1075   : > { %3707 = vmatpush1.bf16.msra.mxu1 %v9610_v3  ;;  %v9621_v3 = vld [vmem:[#allocation62_spill] sm:$0xff] }
0x1076   : > { %3666 = vmatpush1.bf16.msra.mxu0 %v9609_v1  ;;  %3708 = vmatprep.subr.bf16.mxu1 %v9612_v61  ;;  %v9620_v1 = vld [vmem:[#allocation61_spill] sm:$0xff]  ;;  %v9623_v61 = vld [vmem:[#allocation64_spill] sm:$0xff] }
0x1077   : > { %3667 = vmatprep.subr.bf16.mxu0 %v9611_v51  ;;  %v9622_v51 = vld [vmem:[#allocation63_spill] sm:$0xff] }
0x1079   : > { %3709 = vmatpush1.bf16.msra.mxu1 %v9614_v16 }
0x107a   : > { %3668 = vmatpush1.bf16.msra.mxu0 %v9613_v9  ;;  %3710 = vmatprep.subr.bf16.mxu1 %v9616_v38  ;;  %v9624_v9 = vld [vmem:[#allocation65_spill] sm:$0xff] }
0x107b   : > { %3669 = vmatprep.subr.bf16.mxu0 %v9615_v44 }
0x107d   : > { %3711 = vmatpush1.bf16.msra.mxu1 %v9618_v0 }
0x107e   : > { %3670 = vmatpush1.bf16.msra.mxu0 %v9617_v56  ;;  %3712 = vmatprep.subr.bf16.mxu1 %v9620_v1 }
0x107f   : > { %3671 = vmatprep.subr.bf16.mxu0 %v9619_v4 }
0x1081   : > { %3713 = vmatpush1.bf16.msra.mxu1 %v9622_v51 }
0x1082   : > { %3672 = vmatpush1.bf16.msra.mxu0 %v9621_v3  ;;  %3780 = vmatprep.subr.bf16.mxu1 %v9624_v9  ;;  %v8150_v3 = vld [vmem:[%s8473_s4] ss:$0 sm:$0xff] }
0x1083   : > { %3739 = vmatprep.subr.bf16.mxu0 %v9623_v61 }
0x1117   : > { %v5260_v16 = vpop.f32.mrb[88].mxu0  ;;  %v5282_v44 = vpop.f32.mrb[88].mxu1 }
0x1118   : > { %v5261_v57 = vpop.f32.mrb[89].mxu0  ;;  %v5283_v38 = vpop.f32.mrb[89].mxu1 }
0x1119   : > { %v5262_v13 = vadd.f32 %v5261_v57, %v5260_v16  ;;  %v5284_v56 = vadd.f32 %v5283_v38, %v5282_v44  ;;  %v5263_v15 = vpop.f32.mrb[90].mxu0  ;;  %v5285_v0 = vpop.f32.mrb[90].mxu1 }
0x111a   : > { %v5264_v14 = vpop.f32.mrb[91].mxu0  ;;  %v5286_v4 = vpop.f32.mrb[91].mxu1 }
0x111b   : > { %v3521_v51 = vadd.f32 %v8150_v3, %v5262_v13 }
0x111d   : > { %v3561_v61 = vadd.f32 %v5284_v56, %v3521_v51 }
0x1137   : > { %v5326_v9 = vpop.f32.mrb[92].mxu1 }
0x1138   : > { %v5304_v1 = vpop.f32.mrb[92].mxu0  ;;  %v5327_v43 = vpop.f32.mrb[93].mxu1 }
0x1139   : > { %v5305_v20 = vpop.f32.mrb[93].mxu0  ;;  %v5328_v60 = vadd.f32 %v5327_v43, %v5326_v9  ;;  %v5329_v38 = vpop.f32.mrb[94].mxu1  ;;  %v9636_v9 = vld [vmem:[#allocation81_spill] sm:$0xff] }
0x113a   : > { %v5306_v31 = vadd.f32 %v5305_v20, %v5304_v1  ;;  %v5307_v57 = vpop.f32.mrb[94].mxu0  ;;  %v5330_v44 = vpop.f32.mrb[95].mxu1  ;;  %v9627_v1 = vld [vmem:[#allocation73_spill] sm:$0xff]  ;;  %v9638_v38 = vld [vmem:[#allocation83_spill] sm:$0xff] }
0x113b   : > { %v5308_v15 = vpop.f32.mrb[95].mxu0  ;;  %v9637_v57 = vld [vmem:[#allocation82_spill] sm:$0xff]  ;;  %v9640_v44 = vld [vmem:[#allocation85_spill] sm:$0xff] }
0x113c   : > { %v3601_v14 = vadd.f32 %v5306_v31, %v3561_v61  ;;  %v9625_v31 = vld [vmem:[#allocation71_spill] sm:$0xff]  ;;  %v9632_v61 = vld [vmem:[#allocation78_spill] sm:$0xff]  ;;  %v9639_v15 = vld [vmem:[#allocation84_spill] sm:$0xff] }
0x113e   : > { %v3641_v4 = vadd.f32 %v5328_v60, %v3601_v14  ;;  %v9629_v60 = vld [vmem:[#allocation75_spill] sm:$0xff]  ;;  %v9641_v14 = vld [vmem:[#allocation98_spill] sm:$0xff] }
0x1140   : > { %3646 = vmax.xlane.f32.xlu0 %v3641_v4 }
0x11cd   : > { %v3647_v16 = vpop.xlane.xlu0 %3646 }
0x11ce   : > { %v3648_v0 = vsub.f32 %v3641_v4, %v3647_v16  ;;  %v9642_v4 = vld [vmem:[#allocation99_spill] sm:$0xff]  ;;  %v9643_v16 = vld [vmem:[#allocation100_spill] sm:$0xff] }
0x11d0   : > { %v3649_v28 = vmul.f32 1.442695, %v3648_v0  ;;  %v9644_v0 = vld [vmem:[#allocation101_spill] sm:$0xff] }
0x11d2   : > { %5669 = vpow2.f32 %v3649_v28  ;;  %v9628_v28 = vld [vmem:[#allocation74_spill] sm:$0xff] }
0x11dc   : > { %v5670_v58 = vpop.eup %5669 }
0x11dd   : > { %3651 = vadd.xlane.f32.xlu1 %v5670_v58 }
0x126a   : > { %v3652_v13 = vpop.xlane.xlu1 %3651 }
0x126b   : > { %5671 = vrcp.f32 %v3652_v13  ;;  %v9645_v13 = vld [vmem:[#allocation102_spill] sm:$0xff] }
0x1275   : > { %v5672_v56 = vpop.eup %5671 }
0x1276   : > { %v3654_v51 = vmul.f32 %v5672_v56, %v5670_v58  ;;  %v9626_v58 = vld [vmem:[#allocation72_spill] sm:$0xff]  ;;  %v9646_v56 = vld [vmem:[#allocation103_spill] sm:$0xff] }
0x1278   : > { %v3655_v20 = vsub.f32 %v3654_v51, %v9161_v47  ;;  %v9647_v51 = vld [vmem:[#allocation104_spill] sm:$0xff] }
0x127a   : > { %v3656_v43 = vpack.c.bf16 %v3655_v20, %v3655_v20  ;;  %v9648_v20 = vld [vmem:[#allocation105_spill] sm:$0xff] }
0x127c   : > { %3690 = vmatmul.mubr.bf16.vlgmr.msra.gmra.mrb[96].mxu0 %v3656_v43  ;;  %3731 = vmatmul.mubr.bf16.vlgmr.msra.gmra.mrb[96].mxu1 %v3656_v43 }
0x127d   : > { %3740 = vmatpush1.bf16.msra.mxu0 %v9162_v5  ;;  %3781 = vmatpush1.bf16.msra.mxu1 %v9163_v42 }
0x127e   : > { %3741 = vmatprep.subr.bf16.mxu0 %v9164_v18  ;;  %3782 = vmatprep.subr.bf16.mxu1 %v9165_v41 }
0x127f   : > { %3771 = vmatprep.mubr.bf16.mxu0 %v9060_v25  ;;  %3812 = vmatprep.mubr.bf16.mxu1 %v9060_v25 }
0x1281   : > { %3742 = vmatpush1.bf16.msra.mxu0 %v9166_v52  ;;  %3783 = vmatpush1.bf16.msra.mxu1 %v9167_v46 }
0x1282   : > { %3743 = vmatprep.subr.bf16.mxu0 %v9168_v8  ;;  %3784 = vmatprep.subr.bf16.mxu1 %v9169_v45 }
0x1285   : > { %3744 = vmatpush1.bf16.msra.mxu0 %v9170_v22  ;;  %3785 = vmatpush1.bf16.msra.mxu1 %v9171_v33 }
0x1286   : > { %3745 = vmatprep.subr.bf16.mxu0 %v9172_v55  ;;  %3786 = vmatprep.subr.bf16.mxu1 %v9173_v32 }
0x1289   : > { %3746 = vmatpush1.bf16.msra.mxu0 %v9174_v49  ;;  %3787 = vmatpush1.bf16.msra.mxu1 %v9276_v24 }
0x128a   : > { %3747 = vmatprep.subr.bf16.mxu0 %v9277_v6  ;;  %3788 = vmatprep.subr.bf16.mxu1 %v9278_v26 }
0x128d   : > { %3748 = vmatpush1.bf16.msra.mxu0 %v9279_v12  ;;  %3789 = vmatpush1.bf16.msra.mxu1 %v9280_v11 }
0x128e   : > { %3749 = vmatprep.subr.bf16.mxu0 %v9388_v54  ;;  %3790 = vmatprep.subr.bf16.mxu1 %v9389_v21 }
0x1291   : > { %3750 = vmatpush1.bf16.msra.mxu0 %v9390_v27  ;;  %3791 = vmatpush1.bf16.msra.mxu1 %v9391_v40 }
0x1292   : > { %3751 = vmatprep.subr.bf16.mxu0 %v9392_v48  ;;  %3792 = vmatprep.subr.bf16.mxu1 %v9393_v17 }
0x1295   : > { %3752 = vmatpush1.bf16.msra.mxu0 %v9394_v34  ;;  %3793 = vmatpush1.bf16.msra.mxu1 %v9395_v2 }
0x1296   : > { %3753 = vmatprep.subr.bf16.mxu0 %v9507_v19  ;;  %3794 = vmatprep.subr.bf16.mxu1 %v9508_v63 }
0x1299   : > { %3754 = vmatpush1.bf16.msra.mxu0 %v9509_v59  ;;  %3795 = vmatpush1.bf16.msra.mxu1 %v9510_v50 }
0x129a   : > { %5332 = vmatprep.subr.bf16.mxu0 %v9511_v35  ;;  %5354 = vmatprep.subr.bf16.mxu1 %v9512_v39  ;;  %v9630_v35 = vld [vmem:[#allocation76_spill] sm:$0xff]  ;;  %v9631_v39 = vld [vmem:[#allocation77_spill] sm:$0xff] }
0x129c   : > { %3772 = vmatmul.mubr.bf16.vlgmr.msra.gmra.mrb[100].mxu0 %v3656_v43  ;;  %3813 = vmatmul.mubr.bf16.vlgmr.msra.gmra.mrb[100].mxu1 %v3656_v43  ;;  %v9649_v43 = vld [vmem:[#allocation106_spill] sm:$0xff] }
0x129d   : > { %5333 = vmatpush3.bf16.msra.mxu0 %v9513_v29  ;;  %5355 = vmatpush3.bf16.msra.mxu1 %v9514_v37  ;;  %v9633_v29 = vld [vmem:[#allocation79_spill] sm:$0xff]  ;;  %v9634_v37 = vld [vmem:[#allocation80_spill] sm:$0xff] }
0x129e   : > { %5334 = vmatprep.subr.bf16.mxu0 %v9515_v36  ;;  %5356 = vmatprep.subr.bf16.mxu1 %v9625_v31  ;;  %v9635_v36 = vld [vmem:[#allocation154_spill] sm:$0xff]  ;;  %v9650_v31 = vld [vmem:[#allocation107_spill] sm:$0xff] }
0x12a1   : > { %5335 = vmatpush3.bf16.msra.mxu0 %v9626_v58  ;;  %5357 = vmatpush3.bf16.msra.mxu1 %v9627_v1  ;;  %v9651_v58 = vld [vmem:[#allocation108_spill] sm:$0xff]  ;;  %v9652_v1 = vld [vmem:[#allocation109_spill] sm:$0xff] }
0x12a2   : > { %5336 = vmatprep.subr.bf16.mxu0 %v9628_v28  ;;  %5358 = vmatprep.subr.bf16.mxu1 %v9629_v60  ;;  %v9653_v28 = vld [vmem:[#allocation110_spill] sm:$0xff] }
0x12a5   : > { %5337 = vmatpush3.bf16.msra.mxu0 %v9630_v35  ;;  %5359 = vmatpush3.bf16.msra.mxu1 %v9631_v39 }
0x12a6   : > { %5338 = vmatprep.subr.bf16.mxu0 %v9632_v61  ;;  %5360 = vmatprep.subr.bf16.mxu1 %v9633_v29 }
0x12a9   : > { %5339 = vmatpush3.bf16.msra.mxu0 %v9634_v37  ;;  %5361 = vmatpush3.bf16.msra.mxu1 %v9635_v36 }
0x12aa   : > { %5340 = vmatprep.subr.bf16.mxu0 %v9636_v9  ;;  %5362 = vmatprep.subr.bf16.mxu1 %v9637_v57 }
0x12ad   : > { %5341 = vmatpush3.bf16.msra.mxu0 %v9638_v38  ;;  %5363 = vmatpush3.bf16.msra.mxu1 %v9639_v15 }
0x12ae   : > { %5342 = vmatprep.subr.bf16.mxu0 %v9640_v44  ;;  %5364 = vmatprep.subr.bf16.mxu1 %v9641_v14 }
0x12b1   : > { %5343 = vmatpush3.bf16.msra.mxu0 %v9642_v4  ;;  %5365 = vmatpush3.bf16.msra.mxu1 %v9643_v16 }
0x12b2   : > { %5344 = vmatprep.subr.bf16.mxu0 %v9644_v0  ;;  %5366 = vmatprep.subr.bf16.mxu1 %v9645_v13  ;;  %v9654_v13 = vld [vmem:[#allocation45_spill] sm:$0xff] }
0x12b5   : > { %5345 = vmatpush3.bf16.msra.mxu0 %v9646_v56  ;;  %5367 = vmatpush3.bf16.msra.mxu1 %v9647_v51  ;;  %v9655_v51 = vld [vmem:[#allocation46_spill] sm:$0xff] }
0x12b6   : > { %5346 = vmatprep.subr.bf16.mxu0 %v9648_v20  ;;  %5368 = vmatprep.subr.bf16.mxu1 %v9649_v43  ;;  %v9656_v43 = vld [vmem:[#allocation32_spill] sm:$0xff] }
0x12b9   : > { %5347 = vmatpush3.bf16.msra.mxu0 %v9650_v31  ;;  %5369 = vmatpush3.bf16.msra.mxu1 %v9651_v58  ;;  %v9657_v31 = vld [vmem:[#allocation34_spill] sm:$0xff]  ;;  %v9658_v58 = vld [vmem:[#allocation47_spill] sm:$0xff] }
0x12ba   : > { %5376 = vmatprep.subr.bf16.mxu0 %v9652_v1  ;;  %5398 = vmatprep.subr.bf16.mxu1 %v9653_v28  ;;  %v9659_v28 = vld [vmem:[#allocation48_spill] sm:$0xff] }
0x134f   : > { %v3691_v60 = vpop.f32.mrb[96].mxu0  ;;  %v3732_v35 = vpop.f32.mrb[96].mxu1 }
0x1350   : > { %vm3821_vm8 = vcmp.ge.f32.partialorder %v3691_v60, 0.0  ;;  %vm3823_vm9 = vcmp.ge.f32.partialorder %v3732_v35, 0.0  ;;  %v3693_v39 = vpop.f32.mrb[97].mxu0  ;;  %v3734_v61 = vpop.f32.mrb[97].mxu1  ;;  %v9660_v35 = vld [vmem:[#allocation37_spill] sm:$0xff] }
0x1351   : > { %v3829_v29 = vsel %vm3821_vm8, 0.007843138, %v9141_v7  ;;  %v3831_v37 = vsel %vm3823_vm9, 0.007843138, %v9141_v7  ;;  %vm3822_vm10 = vcmp.ge.f32.partialorder %v3693_v39, 0.0  ;;  %vm3824_vm11 = vcmp.ge.f32.partialorder %v3734_v61, 0.0 }
0x1352   : > { %v3837_v36 = vadd.f32 %v3829_v29, %v8030_v30  ;;  %v3839_v9 = vadd.f32 %v3831_v37, %v8033_v10  ;;  %v3830_v57 = vsel %vm3822_vm10, 0.007843138, %v9141_v7  ;;  %v3832_v38 = vsel %vm3824_vm11, 0.007843138, %v9141_v7  ;;  %v3695_v15 = vpop.f32.mrb[98].mxu0  ;;  %v3736_v44 = vpop.f32.mrb[98].mxu1 }
0x1353   : > { %v3838_v14 = vadd.f32 %v3830_v57, %v8036_v23  ;;  %v3840_v4 = vadd.f32 %v3832_v38, %v8039_v53  ;;  %v3696_v16 = vpop.f32.mrb[99].mxu0  ;;  %v3737_v0 = vpop.f32.mrb[99].mxu1  ;;  %v9661_v53 = vld [vmem:[#allocation39_spill] sm:$0xff]  ;;  %v9663_v57 = vld [vmem:[#allocation112_spill] sm:$0xff]  ;;  %v9664_v38 = vld [vmem:[#allocation113_spill] sm:$0xff] }
0x1354   : > { %v3845_v56 = vmax.f32 %v9654_v13, %v3837_v36  ;;  %v3847_v20 = vmax.f32 %v9655_v51, %v3839_v9  ;;  %v9662_v9 = vld [vmem:[#allocation111_spill] sm:$0xff]  ;;  %v9665_v15 = vld [vmem:[#allocation114_spill] sm:$0xff] }
0x1355   : > { %v3846_v30 = vmax.f32 %v9656_v43, %v3838_v14  ;;  %v3848_v10 = vmax.f32 %v9657_v31, %v3840_v4  ;;  %v9666_v44 = vld [vmem:[#allocation115_spill] sm:$0xff]  ;;  %v9667_v14 = vld [vmem:[#allocation116_spill] sm:$0xff]  ;;  %v9668_v4 = vld [vmem:[#allocation117_spill] sm:$0xff] }
0x1356   : > { %v8233_v1 = vmin.f32 %v9658_v58, %v3845_v56  ;;  %v8236_v60 = vmin.f32 %v9659_v28, %v3847_v20  ;;  %v9669_v16 = vld [vmem:[#allocation118_spill] sm:$0xff]  ;;  %v9670_v0 = vld [vmem:[#allocation119_spill] sm:$0xff]  ;;  %v9671_v56 = vld [vmem:[#allocation120_spill] sm:$0xff] }
0x1357   : > { %v8239_v23 = vmin.f32 %v9660_v35, %v3846_v30  ;;  %v8242_v39 = vmin.f32 %v9661_v53, %v3848_v10  ;;  %v9672_v20 = vld [vmem:[#allocation121_spill] sm:$0xff]  ;;  %v9673_v30 = vld [vmem:[#allocation122_spill] sm:$0xff]  ;;  %v9674_v10 = vld [vmem:[#allocation123_spill] sm:$0xff] }
0x1358   : > { %v3861_v37 = vpack.c.bf16 %v8233_v1, %v8233_v1  ;;  %v3863_v36 = vpack.c.bf16 %v8236_v60, %v8236_v60  ;;  %v9689_v53 = vld [vmem:[#allocation14_spill] sm:$0xff]  ;;  %v9692_v28 = vld [vmem:[#allocation51_spill] sm:$0xff] }
0x1359   : > { %v3862_v61 = vpack.c.bf16 %v8239_v23, %v8239_v23  ;;  %v3864_v29 = vpack.c.bf16 %v8242_v39, %v8242_v39 }
0x135b   : > { %3901 = vmatprep.mubr.bf16.mxu0 %v3862_v61  ;;  %3941 = vmatprep.mubr.bf16.mxu1 %v3864_v29  ;;  %v9675_v61 = vld [vmem:[#allocation124_spill] sm:$0xff]  ;;  %v9676_v29 = vld [vmem:[#allocation125_spill] sm:$0xff] }
0x135c   : > { %3902 = vmatmul.mubr.bf16.vlgmr.msra.gmra.mrb[104].mxu0 %v3861_v37  ;;  %3942 = vmatmul.mubr.bf16.vlgmr.msra.gmra.mrb[104].mxu1 %v3863_v36  ;;  %v9677_v37 = vld [vmem:[#allocation126_spill] sm:$0xff]  ;;  %v9678_v36 = vld [vmem:[#allocation127_spill] sm:$0xff] }
0x135d   : > { %5377 = vmatpush3.bf16.msra.mxu0 %v9662_v9  ;;  %5399 = vmatpush3.bf16.msra.mxu1 %v9663_v57  ;;  %v9679_v9 = vld [vmem:[#allocation128_spill] sm:$0xff]  ;;  %v9680_v57 = vld [vmem:[#allocation129_spill] sm:$0xff] }
0x135e   : > { %5378 = vmatprep.subr.bf16.mxu0 %v9664_v38  ;;  %5400 = vmatprep.subr.bf16.mxu1 %v9665_v15  ;;  %v9681_v38 = vld [vmem:[#allocation130_spill] sm:$0xff] }
0x1361   : > { %5379 = vmatpush3.bf16.msra.mxu0 %v9666_v44  ;;  %5401 = vmatpush3.bf16.msra.mxu1 %v9667_v14 }
0x1362   : > { %5380 = vmatprep.subr.bf16.mxu0 %v9668_v4  ;;  %5402 = vmatprep.subr.bf16.mxu1 %v9669_v16 }
0x1365   : > { %5381 = vmatpush3.bf16.msra.mxu0 %v9670_v0  ;;  %5403 = vmatpush3.bf16.msra.mxu1 %v9671_v56  ;;  %v9682_v56 = vld [vmem:[#allocation131_spill] sm:$0xff] }
0x1366   : > { %5382 = vmatprep.subr.bf16.mxu0 %v9672_v20  ;;  %5404 = vmatprep.subr.bf16.mxu1 %v9673_v30  ;;  %v9683_v20 = vld [vmem:[#allocation132_spill] sm:$0xff] }
0x1369   : > { %5383 = vmatpush3.bf16.msra.mxu0 %v9674_v10  ;;  %5405 = vmatpush3.bf16.msra.mxu1 %v9675_v61  ;;  %v9684_v10 = vld [vmem:[#allocation145_spill] sm:$0xff] }
0x136a   : > { %5384 = vmatprep.subr.bf16.mxu0 %v9676_v29  ;;  %5406 = vmatprep.subr.bf16.mxu1 %v9677_v37 }
0x136d   : > { %5385 = vmatpush3.bf16.msra.mxu0 %v9678_v36  ;;  %5407 = vmatpush3.bf16.msra.mxu1 %v9679_v9 }
0x136e   : > { %5386 = vmatprep.subr.bf16.mxu0 %v9680_v57  ;;  %5408 = vmatprep.subr.bf16.mxu1 %v9681_v38  ;;  %v9685_v57 = vld [vmem:[#allocation133_spill] sm:$0xff]  ;;  %v9686_v38 = vld [vmem:[#allocation134_spill] sm:$0xff] }
0x136f   : > { %v3773_v15 = vpop.f32.mrb[100].mxu0  ;;  %v3814_v44 = vpop.f32.mrb[100].mxu1 }
0x1370   : > { %vm3825_vm12 = vcmp.ge.f32.partialorder %v3773_v15, 0.0  ;;  %vm3827_vm13 = vcmp.ge.f32.partialorder %v3814_v44, 0.0  ;;  %v3775_v14 = vpop.f32.mrb[101].mxu0  ;;  %v3816_v4 = vpop.f32.mrb[101].mxu1  ;;  %v9687_v15 = vld [vmem:[#allocation146_spill] sm:$0xff] }
0x1371   : > { %v3833_v16 = vsel %vm3825_vm12, 0.007843138, %v9141_v7  ;;  %v3835_v0 = vsel %vm3827_vm13, 0.007843138, %v9141_v7  ;;  %vm3826_vm14 = vcmp.ge.f32.partialorder %v3775_v14, 0.0  ;;  %vm3828_vm15 = vcmp.ge.f32.partialorder %v3816_v4, 0.0  ;;  %5387 = vmatpush3.bf16.msra.mxu0 %v9682_v56  ;;  %5409 = vmatpush3.bf16.msra.mxu1 %v9683_v20 }
0x1372   : > { %v3841_v30 = vadd.f32 %v3833_v16, %v8088_v62  ;;  %v3843_v61 = vadd.f32 %v3835_v0, %v9684_v10  ;;  %v3834_v29 = vsel %vm3826_vm14, 0.007843138, %v9141_v7  ;;  %v3836_v37 = vsel %vm3828_vm15, 0.007843138, %v9141_v7  ;;  %v3777_v36 = vpop.f32.mrb[102].mxu0  ;;  %v3818_v9 = vpop.f32.mrb[102].mxu1  ;;  %5388 = vmatprep.subr.bf16.mxu0 %v9685_v57  ;;  %5410 = vmatprep.subr.bf16.mxu1 %v9686_v38 }
0x1373   : > { %v3842_v44 = vadd.f32 %v3834_v29, %v9687_v15  ;;  %v9688_v14 = vld [vmem:[#allocation147_spill] sm:$0xff]  ;;  %v3778_v56 = vpop.f32.mrb[103].mxu0  ;;  %v3819_v20 = vpop.f32.mrb[103].mxu1  ;;  %v9691_v10 = vld [vmem:[#allocation49_spill] sm:$0xff]  ;;  %v9694_v9 = vld [vmem:[#allocation136_spill] sm:$0xff] }
0x1374   : > { %v3844_v4 = vadd.f32 %v3836_v37, %v9688_v14  ;;  %v3849_v62 = vmax.f32 %v9689_v53, %v3841_v30  ;;  %v9690_v16 = vld [vmem:[#allocation15_spill] sm:$0xff]  ;;  %v9695_v57 = vld [vmem:[#allocation16_spill] sm:$0xff]  ;;  %v9697_v29 = vld [vmem:[#allocation17_spill] sm:$0xff] }
0x1375   : > { %v3851_v0 = vmax.f32 %v9690_v16, %v3843_v61  ;;  %v3850_v35 = vmax.f32 %v9691_v10, %v3842_v44  ;;  %v9693_v36 = vld [vmem:[#allocation135_spill] sm:$0xff]  ;;  %5411 = vmatpush3.bf16.msra.mxu1 %v9694_v9  ;;  %v9700_v14 = vld [vmem:[#allocation140_spill] sm:$0xff]  ;;  %v9701_v30 = vld [vmem:[#allocation50_spill] sm:$0xff] }
0x1376   : > { %v3852_v58 = vmax.f32 %v9692_v28, %v3844_v4  ;;  %5389 = vmatpush3.bf16.msra.mxu0 %v9693_v36  ;;  %v8291_v38 = vmin.f32 %v9695_v57, %v3849_v62  ;;  %v9699_v37 = vld [vmem:[#allocation139_spill] sm:$0xff]  ;;  %5412 = vmatprep.subr.bf16.mxu1 %v9700_v14  ;;  %v9703_v44 = vld [vmem:[#allocation52_spill] sm:$0xff] }
0x1377   : > { %v8294_v15 = vmin.f32 %v9697_v29, %v3851_v0  ;;  %5390 = vmatprep.subr.bf16.mxu0 %v9699_v37  ;;  %v8299_v61 = vmin.f32 %v9701_v30, %v3850_v35  ;;  %v9705_v4 = vld [vmem:[#allocation143_spill] sm:$0xff]  ;;  %v9706_v20 = vld [vmem:[#allocation144_spill] sm:$0xff]  ;;  %v9709_v37 = vld [vmem:[#allocation21_spill] sm:$0xff] }
0x1378   : > { %9696 = vst [vmem:[#allocation148_spill] sm:$0xff] %v8291_v38  ;;  %v8302_v56 = vmin.f32 %v9703_v44, %v3852_v58  ;;  %v3865_v36 = vpack.c.bf16 %v8291_v38, %v8291_v38  ;;  %v9707_v9 = vld [vmem:[#allocation20_spill] sm:$0xff]  ;;  %v9708_v58 = vld [vmem:[#allocation22_spill] sm:$0xff]  ;;  %v9710_v14 = vld [vmem:[#allocation23_spill] sm:$0xff] }
0x1379   : > { %9698 = vst [vmem:[#allocation149_spill] sm:$0xff] %v8294_v15  ;;  %9702 = vst [vmem:[#allocation150_spill] sm:$0xff] %v8299_v61  ;;  %5413 = vmatpush3.bf16.msra.mxu1 %v9706_v20  ;;  %v3866_v62 = vpack.c.bf16 %v8299_v61, %v8299_v61  ;;  %v3867_v35 = vpack.c.bf16 %v8294_v15, %v8294_v15  ;;  %v9712_v20 = vld [vmem:[#allocation25_spill] sm:$0xff]  ;;  %v9713_v44 = vld [vmem:[#allocation26_spill] sm:$0xff] }
0x137a   : > { %9704 = vst [vmem:[#allocation151_spill] sm:$0xff] %v8302_v56  ;;  %5391 = vmatpush3.bf16.msra.mxu0 %v9705_v4  ;;  %v3868_v0 = vpack.c.bf16 %v8302_v56, %v8302_v56  ;;  %4081 = vmatprep.subr.bf16.mxu1 %v9708_v58  ;;  %v9711_v4 = vld [vmem:[#allocation24_spill] sm:$0xff]  ;;  %v9719_v58 = vld [vmem:[#allocation33_spill] sm:$0xff] }
0x137b   : > { %4040 = vmatprep.subr.bf16.mxu0 %v9707_v9  ;;  %3981 = vmatprep.mubr.bf16.mxu0 %v3866_v62  ;;  %v9714_v9 = vld [vmem:[#allocation27_spill] sm:$0xff]  ;;  %v9715_v62 = vld [vmem:[#allocation28_spill] sm:$0xff] }
0x137c   : > { %4021 = vmatprep.mubr.bf16.mxu1 %v3868_v0  ;;  %v9716_v0 = vld [vmem:[#allocation29_spill] sm:$0xff] }
0x137d   : > { %3982 = vmatmul.mubr.bf16.vlgmr.msra.gmra.mrb[108].mxu0 %v3865_v36  ;;  %4022 = vmatmul.mubr.bf16.vlgmr.msra.gmra.mrb[108].mxu1 %v3867_v35  ;;  %v9717_v36 = vld [vmem:[#allocation30_spill] sm:$0xff]  ;;  %v9718_v35 = vld [vmem:[#allocation31_spill] sm:$0xff] }
0x137e   : > { %4041 = vmatpush1.bf16.msra.mxu0 %v9709_v37  ;;  %4082 = vmatpush1.bf16.msra.mxu1 %v9710_v14  ;;  %v9720_v37 = vld [vmem:[#allocation35_spill] sm:$0xff]  ;;  %v9721_v14 = vld [vmem:[#allocation36_spill] sm:$0xff] }
0x137f   : > { %4042 = vmatprep.subr.bf16.mxu0 %v9711_v4  ;;  %4083 = vmatprep.subr.bf16.mxu1 %v9712_v20  ;;  %v9722_v4 = vld [vmem:[#allocation38_spill] sm:$0xff]  ;;  %v9723_v20 = vld [vmem:[#allocation40_spill] sm:$0xff] }
0x1380   : > { %4072 = vmatprep.mubr.bf16.mxu0 %v9060_v25  ;;  %4113 = vmatprep.mubr.bf16.mxu1 %v9060_v25 }
0x1382   : > { %4043 = vmatpush1.bf16.msra.mxu0 %v9713_v44  ;;  %4084 = vmatpush1.bf16.msra.mxu1 %v9714_v9  ;;  %v9724_v44 = vld [vmem:[#allocation41_spill] sm:$0xff]  ;;  %v9725_v9 = vld [vmem:[#allocation42_spill] sm:$0xff] }
0x1383   : > { %4044 = vmatprep.subr.bf16.mxu0 %v9715_v62  ;;  %4085 = vmatprep.subr.bf16.mxu1 %v9716_v0  ;;  %v9726_v62 = vld [vmem:[#allocation43_spill] sm:$0xff]  ;;  %v9727_v0 = vld [vmem:[#allocation44_spill] sm:$0xff] }
0x1386   : > { %4045 = vmatpush1.bf16.msra.mxu0 %v9717_v36  ;;  %4086 = vmatpush1.bf16.msra.mxu1 %v9718_v35  ;;  %v9728_v36 = vld [vmem:[#allocation53_spill] sm:$0xff]  ;;  %v9729_v35 = vld [vmem:[#allocation54_spill] sm:$0xff] }
0x1387   : > { %4046 = vmatprep.subr.bf16.mxu0 %v9719_v58  ;;  %4087 = vmatprep.subr.bf16.mxu1 %v9720_v37  ;;  %v9730_v58 = vld [vmem:[#allocation55_spill] sm:$0xff]  ;;  %v9731_v37 = vld [vmem:[#allocation56_spill] sm:$0xff] }
0x138a   : > { %4047 = vmatpush1.bf16.msra.mxu0 %v9721_v14  ;;  %4088 = vmatpush1.bf16.msra.mxu1 %v9722_v4  ;;  %v9732_v14 = vld [vmem:[#allocation57_spill] sm:$0xff]  ;;  %v9733_v4 = vld [vmem:[#allocation58_spill] sm:$0xff] }
0x138b   : > { %4048 = vmatprep.subr.bf16.mxu0 %v9723_v20  ;;  %4089 = vmatprep.subr.bf16.mxu1 %v9724_v44  ;;  %v9734_v20 = vld [vmem:[#allocation59_spill] sm:$0xff]  ;;  %v9735_v44 = vld [vmem:[#allocation60_spill] sm:$0xff] }
0x138e   : > { %4049 = vmatpush1.bf16.msra.mxu0 %v9725_v9  ;;  %4090 = vmatpush1.bf16.msra.mxu1 %v9726_v62  ;;  %v9736_v9 = vld [vmem:[#allocation61_spill] sm:$0xff]  ;;  %v9737_v62 = vld [vmem:[#allocation62_spill] sm:$0xff] }
0x138f   : > { %4050 = vmatprep.subr.bf16.mxu0 %v9727_v0  ;;  %4091 = vmatprep.subr.bf16.mxu1 %v9728_v36  ;;  %v9738_v0 = vld [vmem:[#allocation63_spill] sm:$0xff]  ;;  %v9739_v36 = vld [vmem:[#allocation64_spill] sm:$0xff] }
0x1392   : > { %4051 = vmatpush1.bf16.msra.mxu0 %v9729_v35  ;;  %4092 = vmatpush1.bf16.msra.mxu1 %v9730_v58  ;;  %v9740_v35 = vld [vmem:[#allocation65_spill] sm:$0xff] }
0x1393   : > { %4052 = vmatprep.subr.bf16.mxu0 %v9731_v37  ;;  %4093 = vmatprep.subr.bf16.mxu1 %v9732_v14 }
0x1396   : > { %4053 = vmatpush1.bf16.msra.mxu0 %v9733_v4  ;;  %4094 = vmatpush1.bf16.msra.mxu1 %v9734_v20 }
0x1397   : > { %4054 = vmatprep.subr.bf16.mxu0 %v9735_v44  ;;  %4095 = vmatprep.subr.bf16.mxu1 %v9736_v9 }
0x139a   : > { %4055 = vmatpush1.bf16.msra.mxu0 %v9737_v62  ;;  %4096 = vmatpush1.bf16.msra.mxu1 %v9738_v0 }
0x139b   : > { %4122 = vmatprep.subr.bf16.mxu0 %v9739_v36  ;;  %4163 = vmatprep.subr.bf16.mxu1 %v9740_v35 }
0x142f   : > { %v5348_v58 = vpop.f32.mrb[104].mxu0  ;;  %v5370_v37 = vpop.f32.mrb[104].mxu1 }
0x1430   : > { %v5349_v30 = vpop.f32.mrb[105].mxu0  ;;  %v5371_v14 = vpop.f32.mrb[105].mxu1 }
0x1431   : > { %v5350_v29 = vadd.f32 %v5349_v30, %v5348_v58  ;;  %v5372_v4 = vadd.f32 %v5371_v14, %v5370_v37  ;;  %v5351_v57 = vpop.f32.mrb[106].mxu0  ;;  %v5373_v20 = vpop.f32.mrb[106].mxu1 }
0x1432   : > { %v5352_v28 = vpop.f32.mrb[107].mxu0  ;;  %v5374_v44 = vpop.f32.mrb[107].mxu1 }
0x1433   : > { %v3904_v9 = vadd.f32 %v8150_v3, %v5350_v29 }
0x1435   : > { %v3944_v10 = vadd.f32 %v5372_v4, %v3904_v9 }
0x1450   : > { %v5392_v62 = vpop.f32.mrb[108].mxu0  ;;  %v5414_v16 = vpop.f32.mrb[108].mxu1 }
0x1451   : > { %v5393_v0 = vpop.f32.mrb[109].mxu0  ;;  %v5415_v53 = vpop.f32.mrb[109].mxu1 }
0x1452   : > { %v5394_v36 = vadd.f32 %v5393_v0, %v5392_v62  ;;  %v5416_v56 = vadd.f32 %v5415_v53, %v5414_v16  ;;  %v5395_v35 = vpop.f32.mrb[110].mxu0  ;;  %v5417_v61 = vpop.f32.mrb[110].mxu1  ;;  %v5845_v16 = vld [vmem:[#allocation7 + $0x140] sm:$0xff]  }
0x1453   : > { %v5396_v15 = vpop.f32.mrb[111].mxu0  ;;  %v5418_v38 = vpop.f32.mrb[111].mxu1 }
0x1454   : > { %v3984_v31 = vadd.f32 %v5394_v36, %v3944_v10  ;;  %v5846_v10 = vld [vmem:[#allocation7 + $0x1c0] sm:$0xff]  }
0x1456   : > { %v4024_v30 = vadd.f32 %v5416_v56, %v3984_v31  ;;  %v5844_v31 = vld [vmem:[#allocation7 + $0xb8] sm:$0xff]  }
0x1458   : > { %4029 = vmax.xlane.f32.xlu0 %v4024_v30 }
0x14e5   : > { %v4030_v57 = vpop.xlane.xlu0 %4029 }
0x14e6   : > { %v4031_v58 = vsub.f32 %v4024_v30, %v4030_v57 }
0x14e8   : > { %v4032_v28 = vmul.f32 1.442695, %v4031_v58 }
0x14ea   : > { %5673 = vpow2.f32 %v4032_v28 }
0x14f4   : > { %v5674_v37 = vpop.eup %5673 }
0x14f5   : > { %4034 = vadd.xlane.f32.xlu1 %v5674_v37 }
0x1582   : > { %v4035_v29 = vpop.xlane.xlu1 %4034 }
0x1583   : > { %5675 = vrcp.f32 %v4035_v29 }
0x158d   : > { %v5676_v14 = vpop.eup %5675 }
0x158e   : > { %v4037_v4 = vmul.f32 %v5676_v14, %v5674_v37 }
0x1590   : > { %v4038_v20 = vsub.f32 %v4037_v4, %v9161_v47 }
0x1592   : > { %v4039_v53 = vpack.c.bf16 %v4038_v20, %v4038_v20  ;;  %v9741_v20 = vld [vmem:[#allocation34_spill] sm:$0xff] }
0x1594   : > { %4073 = vmatmul.mubr.bf16.vlgmr.msra.gmra.mrb[112].mxu0 %v4039_v53  ;;  %4114 = vmatmul.mubr.bf16.vlgmr.msra.gmra.mrb[112].mxu1 %v4039_v53 }
0x1595   : > { %4123 = vmatpush1.bf16.msra.mxu0 %v9162_v5  ;;  %4164 = vmatpush1.bf16.msra.mxu1 %v9163_v42  ;;  %v5814_v5 = vld [vmem:[#allocation7 + $0xc0] sm:$0xff]  }
0x1596   : > { %4124 = vmatprep.subr.bf16.mxu0 %v9164_v18  ;;  %4165 = vmatprep.subr.bf16.mxu1 %v9165_v41  ;;  %v5815_v42 = vld [vmem:[#allocation7] sm:$0xff]   ;;  %v5817_v41 = vld [vmem:[#allocation7 + $0x48] sm:$0xff]  }
0x1597   : > { %4154 = vmatprep.mubr.bf16.mxu0 %v9060_v25  ;;  %4195 = vmatprep.mubr.bf16.mxu1 %v9060_v25  ;;  %v5813_v25 = vld [vmem:[#allocation7 + $0x40] sm:$0xff]  }
0x1598   : > { %v5816_v18 = vld [vmem:[#allocation7 + $0x80] sm:$0xff]  }
0x1599   : > { %4125 = vmatpush1.bf16.msra.mxu0 %v9166_v52  ;;  %4166 = vmatpush1.bf16.msra.mxu1 %v9167_v46  ;;  %v5818_v52 = vld [vmem:[#allocation7 + $0xc8] sm:$0xff]  }
0x159a   : > { %4126 = vmatprep.subr.bf16.mxu0 %v9168_v8  ;;  %4167 = vmatprep.subr.bf16.mxu1 %v9169_v45  ;;  %v5819_v46 = vld [vmem:[#allocation7 + $0x8] sm:$0xff]   ;;  %v5821_v45 = vld [vmem:[#allocation7 + $0x50] sm:$0xff]  }
0x159b   : > { %v5820_v8 = vld [vmem:[#allocation7 + $0x88] sm:$0xff]  }
0x159d   : > { %4127 = vmatpush1.bf16.msra.mxu0 %v9170_v22  ;;  %4168 = vmatpush1.bf16.msra.mxu1 %v9171_v33  ;;  %v5822_v22 = vld [vmem:[#allocation7 + $0xd0] sm:$0xff]  }
0x159e   : > { %4128 = vmatprep.subr.bf16.mxu0 %v9172_v55  ;;  %4169 = vmatprep.subr.bf16.mxu1 %v9173_v32  ;;  %v5823_v33 = vld [vmem:[#allocation7 + $0x10] sm:$0xff]   ;;  %v5825_v32 = vld [vmem:[#allocation7 + $0x58] sm:$0xff]  }
0x159f   : > { %v5824_v55 = vld [vmem:[#allocation7 + $0x90] sm:$0xff]  }
0x15a1   : > { %4129 = vmatpush1.bf16.msra.mxu0 %v9174_v49  ;;  %4170 = vmatpush1.bf16.msra.mxu1 %v9276_v24  ;;  %v5826_v49 = vld [vmem:[#allocation7 + $0xd8] sm:$0xff]  }
0x15a2   : > { %4130 = vmatprep.subr.bf16.mxu0 %v9277_v6  ;;  %4171 = vmatprep.subr.bf16.mxu1 %v9278_v26  ;;  %v5827_v24 = vld [vmem:[#allocation7 + $0x18] sm:$0xff]   ;;  %v5829_v26 = vld [vmem:[#allocation7 + $0x60] sm:$0xff]  }
0x15a3   : > { %v5828_v6 = vld [vmem:[#allocation7 + $0x98] sm:$0xff]  }
0x15a5   : > { %4131 = vmatpush1.bf16.msra.mxu0 %v9279_v12  ;;  %4172 = vmatpush1.bf16.msra.mxu1 %v9280_v11  ;;  %v5830_v12 = vld [vmem:[#allocation7 + $0xe0] sm:$0xff]  }
0x15a6   : > { %4132 = vmatprep.subr.bf16.mxu0 %v9388_v54  ;;  %4173 = vmatprep.subr.bf16.mxu1 %v9389_v21  ;;  %v5831_v11 = vld [vmem:[#allocation7 + $0x20] sm:$0xff]   ;;  %v5833_v21 = vld [vmem:[#allocation7 + $0x68] sm:$0xff]  }
0x15a7   : > { %v5832_v54 = vld [vmem:[#allocation7 + $0xa0] sm:$0xff]  }
0x15a9   : > { %4133 = vmatpush1.bf16.msra.mxu0 %v9390_v27  ;;  %4174 = vmatpush1.bf16.msra.mxu1 %v9391_v40  ;;  %v5834_v27 = vld [vmem:[#allocation7 + $0xe8] sm:$0xff]  }
0x15aa   : > { %4134 = vmatprep.subr.bf16.mxu0 %v9392_v48  ;;  %4175 = vmatprep.subr.bf16.mxu1 %v9393_v17  ;;  %v5835_v40 = vld [vmem:[#allocation7 + $0x28] sm:$0xff]   ;;  %v5837_v17 = vld [vmem:[#allocation7 + $0x70] sm:$0xff]  }
0x15ab   : > { %v5836_v48 = vld [vmem:[#allocation7 + $0xa8] sm:$0xff]  }
0x15ad   : > { %4135 = vmatpush1.bf16.msra.mxu0 %v9394_v34  ;;  %4176 = vmatpush1.bf16.msra.mxu1 %v9395_v2  ;;  %v5838_v34 = vld [vmem:[#allocation7 + $0xf0] sm:$0xff]  }
0x15ae   : > { %4136 = vmatprep.subr.bf16.mxu0 %v9507_v19  ;;  %4177 = vmatprep.subr.bf16.mxu1 %v9508_v63  ;;  %v5839_v2 = vld [vmem:[#allocation7 + $0x30] sm:$0xff]   ;;  %v5841_v63 = vld [vmem:[#allocation7 + $0x78] sm:$0xff]  }
0x15af   : > { %v5840_v19 = vld [vmem:[#allocation7 + $0xb0] sm:$0xff]  }
0x15b1   : > { %4137 = vmatpush1.bf16.msra.mxu0 %v9509_v59  ;;  %4178 = vmatpush1.bf16.msra.mxu1 %v9510_v50  ;;  %v5842_v59 = vld [vmem:[#allocation7 + $0xf8] sm:$0xff]  }
0x15b2   : > { %5420 = vmatprep.subr.bf16.mxu0 %v5813_v25  ;;  %5442 = vmatprep.subr.bf16.mxu1 %v5814_v5  ;;  %v5843_v50 = vld [vmem:[#allocation7 + $0x38] sm:$0xff]   ;;  %v9743_v5 = vld [vmem:[#allocation48_spill] sm:$0xff] }
0x15b4   : > { %4155 = vmatmul.mubr.bf16.vlgmr.msra.gmra.mrb[116].mxu0 %v4039_v53  ;;  %4196 = vmatmul.mubr.bf16.vlgmr.msra.gmra.mrb[116].mxu1 %v4039_v53  ;;  %v9742_v53 = vld [vmem:[#allocation47_spill] sm:$0xff] }
0x15b5   : > { %5421 = vmatpush3.bf16.msra.mxu0 %v5815_v42  ;;  %5443 = vmatpush3.bf16.msra.mxu1 %v5816_v18  ;;  %v9744_v18 = vld [vmem:[#allocation37_spill] sm:$0xff] }
0x15b6   : > { %5422 = vmatprep.subr.bf16.mxu0 %v5817_v41  ;;  %5444 = vmatprep.subr.bf16.mxu1 %v5818_v52  ;;  %v9745_v52 = vld [vmem:[#allocation39_spill] sm:$0xff] }
0x15b9   : > { %5423 = vmatpush3.bf16.msra.mxu0 %v5819_v46  ;;  %5445 = vmatpush3.bf16.msra.mxu1 %v5820_v8 }
0x15ba   : > { %5424 = vmatprep.subr.bf16.mxu0 %v5821_v45  ;;  %5446 = vmatprep.subr.bf16.mxu1 %v5822_v22  ;;  %v5850_v22 = vld [vmem:[#allocation7 + $0x1c8] sm:$0xff]  }
0x15bd   : > { %5425 = vmatpush3.bf16.msra.mxu0 %v5823_v33  ;;  %5447 = vmatpush3.bf16.msra.mxu1 %v5824_v55  ;;  %v5851_v33 = vld [vmem:[#allocation7 + $0x108] sm:$0xff]  }
0x15be   : > { %5426 = vmatprep.subr.bf16.mxu0 %v5825_v32  ;;  %5448 = vmatprep.subr.bf16.mxu1 %v5826_v49  ;;  %v5852_v55 = vld [vmem:[#allocation7 + $0x188] sm:$0xff]   ;;  %v5853_v32 = vld [vmem:[#allocation7 + $0x150] sm:$0xff]  }
0x15bf   : > { %v5854_v49 = vld [vmem:[#allocation7 + $0x1d0] sm:$0xff]  }
0x15c1   : > { %5427 = vmatpush3.bf16.msra.mxu0 %v5827_v24  ;;  %5449 = vmatpush3.bf16.msra.mxu1 %v5828_v6  ;;  %v5855_v24 = vld [vmem:[#allocation7 + $0x110] sm:$0xff]  }
0x15c2   : > { %5428 = vmatprep.subr.bf16.mxu0 %v5829_v26  ;;  %5450 = vmatprep.subr.bf16.mxu1 %v5830_v12  ;;  %v5856_v6 = vld [vmem:[#allocation7 + $0x190] sm:$0xff]   ;;  %v5857_v26 = vld [vmem:[#allocation7 + $0x158] sm:$0xff]  }
0x15c3   : > { %v5858_v12 = vld [vmem:[#allocation7 + $0x1d8] sm:$0xff]  }
0x15c5   : > { %5429 = vmatpush3.bf16.msra.mxu0 %v5831_v11  ;;  %5451 = vmatpush3.bf16.msra.mxu1 %v5832_v54  ;;  %v5859_v11 = vld [vmem:[#allocation7 + $0x118] sm:$0xff]  }
0x15c6   : > { %5430 = vmatprep.subr.bf16.mxu0 %v5833_v21  ;;  %5452 = vmatprep.subr.bf16.mxu1 %v5834_v27  ;;  %v5860_v54 = vld [vmem:[#allocation7 + $0x198] sm:$0xff]   ;;  %v5861_v21 = vld [vmem:[#allocation7 + $0x160] sm:$0xff]  }
0x15c7   : > { %v5862_v27 = vld [vmem:[#allocation7 + $0x1e0] sm:$0xff]  }
0x15c9   : > { %5431 = vmatpush3.bf16.msra.mxu0 %v5835_v40  ;;  %5453 = vmatpush3.bf16.msra.mxu1 %v5836_v48  ;;  %v5863_v40 = vld [vmem:[#allocation7 + $0x120] sm:$0xff]  }
0x15ca   : > { %5432 = vmatprep.subr.bf16.mxu0 %v5837_v17  ;;  %5454 = vmatprep.subr.bf16.mxu1 %v5838_v34  ;;  %v5864_v48 = vld [vmem:[#allocation7 + $0x1a0] sm:$0xff]   ;;  %v5865_v17 = vld [vmem:[#allocation7 + $0x168] sm:$0xff]  }
0x15cb   : > { %v5866_v34 = vld [vmem:[#allocation7 + $0x1e8] sm:$0xff]  }
0x15cd   : > { %5433 = vmatpush3.bf16.msra.mxu0 %v5839_v2  ;;  %5455 = vmatpush3.bf16.msra.mxu1 %v5840_v19 }
0x15ce   : > { %5434 = vmatprep.subr.bf16.mxu0 %v5841_v63  ;;  %5456 = vmatprep.subr.bf16.mxu1 %v5842_v59 }
0x15d1   : > { %5435 = vmatpush3.bf16.msra.mxu0 %v5843_v50  ;;  %5457 = vmatpush3.bf16.msra.mxu1 %v5844_v31 }
0x15d2   : > { %5464 = vmatprep.subr.bf16.mxu0 %v5845_v16  ;;  %5486 = vmatprep.subr.bf16.mxu1 %v5846_v10  ;;  %v5867_v16 = vld [vmem:[#allocation7 + $0x128] sm:$0xff]  }
0x15d3   : > { %v5868_v10 = vld [vmem:[#allocation7 + $0x1a8] sm:$0xff]  }
0x1667   : > { %v4074_v38 = vpop.f32.mrb[112].mxu0  ;;  %v4115_v15 = vpop.f32.mrb[112].mxu1 }
0x1668   : > { %vm4204_vm0 = vcmp.ge.f32.partialorder %v4074_v38, 0.0  ;;  %vm4206_vm1 = vcmp.ge.f32.partialorder %v4115_v15, 0.0  ;;  %v4076_v61 = vpop.f32.mrb[113].mxu0  ;;  %v4117_v56 = vpop.f32.mrb[113].mxu1  ;;  %v9746_v38 = vld [vmem:[#allocation148_spill] sm:$0xff] }
0x1669   : > { %v4212_v44 = vsel %vm4204_vm0, 0.007843138, %v9141_v7  ;;  %v4214_v9 = vsel %vm4206_vm1, 0.007843138, %v9141_v7  ;;  %vm4205_vm2 = vcmp.ge.f32.partialorder %v4076_v61, 0.0  ;;  %vm4207_vm3 = vcmp.ge.f32.partialorder %v4117_v56, 0.0 }
0x166a   : > { %v4220_v62 = vadd.f32 %v4212_v44, %v8233_v1  ;;  %v4222_v0 = vadd.f32 %v4214_v9, %v8236_v60  ;;  %v4213_v36 = vsel %vm4205_vm2, 0.007843138, %v9141_v7  ;;  %v4215_v35 = vsel %vm4207_vm3, 0.007843138, %v9141_v7  ;;  %v4078_v30 = vpop.f32.mrb[114].mxu0  ;;  %v4119_v57 = vpop.f32.mrb[114].mxu1 }
0x166b   : > { %v4221_v58 = vadd.f32 %v4213_v36, %v8239_v23  ;;  %v4223_v28 = vadd.f32 %v4215_v35, %v8242_v39  ;;  %v4079_v37 = vpop.f32.mrb[115].mxu0  ;;  %v4120_v29 = vpop.f32.mrb[115].mxu1  ;;  %v9747_v61 = vld [vmem:[#allocation149_spill] sm:$0xff]  ;;  %v5869_v36 = vld [vmem:[#allocation7 + $0x170] sm:$0xff]  }
0x166c   : > { %v4228_v14 = vmax.f32 %v9654_v13, %v4220_v62  ;;  %v4230_v4 = vmax.f32 %v9655_v51, %v4222_v0  ;;  %v5847_v13 = vld [vmem:[#allocation7 + $0x100] sm:$0xff]   ;;  %v5870_v35 = vld [vmem:[#allocation7 + $0x1f0] sm:$0xff]  }
0x166d   : > { %v4229_v1 = vmax.f32 %v9656_v43, %v4221_v58  ;;  %v4231_v60 = vmax.f32 %v9741_v20, %v4223_v28  ;;  %v5848_v51 = vld [vmem:[#allocation7 + $0x180] sm:$0xff]   ;;  %v5849_v43 = vld [vmem:[#allocation7 + $0x148] sm:$0xff]   ;;  %v9748_v30 = vld [vmem:[#allocation150_spill] sm:$0xff] }
0x166e   : > { %v4236_v25 = vmin.f32 %v9742_v53, %v4228_v14  ;;  %v4238_v42 = vmin.f32 %v9743_v5, %v4230_v4  ;;  %v9749_v58 = vld [vmem:[#allocation151_spill] sm:$0xff]  ;;  %v9750_v14 = vld [vmem:[#allocation14_spill] sm:$0xff] }
0x166f   : > { %v4237_v41 = vmin.f32 %v9744_v18, %v4229_v1  ;;  %v4239_v23 = vmin.f32 %v9745_v52, %v4231_v60  ;;  %v9751_v1 = vld [vmem:[#allocation15_spill] sm:$0xff]  ;;  %v9752_v60 = vld [vmem:[#allocation49_spill] sm:$0xff]  ;;  %v5871_v5 = vld [vmem:[#allocation7 + $0x130] sm:$0xff]  }
0x1670   : > { %v4244_v8 = vpack.c.bf16 %v4236_v25, %v4236_v25  ;;  %v4246_v45 = vpack.c.bf16 %v4238_v42, %v4238_v42  ;;  %v9753_v25 = vld [vmem:[#allocation51_spill] sm:$0xff]  ;;  %v5872_v42 = vld [vmem:[#allocation7 + $0x1b0] sm:$0xff]   ;;  %v9754_v18 = vld [vmem:[#allocation16_spill] sm:$0xff] }
0x1671   : > { %v4245_v46 = vpack.c.bf16 %v4237_v41, %v4237_v41  ;;  %v4247_v39 = vpack.c.bf16 %v4239_v23, %v4239_v23  ;;  %v9755_v52 = vld [vmem:[#allocation17_spill] sm:$0xff] }
0x1673   : > { %4284 = vmatprep.mubr.bf16.mxu0 %v4245_v46  ;;  %4324 = vmatprep.mubr.bf16.mxu1 %v4247_v39  ;;  %v5873_v46 = vld [vmem:[#allocation7 + $0x178] sm:$0xff]  }
0x1674   : > { %4285 = vmatmul.mubr.bf16.vlgmr.msra.gmra.mrb[120].mxu0 %v4244_v8  ;;  %4325 = vmatmul.mubr.bf16.vlgmr.msra.gmra.mrb[120].mxu1 %v4246_v45  ;;  %v5874_v39 = vld [vmem:[#allocation7 + $0x1f8] sm:$0xff]   ;;  %v9756_v8 = vld [vmem:[#allocation50_spill] sm:$0xff] }
0x1675   : > { %5465 = vmatpush3.bf16.msra.mxu0 %v5847_v13  ;;  %5487 = vmatpush3.bf16.msra.mxu1 %v5848_v51  ;;  %v9757_v13 = vld [vmem:[#allocation52_spill] sm:$0xff] }
0x1676   : > { %5466 = vmatprep.subr.bf16.mxu0 %v5849_v43  ;;  %5488 = vmatprep.subr.bf16.mxu1 %v5850_v22  ;;  %v5875_v43 = vld [vmem:[#allocation7 + $0x138] sm:$0xff]  }
0x1677   : > { %v5876_v22 = vld [vmem:[#allocation7 + $0x1b8] sm:$0xff]  }
0x1679   : > { %5467 = vmatpush3.bf16.msra.mxu0 %v5851_v33  ;;  %5489 = vmatpush3.bf16.msra.mxu1 %v5852_v55 }
0x167a   : > { %5468 = vmatprep.subr.bf16.mxu0 %v5853_v32  ;;  %5490 = vmatprep.subr.bf16.mxu1 %v5854_v49 }
0x167d   : > { %5469 = vmatpush3.bf16.msra.mxu0 %v5855_v24  ;;  %5491 = vmatpush3.bf16.msra.mxu1 %v5856_v6 }
0x167e   : > { %5470 = vmatprep.subr.bf16.mxu0 %v5857_v26  ;;  %5492 = vmatprep.subr.bf16.mxu1 %v5858_v12 }
0x1681   : > { %5471 = vmatpush3.bf16.msra.mxu0 %v5859_v11  ;;  %5493 = vmatpush3.bf16.msra.mxu1 %v5860_v54 }
0x1682   : > { %5472 = vmatprep.subr.bf16.mxu0 %v5861_v21  ;;  %5494 = vmatprep.subr.bf16.mxu1 %v5862_v27 }
0x1685   : > { %5473 = vmatpush3.bf16.msra.mxu0 %v5863_v40  ;;  %5495 = vmatpush3.bf16.msra.mxu1 %v5864_v48 }
0x1686   : > { %5474 = vmatprep.subr.bf16.mxu0 %v5865_v17  ;;  %5496 = vmatprep.subr.bf16.mxu1 %v5866_v34 }
0x1687   : > { %v4156_v2 = vpop.f32.mrb[116].mxu0  ;;  %v4197_v19 = vpop.f32.mrb[116].mxu1 }
0x1688   : > { %vm4208_vm4 = vcmp.ge.f32.partialorder %v4156_v2, 0.0  ;;  %vm4210_vm5 = vcmp.ge.f32.partialorder %v4197_v19, 0.0  ;;  %v4158_v63 = vpop.f32.mrb[117].mxu0  ;;  %v4199_v59 = vpop.f32.mrb[117].mxu1 }
0x1689   : > { %v4216_v50 = vsel %vm4208_vm4, 0.007843138, %v9141_v7  ;;  %v4218_v31 = vsel %vm4210_vm5, 0.007843138, %v9141_v7  ;;  %vm4209_vm6 = vcmp.ge.f32.partialorder %v4158_v63, 0.0  ;;  %vm4211_vm7 = vcmp.ge.f32.partialorder %v4199_v59, 0.0  ;;  %5475 = vmatpush3.bf16.msra.mxu0 %v5867_v16  ;;  %5497 = vmatpush3.bf16.msra.mxu1 %v5868_v10 }
0x168a   : > { %v4224_v15 = vadd.f32 %v4216_v50, %v9746_v38  ;;  %v4226_v56 = vadd.f32 %v4218_v31, %v9747_v61  ;;  %v4217_v44 = vsel %vm4209_vm6, 0.007843138, %v9141_v7  ;;  %v4219_v9 = vsel %vm4211_vm7, 0.007843138, %v9141_v7  ;;  %v4160_v62 = vpop.f32.mrb[118].mxu0  ;;  %v4201_v0 = vpop.f32.mrb[118].mxu1  ;;  %5476 = vmatprep.subr.bf16.mxu0 %v5869_v36  ;;  %5498 = vmatprep.subr.bf16.mxu1 %v5870_v35 }
0x168b   : > { %v4225_v57 = vadd.f32 %v4217_v44, %v9748_v30  ;;  %v4227_v28 = vadd.f32 %v4219_v9, %v9749_v58  ;;  %v4161_v37 = vpop.f32.mrb[119].mxu0  ;;  %v4202_v29 = vpop.f32.mrb[119].mxu1  ;;  %v9758_v0 = vld [vmem:[#allocation68_spill] sm:$0xff] }
0x168c   : > { %v4232_v4 = vmax.f32 %v9750_v14, %v4224_v15  ;;  %v4234_v20 = vmax.f32 %v9751_v1, %v4226_v56 }
0x168d   : > { %v4233_v53 = vmax.f32 %v9752_v60, %v4225_v57  ;;  %v4235_v7 = vmax.f32 %v9753_v25, %v4227_v28  ;;  %5477 = vmatpush3.bf16.msra.mxu0 %v5871_v5  ;;  %5499 = vmatpush3.bf16.msra.mxu1 %v5872_v42  ;;  %v9759_v28 = vld [vmem:[#allocation19_spill] sm:$0xff] }
0x168e   : > { %v4240_v41 = vmin.f32 %v9754_v18, %v4232_v4  ;;  %v4242_v23 = vmin.f32 %v9755_v52, %v4234_v20  ;;  %5478 = vmatprep.subr.bf16.mxu0 %v5873_v46  ;;  %5500 = vmatprep.subr.bf16.mxu1 %v5874_v39 }
0x168f   : > { %v4241_v45 = vmin.f32 %v9756_v8, %v4233_v53  ;;  %v4243_v51 = vmin.f32 %v9757_v13, %v4235_v7 }
0x1690   : > { %v4248_v32 = vpack.c.bf16 %v4240_v41, %v4240_v41  ;;  %v4250_v49 = vpack.c.bf16 %v4242_v23, %v4242_v23 }
0x1691   : > { %5479 = vmatpush3.bf16.msra.mxu0 %v5875_v43  ;;  %5501 = vmatpush3.bf16.msra.mxu1 %v5876_v22  ;;  %v4249_v33 = vpack.c.bf16 %v4241_v45, %v4241_v45  ;;  %v4251_v55 = vpack.c.bf16 %v4243_v51, %v4243_v51 }
0x1693   : > { %4364 = vmatprep.mubr.bf16.mxu0 %v4249_v33  ;;  %4404 = vmatprep.mubr.bf16.mxu1 %v4251_v55 }
0x1694   : > { %4365 = vmatmul.mubr.bf16.vlgmr.msra.gmra.mrb[124].mxu0 %v4248_v32  ;;  %4405 = vmatmul.mubr.bf16.vlgmr.msra.gmra.mrb[124].mxu1 %v4250_v49 }
0x1747   : > { %v5436_v24 = vpop.f32.mrb[120].mxu0  ;;  %v5458_v6 = vpop.f32.mrb[120].mxu1 }
0x1748   : > { %v5437_v26 = vpop.f32.mrb[121].mxu0  ;;  %v5459_v12 = vpop.f32.mrb[121].mxu1 }
0x1749   : > { %v5438_v11 = vadd.f32 %v5437_v26, %v5436_v24  ;;  %v5460_v54 = vadd.f32 %v5459_v12, %v5458_v6  ;;  %v5439_v21 = vpop.f32.mrb[122].mxu0  ;;  %v5461_v27 = vpop.f32.mrb[122].mxu1 }
0x174a   : > { %v5440_v40 = vpop.f32.mrb[123].mxu0  ;;  %v5462_v48 = vpop.f32.mrb[123].mxu1 }
0x174b   : > { %v4287_v17 = vadd.f32 %v8150_v3, %v5438_v11 }
0x174d   : > { %v4327_v34 = vadd.f32 %v5460_v54, %v4287_v17 }
0x1767   : > { %v5480_v2 = vpop.f32.mrb[124].mxu0  ;;  %v5502_v19 = vpop.f32.mrb[124].mxu1 }
0x1768   : > { %v5481_v63 = vpop.f32.mrb[125].mxu0  ;;  %v5503_v59 = vpop.f32.mrb[125].mxu1 }
0x1769   : > { %v5482_v50 = vadd.f32 %v5481_v63, %v5480_v2  ;;  %v5504_v31 = vadd.f32 %v5503_v59, %v5502_v19  ;;  %v5483_v16 = vpop.f32.mrb[126].mxu0  ;;  %v5505_v10 = vpop.f32.mrb[126].mxu1 }
0x176a   : > { %v5484_v38 = vpop.f32.mrb[127].mxu0  ;;  %v5506_v15 = vpop.f32.mrb[127].mxu1 }
0x176b   : > { %v4367_v61 = vadd.f32 %v5482_v50, %v4327_v34 }
0x176d   : > { %v4407_v56 = vadd.f32 %v5504_v31, %v4367_v61 }
0x176f   : > { %4412 = vmax.xlane.f32.xlu0 %v4407_v56 }
0x17fc   : > { %v4413_v44 = vpop.xlane.xlu0 %4412 }
0x17fd   : > { %v4414_v9 = vsub.f32 %v4407_v56, %v4413_v44 }
0x17ff   : > { %v4415_v62 = vmul.f32 1.442695, %v4414_v9 }
0x1801   : > { %5677 = vpow2.f32 %v4415_v62 }
0x1802   : > { %5679 = vlog2.f32 %v9758_v0 }
0x180b   : > { %v5678_v3 = vpop.eup %5677 }
0x180c   : > { %4417 = vadd.xlane.f32.xlu1 %v5678_v3  ;;  %v5680_v35 = vpop.eup %5679 }
0x180d   : > { %v1183_v30 = vmul.f32 0.6931472, %v5680_v35 }
0x180f   : > { %v1184_v37 = vsub.f32 %v9759_v28, %v1183_v30 }
0x1899   : > { %v4418_v36 = vpop.xlane.xlu1 %4417 }
0x189a   : > { %5681 = vlog2.f32 %v4418_v36 }
0x18a4   : > { %v5682_v57 = vpop.eup %5681 }
0x18a5   : > { %v4420_v58 = vmul.f32 0.6931472, %v5682_v57 }
0x18a7   : > { %v4421_v29 = vsub.f32 %v4414_v9, %v4420_v58 }
0x18a9   : > { %v4422_v14 = vsub.f32 %v1184_v37, %v4421_v29 }
0x18ab   : > { %v4423_v4 = vmul.f32 %v4422_v14, %v9161_v47 }
0x18ad   : > { %4424 = vst [vmem:[%s244_s6] sm:$0xff] %v4423_v4 }
0x18ae   : > { %5976 = shalt.err (!%p5973_p2)
}
0x18af   : > { %s5977_s10 = scalar_lea.hbm %s8425_s15, 128  ;;  %s5981_s17 = scalar_lea.hbm %s8474_s5, 256 }
0x18b0   : > { %p5978_p13 = scmp.ne.s32.totalorder %s8425_s15, %s5977_s10  ;;  %p5982_p4 = scmp.lt.u32.totalorder %s8425_s15, %s8474_s5 }
0x18b1   : > { %p5983_p7 = scmp.lt.u32.totalorder %s5981_s17, %s5977_s10  ;;  %p5985_p11 = scmp.lt.u32.totalorder %s5977_s10, %s8425_s15 }
0x18b2   : > { %p5979_p6 = pnand %p5978_p13, %p9760_p0 }
0x18b3   : > { %p5984_p8 = por %p5983_p7, %p5982_p4 }
0x18b4   : > { %p5980_p10 = pneg %p5979_p6 }
0x18b5   : > { %p5986_p1 = por %p5985_p11, %p5984_p8 }
0x18b7   : > { %p5987_p3 = pnand %p5986_p1, %p5980_p10 }
0x18b9   : > { %5990 = shalt.err (!%p5987_p3)
}
0x18ba   : > { %5518 = dma.vmem_to_hbm [thread:$0]  (%p9760_p0), %s8427_s8, 128, %s8425_s15, %s4426_s27  }
0x18bb PF: > { %s4451_s30 = sand.u32 1, %s6021_s20   ;;  %p9761_p5 = scmp.ne.s32.totalorder %s8935_s26, 0 }
0x18bc   : > { %p9762_p9 = scmp.ge.s32.totalorder %s6033_s23, 2  ;;  %s4452_s7 = scalar_lea.sflag [#allocation6], %s4451_s30 }
0x18be   : > { %p5532_p12 = pnand %p9762_p9, %p9761_p5 }
0x18c0   : > { %6016 = dma.done.wait (!%p5532_p12), %s4452_s7, 128  }
0x18c1   : > { %6018 = vsyncadd (!%p5532_p12), %s4452_s7, 4294967168  ;;  %p20_p2 = scmp.ge.s32.totalorder %s6188_s16, 4   ;;  %s9763_s20 = smov %s6025_s21 }
0x18c2   : > { %s9764_s21 = smov %s6029_s22  ;;  %s9765_s22 = smov %s6197_s19 }
0x18c3   : > { %s9766_s23 = smov %s6188_s16  ;;  %22 = sbr.rel (!%p20_p2) target bundleno = 8 (0x8), region = 89 }
0x18ca   :  { %4457 = vsyncpa [#allocation5], 1 }
0x18cb   :  { %4459 = vsyncpa [#allocation5 + $0x1], 1 }
0x18cc   :  { %4460 = vsyncpa [#allocation8], 1 }
0x18cd   :  { %4461 = vsyncpa [#allocation6], 1 }
0x18ce   :  { %4463 = vsyncpa [#allocation6 + $0x1], 1 }

</bundles_post_ra>
